<compile_context>
chip_gen: v6e
topology: v6e:2x2x1
jax: 0.10.0
libtpu: 0.0.40
codegen_flags: <defaults>
</compile_context>

<pallas_src>
import math

import jax
import jax.numpy as jnp
from jax.experimental import pallas as pl
from jax.experimental.pallas import tpu as pltpu

# ----------------------- small, module-consistent config -----------------------
D_MODEL = 128            # (torch default is 1152; scaled down, semantics identical)
NHEAD = 4
HEAD_DIM = D_MODEL // NHEAD
D_FF = 256               # (torch TransformerEncoderLayer default 2048, scaled down)
NUM_SELF_LAYERS = 2
NUM_CROSS_LAYERS = 2
MAX_REGIONS = 15
MAX_TOKENS_IMG = 64
LN_EPS = 1e-5
NR = 5                   # regions per modality (matches Freg_rgb = (1, 5, F))
NT = 32                  # image tokens
S_REG = 2 * NR + 1       # cls + rgb regions + depth regions


# --------------------------- in-kernel helper math -----------------------------

def _layer_norm(x, gamma, beta):
    # biased variance like torch LayerNorm; single pass: var = E[x^2] - mean^2
    mean = jnp.mean(x, axis=-1, keepdims=True)
    var = jnp.mean(x * x, axis=-1, keepdims=True) - mean * mean
    return (x - mean) * jax.lax.rsqrt(var + LN_EPS) * gamma + beta


def _mha(q, k, v, wo, bo):
    """Multi-head attention.

    q: (Sq, D) f32 (the 1/sqrt(head_dim) scale is pre-folded into the Q
    projection weights), k/v: (Sk, D) f32, wo: (D, D) bf16, bo: (1, D) f32.

    * softmax is head-batched: per-head scores are stacked along sublanes into
      one (NHEAD*Sq, Sk) tile -> single max/exp/sum/reciprocal.
    * head merge is folded into the output projection: per-head (Sq,HEAD_DIM)
      @ (HEAD_DIM,D) partial products accumulate into the (Sq, D) result.
    """
    Sq = q.shape[0]
    q16 = q.astype(jnp.bfloat16)
    k16 = k.astype(jnp.bfloat16)
    v16 = v.astype(jnp.bfloat16)

    scores = []
    for h in range(NHEAD):
        lo, hi = h * HEAD_DIM, (h + 1) * HEAD_DIM
        scores.append(jax.lax.dot_general(
            q16[:, lo:hi], k16[:, lo:hi], (((1,), (1,)), ((), ())),
            preferred_element_type=jnp.float32))          # (Sq, Sk)

    s = jnp.concatenate(scores, axis=0)                   # (NHEAD*Sq, Sk) f32
    s = s - jnp.max(s, axis=-1, keepdims=True)
    p = jnp.exp(s)
    # EUP approximate reciprocal for the softmax denominator (inference-grade)
    p = p * pl.reciprocal(jnp.sum(p, axis=-1, keepdims=True), approx=True)
    p16 = p.astype(jnp.bfloat16)

    out = jnp.zeros((Sq, D_MODEL), jnp.float32)
    for h in range(NHEAD):
        lo, hi = h * HEAD_DIM, (h + 1) * HEAD_DIM
        pv = jnp.dot(p16[h * Sq:(h + 1) * Sq, :], v16[:, lo:hi],
                     preferred_element_type=jnp.float32)   # (Sq, HEAD_DIM)
        out = out + jnp.dot(pv.astype(jnp.bfloat16), wo[lo:hi, :],
                            preferred_element_type=jnp.float32)
    return out + bo


def _encoder_layer(x, wqkv, bqkv, wo, bo, w1, b1, w2, b2, ln):
    x16 = x.astype(jnp.bfloat16)
    qkv = jnp.dot(x16, wqkv, preferred_element_type=jnp.float32) + bqkv
    a = _mha(qkv[:, :D_MODEL], qkv[:, D_MODEL:2 * D_MODEL],
             qkv[:, 2 * D_MODEL:], wo, bo)
    x = _layer_norm(x + a, ln[0:1], ln[1:2])

    x16 = x.astype(jnp.bfloat16)
    h = jnp.maximum(
        jnp.dot(x16, w1, preferred_element_type=jnp.float32) + b1, 0.0)
    h = jnp.dot(h.astype(jnp.bfloat16), w2,
                preferred_element_type=jnp.float32) + b2
    return _layer_norm(x + h, ln[2:3], ln[3:4])


def _decoder_layer(x, mem16, wqkv, bqkv, wo, bo, wqc, bqc, wkvc, bkvc, woc, boc,
                   w1, b1, w2, b2, ln):
    # self-attention
    x16 = x.astype(jnp.bfloat16)
    qkv = jnp.dot(x16, wqkv, preferred_element_type=jnp.float32) + bqkv
    a = _mha(qkv[:, :D_MODEL], qkv[:, D_MODEL:2 * D_MODEL],
             qkv[:, 2 * D_MODEL:], wo, bo)
    x = _layer_norm(x + a, ln[0:1], ln[1:2])

    # cross-attention (queries from x, fused K/V from bf16 memory tokens)
    x16 = x.astype(jnp.bfloat16)
    qc = jnp.dot(x16, wqc, preferred_element_type=jnp.float32) + bqc
    kvc = jnp.dot(mem16, wkvc, preferred_element_type=jnp.float32) + bkvc
    a = _mha(qc, kvc[:, :D_MODEL], kvc[:, D_MODEL:], woc, boc)
    x = _layer_norm(x + a, ln[2:3], ln[3:4])

    # feed-forward
    x16 = x.astype(jnp.bfloat16)
    h = jnp.maximum(
        jnp.dot(x16, w1, preferred_element_type=jnp.float32) + b1, 0.0)
    h = jnp.dot(h.astype(jnp.bfloat16), w2,
                preferred_element_type=jnp.float32) + b2
    return _layer_norm(x + h, ln[4:5], ln[5:6])


# ------------------------------- fused kernel ----------------------------------

def _layer_grid_kernel(
    x0_ref, mem_ref,
    # encoder per-layer weights (block leading dim = 1)
    e_wqkv, e_bqkv, e_wo, e_bo, e_w1, e_b1, e_w2, e_b2, e_ln,
    # decoder per-layer weights (block leading dim = 1)
    d_wqkv, d_bqkv, d_wo, d_bo, d_wqc, d_bqc, d_wkvc, d_bkvc, d_woc, d_boc,
    d_w1, d_b1, d_w2, d_b2, d_ln,
    o_ref,
    x_sc,                       # VMEM carry for the activations across layers
):
    l = pl.program_id(0)

    @pl.when(l == 0)
    def _():
        x_sc[...] = x0_ref[...]

    @pl.when(l < NUM_SELF_LAYERS)
    def _():
        x_sc[...] = _encoder_layer(
            x_sc[...],
            e_wqkv[0], e_bqkv[0], e_wo[0], e_bo[0],
            e_w1[0], e_b1[0], e_w2[0], e_b2[0], e_ln[0])

    @pl.when(l >= NUM_SELF_LAYERS)
    def _():
        x_sc[...] = _decoder_layer(
            x_sc[...], mem_ref[...],
            d_wqkv[0], d_bqkv[0], d_wo[0], d_bo[0],
            d_wqc[0], d_bqc[0], d_wkvc[0], d_bkvc[0], d_woc[0], d_boc[0],
            d_w1[0], d_b1[0], d_w2[0], d_b2[0], d_ln[0])

    @pl.when(l == pl.num_programs(0) - 1)
    def _():
        o_ref[...] = x_sc[...]


def fused_forward(freg, mem16, enc, dec):
    n_layers = NUM_SELF_LAYERS + NUM_CROSS_LAYERS

    # clamp: encoder weights stop advancing after the last encoder layer,
    # decoder weights stay at layer 0 until the decoder phase starts -- when
    # the block index is unchanged between steps Pallas does not re-DMA it.
    def _enc_idx(l):
        return jnp.minimum(l, NUM_SELF_LAYERS - 1)

    def _dec_idx(l):
        return jnp.maximum(l - NUM_SELF_LAYERS, 0)

    def enc_spec(a):
        return pl.BlockSpec(
            (1,) + a.shape[1:],
            lambda l, _a=a: (_enc_idx(l),) + (0,) * (_a.ndim - 1))

    def dec_spec(a):
        return pl.BlockSpec(
            (1,) + a.shape[1:],
            lambda l, _a=a: (_dec_idx(l),) + (0,) * (_a.ndim - 1))

    enc_keys = ["wqkv", "bqkv", "wo", "bo", "w1", "b1", "w2", "b2", "ln"]
    dec_keys = ["wqkv", "bqkv", "wo", "bo", "wqc", "bqc", "wkvc", "bkvc",
                "woc", "boc", "w1", "b1", "w2", "b2", "ln"]
    enc_args = [enc[k] for k in enc_keys]
    dec_args = [dec[k] for k in dec_keys]

    in_specs = (
        [pl.BlockSpec(freg.shape, lambda l: (0, 0)),      # activations (f32)
         pl.BlockSpec(mem16.shape, lambda l: (0, 0))]     # memory tokens (bf16)
        + [enc_spec(a) for a in enc_args]
        + [dec_spec(a) for a in dec_args]
    )

    return pl.pallas_call(
        _layer_grid_kernel,
        out_shape=jax.ShapeDtypeStruct(freg.shape, jnp.float32),
        grid_spec=pltpu.PrefetchScalarGridSpec(
            num_scalar_prefetch=0,
            grid=(n_layers,),
            in_specs=in_specs,
            out_specs=pl.BlockSpec(freg.shape, lambda l: (0, 0)),
            scratch_shapes=[pltpu.VMEM(freg.shape, jnp.float32)],
        ),
        compiler_params=pltpu.CompilerParams(
            dimension_semantics=("arbitrary",),   # sequential carry across layers
            vmem_limit_bytes=16 * 1024 * 1024,
        ),
    )(freg, mem16, *enc_args, *dec_args)


# ------------------------------- parameter init --------------------------------
# Weights are stored pre-transposed ("x @ W" layout), pre-fused (QKV / KV / FFN),
# stacked per layer, cast to bf16, with the attention scale folded into the Q
# projection -- the hot path does zero layout or scaling work.

_ATT_SCALE = 1.0 / math.sqrt(HEAD_DIM)


def _nrm(key, shape):
    return 0.02 * jax.random.normal(key, shape, jnp.float32)


def _init_encoder_stack(key):
    keys = jax.random.split(key, NUM_SELF_LAYERS)
    wqkv, wo, w1, w2 = [], [], [], []
    for k in keys:
        k1, k2, k3, k4 = jax.random.split(k, 4)
        w = _nrm(k1, (D_MODEL, 3 * D_MODEL))
        w = w.at[:, :D_MODEL].multiply(_ATT_SCALE)   # fold 1/sqrt(dh) into Q cols
        wqkv.append(w)
        wo.append(_nrm(k2, (D_MODEL, D_MODEL)))
        w1.append(_nrm(k3, (D_MODEL, D_FF)))
        w2.append(_nrm(k4, (D_FF, D_MODEL)))
    L = NUM_SELF_LAYERS
    ones = jnp.ones((L, 1, D_MODEL), jnp.float32)
    zeros = jnp.zeros((L, 1, D_MODEL), jnp.float32)
    return dict(
        wqkv=jnp.stack(wqkv).astype(jnp.bfloat16),
        # Q bias portion would also be scaled by _ATT_SCALE if nonzero.
        bqkv=jnp.zeros((L, 1, 3 * D_MODEL), jnp.float32),
        wo=jnp.stack(wo).astype(jnp.bfloat16),
        bo=jnp.zeros((L, 1, D_MODEL), jnp.float32),
        w1=jnp.stack(w1).astype(jnp.bfloat16),
        b1=jnp.zeros((L, 1, D_FF), jnp.float32),
        w2=jnp.stack(w2).astype(jnp.bfloat16),
        b2=jnp.zeros((L, 1, D_MODEL), jnp.float32),
        # rows: [ln1_gamma, ln1_beta, ln2_gamma, ln2_beta]
        ln=jnp.concatenate([ones, zeros, ones, zeros], axis=1),
    )


def _init_decoder_stack(key):
    keys = jax.random.split(key, NUM_CROSS_LAYERS)
    wqkv, wo, wqc, wkvc, woc, w1, w2 = ([] for _ in range(7))
    for k in keys:
        k1, k2, k3, k4, k5, k6, k7 = jax.random.split(k, 7)
        w = _nrm(k1, (D_MODEL, 3 * D_MODEL))
        w = w.at[:, :D_MODEL].multiply(_ATT_SCALE)
        wqkv.append(w)
        wo.append(_nrm(k2, (D_MODEL, D_MODEL)))
        wqc.append(_nrm(k3, (D_MODEL, D_MODEL)) * _ATT_SCALE)
        wkvc.append(_nrm(k4, (D_MODEL, 2 * D_MODEL)))
        woc.append(_nrm(k5, (D_MODEL, D_MODEL)))
        w1.append(_nrm(k6, (D_MODEL, D_FF)))
        w2.append(_nrm(k7, (D_FF, D_MODEL)))
    L = NUM_CROSS_LAYERS
    ones = jnp.ones((L, 1, D_MODEL), jnp.float32)
    zeros = jnp.zeros((L, 1, D_MODEL), jnp.float32)
    return dict(
        wqkv=jnp.stack(wqkv).astype(jnp.bfloat16),
        bqkv=jnp.zeros((L, 1, 3 * D_MODEL), jnp.float32),
        wo=jnp.stack(wo).astype(jnp.bfloat16),
        bo=jnp.zeros((L, 1, D_MODEL), jnp.float32),
        wqc=jnp.stack(wqc).astype(jnp.bfloat16),
        bqc=jnp.zeros((L, 1, D_MODEL), jnp.float32),
        wkvc=jnp.stack(wkvc).astype(jnp.bfloat16),
        bkvc=jnp.zeros((L, 1, 2 * D_MODEL), jnp.float32),
        woc=jnp.stack(woc).astype(jnp.bfloat16),
        boc=jnp.zeros((L, 1, D_MODEL), jnp.float32),
        w1=jnp.stack(w1).astype(jnp.bfloat16),
        b1=jnp.zeros((L, 1, D_FF), jnp.float32),
        w2=jnp.stack(w2).astype(jnp.bfloat16),
        b2=jnp.zeros((L, 1, D_MODEL), jnp.float32),
        # rows: [ln1_g, ln1_b, ln2_g, ln2_b, ln3_g, ln3_b]
        ln=jnp.concatenate([ones, zeros, ones, zeros, ones, zeros], axis=1),
    )


def init_params(key):
    k_cls, k_pr, k_pi, k_enc, k_dec = jax.random.split(key, 5)
    return dict(
        cls_token=jax.random.normal(k_cls, (1, D_MODEL), jnp.float32),
        pos_embed_region=jax.random.normal(
            k_pr, (2 * MAX_REGIONS + 1, D_MODEL), jnp.float32),
        pos_embed_image=jax.random.normal(
            k_pi, (MAX_TOKENS_IMG, D_MODEL), jnp.float32),
        enc=_init_encoder_stack(k_enc),
        dec=_init_decoder_stack(k_dec),
    )


# ------------------------------------ forward -----------------------------------

@jax.jit
def region_transformer_forward(params, Freg_rgb, Freg_depth, Fimg_rgb):
    # inputs: (1, Nr, D), (1, Nr, D), (1, Nt, D)  -- batch of 1 squeezed here
    rgb, depth, img = Freg_rgb[0], Freg_depth[0], Fimg_rgb[0]
    Nr, Nt = rgb.shape[0], img.shape[0]

    freg = jnp.concatenate([params["cls_token"], rgb, depth], axis=0)  # (2Nr+1, D)
    freg = freg + params["pos_embed_region"][: 2 * Nr + 1]
    # memory tokens are only ever matmul inputs -> ship them as bf16 (half DMA)
    mem16 = (img + params["pos_embed_image"][:Nt]).astype(jnp.bfloat16)

    y = fused_forward(freg, mem16, params["enc"], params["dec"])

    CLS = y[0:1, :]                                # (1, D)  == torch X[:, 0, :]
    Freg_rgb_trans = y[1:1 + Nr][None]             # (1, Nr, D)
    Freg_depth_trans = y[1 + Nr:1 + 2 * Nr][None]  # (1, Nr, D)
    return CLS, Freg_rgb_trans, Freg_depth_trans


# ------------------------------------ main --------------------------------------

if __name__ == "__main__":
    key = jax.random.PRNGKey(0)
    k_par, k_rgb, k_dep, k_img = jax.random.split(key, 4)

    params = init_params(k_par)

    Freg_rgb = jax.random.normal(k_rgb, (1, NR, D_MODEL), jnp.float32)
    Freg_depth = jax.random.normal(k_dep, (1, NR, D_MODEL), jnp.float32)
    Fimg_rgb = jax.random.normal(k_img, (1, NT, D_MODEL), jnp.float32)

    CLS, rgb_t, depth_t = region_transformer_forward(
        params, Freg_rgb, Freg_depth, Fimg_rgb)

    jax.block_until_ready((CLS, rgb_t, depth_t))

    assert CLS.shape == (1, D_MODEL)
    assert rgb_t.shape == (1, NR, D_MODEL)
    assert depth_t.shape == (1, NR, D_MODEL)
    assert bool(jnp.all(jnp.isfinite(CLS)))
    assert bool(jnp.all(jnp.isfinite(rgb_t)))
    assert bool(jnp.all(jnp.isfinite(depth_t)))
    print("KERNEL_OK")
</pallas_src>

<mosaic_0001>
module attributes {stable_mosaic.version = 11 : i64} {
  func.func @_layer_grid_kernel(%arg0: i32, %arg1: memref<11x128xf32, #tpu.memory_space<vmem>>, %arg2: memref<32x128xbf16, #tpu.memory_space<vmem>>, %arg3: memref<1x128x384xbf16, #tpu.memory_space<vmem>>, %arg4: memref<1x1x384xf32, #tpu.memory_space<vmem>>, %arg5: memref<1x128x128xbf16, #tpu.memory_space<vmem>>, %arg6: memref<1x1x128xf32, #tpu.memory_space<vmem>>, %arg7: memref<1x128x256xbf16, #tpu.memory_space<vmem>>, %arg8: memref<1x1x256xf32, #tpu.memory_space<vmem>>, %arg9: memref<1x256x128xbf16, #tpu.memory_space<vmem>>, %arg10: memref<1x1x128xf32, #tpu.memory_space<vmem>>, %arg11: memref<1x4x128xf32, #tpu.memory_space<vmem>>, %arg12: memref<1x128x384xbf16, #tpu.memory_space<vmem>>, %arg13: memref<1x1x384xf32, #tpu.memory_space<vmem>>, %arg14: memref<1x128x128xbf16, #tpu.memory_space<vmem>>, %arg15: memref<1x1x128xf32, #tpu.memory_space<vmem>>, %arg16: memref<1x128x128xbf16, #tpu.memory_space<vmem>>, %arg17: memref<1x1x128xf32, #tpu.memory_space<vmem>>, %arg18: memref<1x128x256xbf16, #tpu.memory_space<vmem>>, %arg19: memref<1x1x256xf32, #tpu.memory_space<vmem>>, %arg20: memref<1x128x128xbf16, #tpu.memory_space<vmem>>, %arg21: memref<1x1x128xf32, #tpu.memory_space<vmem>>, %arg22: memref<1x128x256xbf16, #tpu.memory_space<vmem>>, %arg23: memref<1x1x256xf32, #tpu.memory_space<vmem>>, %arg24: memref<1x256x128xbf16, #tpu.memory_space<vmem>>, %arg25: memref<1x1x128xf32, #tpu.memory_space<vmem>>, %arg26: memref<1x6x128xf32, #tpu.memory_space<vmem>>, %arg27: memref<11x128xf32, #tpu.memory_space<vmem>>, %arg28: memref<11x128xf32, #tpu.memory_space<vmem>>) attributes {dimension_semantics = [#tpu.dimension_semantics<arbitrary>], iteration_bounds = array<i64: 4>, scalar_prefetch = 0 : i64, scratch_operands = 1 : i64, tpu.core_type = #tpu.core_type<tc>, window_params = [{pipeline_mode = #tpu.pipeline_mode<synchronous>, transform_indices = @transform_0, window_bounds = array<i64: 11, 128>}, {pipeline_mode = #tpu.pipeline_mode<synchronous>, transform_indices = @transform_1, window_bounds = array<i64: 32, 128>}, {transform_indices = @transform_2, window_bounds = array<i64: 1, 128, 384>}, {transform_indices = @transform_3, window_bounds = array<i64: 1, 1, 384>}, {transform_indices = @transform_4, window_bounds = array<i64: 1, 128, 128>}, {transform_indices = @transform_5, window_bounds = array<i64: 1, 1, 128>}, {transform_indices = @transform_6, window_bounds = array<i64: 1, 128, 256>}, {transform_indices = @transform_7, window_bounds = array<i64: 1, 1, 256>}, {transform_indices = @transform_8, window_bounds = array<i64: 1, 256, 128>}, {transform_indices = @transform_9, window_bounds = array<i64: 1, 1, 128>}, {transform_indices = @transform_10, window_bounds = array<i64: 1, 4, 128>}, {transform_indices = @transform_11, window_bounds = array<i64: 1, 128, 384>}, {transform_indices = @transform_12, window_bounds = array<i64: 1, 1, 384>}, {transform_indices = @transform_13, window_bounds = array<i64: 1, 128, 128>}, {transform_indices = @transform_14, window_bounds = array<i64: 1, 1, 128>}, {transform_indices = @transform_15, window_bounds = array<i64: 1, 128, 128>}, {transform_indices = @transform_16, window_bounds = array<i64: 1, 1, 128>}, {transform_indices = @transform_17, window_bounds = array<i64: 1, 128, 256>}, {transform_indices = @transform_18, window_bounds = array<i64: 1, 1, 256>}, {transform_indices = @transform_19, window_bounds = array<i64: 1, 128, 128>}, {transform_indices = @transform_20, window_bounds = array<i64: 1, 1, 128>}, {transform_indices = @transform_21, window_bounds = array<i64: 1, 128, 256>}, {transform_indices = @transform_22, window_bounds = array<i64: 1, 1, 256>}, {transform_indices = @transform_23, window_bounds = array<i64: 1, 256, 128>}, {transform_indices = @transform_24, window_bounds = array<i64: 1, 1, 128>}, {transform_indices = @transform_25, window_bounds = array<i64: 1, 6, 128>}, {pipeline_mode = #tpu.pipeline_mode<synchronous>, transform_indices = @transform_26, window_bounds = array<i64: 11, 128>}]} {
    %c0_i32 = arith.constant 0 : i32
    %0 = arith.cmpi eq, %arg0, %c0_i32 : i32
    %1 = arith.extui %0 : i1 to i32
    %c0_i32_0 = arith.constant 0 : i32
    %2 = arith.cmpi ne, %1, %c0_i32_0 : i32
    scf.if %2 {
      %c0 = arith.constant 0 : index
      %c0_5 = arith.constant 0 : index
      %12 = vector.load %arg1[%c0, %c0_5] : memref<11x128xf32, #tpu.memory_space<vmem>>, vector<11x128xf32>
      %c0_6 = arith.constant 0 : index
      %c0_7 = arith.constant 0 : index
      %13 = vector.load %arg28[%c0_6, %c0_7] : memref<11x128xf32, #tpu.memory_space<vmem>>, vector<11x128xf32>
      tpu.vector_store %arg28[%c0_6, %c0_7], %12 {strides = array<i32>} : memref<11x128xf32, #tpu.memory_space<vmem>>, vector<11x128xf32>,
    } else {
    }
    %c2_i32 = arith.constant 2 : i32
    %3 = arith.cmpi slt, %arg0, %c2_i32 : i32
    %4 = arith.extui %3 : i1 to i32
    %c0_i32_1 = arith.constant 0 : i32
    %5 = arith.cmpi ne, %4, %c0_i32_1 : i32
    scf.if %5 {
      %c0 = arith.constant 0 : index
      %c0_5 = arith.constant 0 : index
      %12 = vector.load %arg28[%c0, %c0_5] : memref<11x128xf32, #tpu.memory_space<vmem>>, vector<11x128xf32>
      %c0_6 = arith.constant 0 : index
      %c0_7 = arith.constant 0 : index
      %c0_8 = arith.constant 0 : index
      %13 = vector.load %arg3[%c0_6, %c0_7, %c0_8] : memref<1x128x384xbf16, #tpu.memory_space<vmem>>, vector<1x128x384xbf16>
      %14 = vector.shape_cast %13 : vector<1x128x384xbf16> to vector<128x384xbf16>
      %c0_9 = arith.constant 0 : index
      %c0_10 = arith.constant 0 : index
      %c0_11 = arith.constant 0 : index
      %15 = vector.load %arg4[%c0_9, %c0_10, %c0_11] : memref<1x1x384xf32, #tpu.memory_space<vmem>>, vector<1x1x384xf32>
      %16 = vector.shape_cast %15 : vector<1x1x384xf32> to vector<1x384xf32>
      %c0_12 = arith.constant 0 : index
      %c0_13 = arith.constant 0 : index
      %c0_14 = arith.constant 0 : index
      %17 = vector.load %arg5[%c0_12, %c0_13, %c0_14] : memref<1x128x128xbf16, #tpu.memory_space<vmem>>, vector<1x128x128xbf16>
      %18 = vector.shape_cast %17 : vector<1x128x128xbf16> to vector<128x128xbf16>
      %c0_15 = arith.constant 0 : index
      %c0_16 = arith.constant 0 : index
      %c0_17 = arith.constant 0 : index
      %19 = vector.load %arg6[%c0_15, %c0_16, %c0_17] : memref<1x1x128xf32, #tpu.memory_space<vmem>>, vector<1x1x128xf32>
      %20 = vector.shape_cast %19 : vector<1x1x128xf32> to vector<1x128xf32>
      %c0_18 = arith.constant 0 : index
      %c0_19 = arith.constant 0 : index
      %c0_20 = arith.constant 0 : index
      %21 = vector.load %arg7[%c0_18, %c0_19, %c0_20] : memref<1x128x256xbf16, #tpu.memory_space<vmem>>, vector<1x128x256xbf16>
      %22 = vector.shape_cast %21 : vector<1x128x256xbf16> to vector<128x256xbf16>
      %c0_21 = arith.constant 0 : index
      %c0_22 = arith.constant 0 : index
      %c0_23 = arith.constant 0 : index
      %23 = vector.load %arg8[%c0_21, %c0_22, %c0_23] : memref<1x1x256xf32, #tpu.memory_space<vmem>>, vector<1x1x256xf32>
      %24 = vector.shape_cast %23 : vector<1x1x256xf32> to vector<1x256xf32>
      %c0_24 = arith.constant 0 : index
      %c0_25 = arith.constant 0 : index
      %c0_26 = arith.constant 0 : index
      %25 = vector.load %arg9[%c0_24, %c0_25, %c0_26] : memref<1x256x128xbf16, #tpu.memory_space<vmem>>, vector<1x256x128xbf16>
      %26 = vector.shape_cast %25 : vector<1x256x128xbf16> to vector<256x128xbf16>
      %c0_27 = arith.constant 0 : index
      %c0_28 = arith.constant 0 : index
      %c0_29 = arith.constant 0 : index
      %27 = vector.load %arg10[%c0_27, %c0_28, %c0_29] : memref<1x1x128xf32, #tpu.memory_space<vmem>>, vector<1x1x128xf32>
      %28 = vector.shape_cast %27 : vector<1x1x128xf32> to vector<1x128xf32>
      %c0_30 = arith.constant 0 : index
      %c0_31 = arith.constant 0 : index
      %c0_32 = arith.constant 0 : index
      %29 = vector.load %arg11[%c0_30, %c0_31, %c0_32] : memref<1x4x128xf32, #tpu.memory_space<vmem>>, vector<1x4x128xf32>
      %30 = vector.shape_cast %29 : vector<1x4x128xf32> to vector<4x128xf32>
      %31 = arith.truncf %12 : vector<11x128xf32> to vector<11x128xbf16>
      %cst = arith.constant dense<0.000000e+00> : vector<11x384xf32>
      %32 = tpu.matmul %31, %14, %cst {dimension_numbers = #tpu.dot_dimension_numbers<[1], [0], [0], [1], [0, 0, 1, 1], [], []>} : vector<11x128xbf16>, vector<128x384xbf16>, vector<11x384xf32> -> vector<11x384xf32>
      %33 = vector.broadcast %16 : vector<1x384xf32> to vector<11x384xf32>
      %34 = arith.addf %32, %33 : vector<11x384xf32>
      %35 = vector.extract_strided_slice %34 {offsets = [0, 0], sizes = [11, 128], strides = [1, 1]} : vector<11x384xf32> to vector<11x128xf32>
      %36 = vector.extract_strided_slice %34 {offsets = [0, 128], sizes = [11, 128], strides = [1, 1]} : vector<11x384xf32> to vector<11x128xf32>
      %37 = vector.extract_strided_slice %34 {offsets = [0, 256], sizes = [11, 128], strides = [1, 1]} : vector<11x384xf32> to vector<11x128xf32>
      %38 = arith.truncf %35 : vector<11x128xf32> to vector<11x128xbf16>
      %39 = arith.truncf %36 : vector<11x128xf32> to vector<11x128xbf16>
      %40 = arith.truncf %37 : vector<11x128xf32> to vector<11x128xbf16>
      %41 = vector.extract_strided_slice %38 {offsets = [0, 0], sizes = [11, 32], strides = [1, 1]} : vector<11x128xbf16> to vector<11x32xbf16>
      %42 = vector.extract_strided_slice %39 {offsets = [0, 0], sizes = [11, 32], strides = [1, 1]} : vector<11x128xbf16> to vector<11x32xbf16>
      %cst_33 = arith.constant dense<0.000000e+00> : vector<11x11xf32>
      %43 = tpu.matmul %41, %42, %cst_33 {dimension_numbers = #tpu.dot_dimension_numbers<[1], [1], [0], [0], [0, 0, 1, 0], [], []>} : vector<11x32xbf16>, vector<11x32xbf16>, vector<11x11xf32> -> vector<11x11xf32>
      %44 = vector.extract_strided_slice %38 {offsets = [0, 32], sizes = [11, 32], strides = [1, 1]} : vector<11x128xbf16> to vector<11x32xbf16>
      %45 = vector.extract_strided_slice %39 {offsets = [0, 32], sizes = [11, 32], strides = [1, 1]} : vector<11x128xbf16> to vector<11x32xbf16>
      %cst_34 = arith.constant dense<0.000000e+00> : vector<11x11xf32>
      %46 = tpu.matmul %44, %45, %cst_34 {dimension_numbers = #tpu.dot_dimension_numbers<[1], [1], [0], [0], [0, 0, 1, 0], [], []>} : vector<11x32xbf16>, vector<11x32xbf16>, vector<11x11xf32> -> vector<11x11xf32>
      %47 = vector.extract_strided_slice %38 {offsets = [0, 64], sizes = [11, 32], strides = [1, 1]} : vector<11x128xbf16> to vector<11x32xbf16>
      %48 = vector.extract_strided_slice %39 {offsets = [0, 64], sizes = [11, 32], strides = [1, 1]} : vector<11x128xbf16> to vector<11x32xbf16>
      %cst_35 = arith.constant dense<0.000000e+00> : vector<11x11xf32>
      %49 = tpu.matmul %47, %48, %cst_35 {dimension_numbers = #tpu.dot_dimension_numbers<[1], [1], [0], [0], [0, 0, 1, 0], [], []>} : vector<11x32xbf16>, vector<11x32xbf16>, vector<11x11xf32> -> vector<11x11xf32>
      %50 = vector.extract_strided_slice %38 {offsets = [0, 96], sizes = [11, 32], strides = [1, 1]} : vector<11x128xbf16> to vector<11x32xbf16>
      %51 = vector.extract_strided_slice %39 {offsets = [0, 96], sizes = [11, 32], strides = [1, 1]} : vector<11x128xbf16> to vector<11x32xbf16>
      %cst_36 = arith.constant dense<0.000000e+00> : vector<11x11xf32>
      %52 = tpu.matmul %50, %51, %cst_36 {dimension_numbers = #tpu.dot_dimension_numbers<[1], [1], [0], [0], [0, 0, 1, 0], [], []>} : vector<11x32xbf16>, vector<11x32xbf16>, vector<11x11xf32> -> vector<11x11xf32>
      %53 = tpu.concatenate %43, %46, %49, %52 in 0 : vector<11x11xf32>, vector<11x11xf32>, vector<11x11xf32>, vector<11x11xf32> -> vector<44x11xf32>
      %cst_37 = arith.constant dense<0xFF800000> : vector<44xf32>
      %54 = vector.multi_reduction <maximumf>, %53, %cst_37 [1] : vector<44x11xf32> to vector<44xf32>
      %55 = vector.shape_cast %54 : vector<44xf32> to vector<44x1xf32>
      %56 = vector.broadcast %55 : vector<44x1xf32> to vector<44x11xf32>
      %57 = arith.subf %53, %56 : vector<44x11xf32>
      %58 = math.exp %57 : vector<44x11xf32>
      %cst_38 = arith.constant dense<0.000000e+00> : vector<44xf32>
      %59 = vector.multi_reduction <add>, %58, %cst_38 [1] : vector<44x11xf32> to vector<44xf32>
      %60 = vector.shape_cast %59 : vector<44xf32> to vector<44x1xf32>
      %61 = tpu.reciprocal %60 {approx = true} : vector<44x1xf32> -> vector<44x1xf32>
      %62 = vector.broadcast %61 : vector<44x1xf32> to vector<44x11xf32>
      %63 = arith.mulf %58, %62 : vector<44x11xf32>
      %64 = arith.truncf %63 : vector<44x11xf32> to vector<44x11xbf16>
      %cst_39 = arith.constant 0.000000e+00 : f32
      %65 = vector.broadcast %cst_39 : f32 to vector<11x128xf32>
      %66 = vector.extract_strided_slice %64 {offsets = [0, 0], sizes = [11, 11], strides = [1, 1]} : vector<44x11xbf16> to vector<11x11xbf16>
      %67 = vector.extract_strided_slice %40 {offsets = [0, 0], sizes = [11, 32], strides = [1, 1]} : vector<11x128xbf16> to vector<11x32xbf16>
      %cst_40 = arith.constant dense<0.000000e+00> : vector<11x32xf32>
      %68 = tpu.matmul %66, %67, %cst_40 {dimension_numbers = #tpu.dot_dimension_numbers<[1], [0], [0], [1], [0, 0, 1, 1], [], []>} : vector<11x11xbf16>, vector<11x32xbf16>, vector<11x32xf32> -> vector<11x32xf32>
      %69 = arith.truncf %68 : vector<11x32xf32> to vector<11x32xbf16>
      %70 = vector.extract_strided_slice %18 {offsets = [0, 0], sizes = [32, 128], strides = [1, 1]} : vector<128x128xbf16> to vector<32x128xbf16>
      %cst_41 = arith.constant dense<0.000000e+00> : vector<11x128xf32>
      %71 = tpu.matmul %69, %70, %cst_41 {dimension_numbers = #tpu.dot_dimension_numbers<[1], [0], [0], [1], [0, 0, 1, 1], [], []>} : vector<11x32xbf16>, vector<32x128xbf16>, vector<11x128xf32> -> vector<11x128xf32>
      %72 = arith.addf %65, %71 : vector<11x128xf32>
      %73 = vector.extract_strided_slice %64 {offsets = [11, 0], sizes = [11, 11], strides = [1, 1]} : vector<44x11xbf16> to vector<11x11xbf16>
      %74 = vector.extract_strided_slice %40 {offsets = [0, 32], sizes = [11, 32], strides = [1, 1]} : vector<11x128xbf16> to vector<11x32xbf16>
      %cst_42 = arith.constant dense<0.000000e+00> : vector<11x32xf32>
      %75 = tpu.matmul %73, %74, %cst_42 {dimension_numbers = #tpu.dot_dimension_numbers<[1], [0], [0], [1], [0, 0, 1, 1], [], []>} : vector<11x11xbf16>, vector<11x32xbf16>, vector<11x32xf32> -> vector<11x32xf32>
      %76 = arith.truncf %75 : vector<11x32xf32> to vector<11x32xbf16>
      %77 = vector.extract_strided_slice %18 {offsets = [32, 0], sizes = [32, 128], strides = [1, 1]} : vector<128x128xbf16> to vector<32x128xbf16>
      %cst_43 = arith.constant dense<0.000000e+00> : vector<11x128xf32>
      %78 = tpu.matmul %76, %77, %cst_43 {dimension_numbers = #tpu.dot_dimension_numbers<[1], [0], [0], [1], [0, 0, 1, 1], [], []>} : vector<11x32xbf16>, vector<32x128xbf16>, vector<11x128xf32> -> vector<11x128xf32>
      %79 = arith.addf %72, %78 : vector<11x128xf32>
      %80 = vector.extract_strided_slice %64 {offsets = [22, 0], sizes = [11, 11], strides = [1, 1]} : vector<44x11xbf16> to vector<11x11xbf16>
      %81 = vector.extract_strided_slice %40 {offsets = [0, 64], sizes = [11, 32], strides = [1, 1]} : vector<11x128xbf16> to vector<11x32xbf16>
      %cst_44 = arith.constant dense<0.000000e+00> : vector<11x32xf32>
      %82 = tpu.matmul %80, %81, %cst_44 {dimension_numbers = #tpu.dot_dimension_numbers<[1], [0], [0], [1], [0, 0, 1, 1], [], []>} : vector<11x11xbf16>, vector<11x32xbf16>, vector<11x32xf32> -> vector<11x32xf32>
      %83 = arith.truncf %82 : vector<11x32xf32> to vector<11x32xbf16>
      %84 = vector.extract_strided_slice %18 {offsets = [64, 0], sizes = [32, 128], strides = [1, 1]} : vector<128x128xbf16> to vector<32x128xbf16>
      %cst_45 = arith.constant dense<0.000000e+00> : vector<11x128xf32>
      %85 = tpu.matmul %83, %84, %cst_45 {dimension_numbers = #tpu.dot_dimension_numbers<[1], [0], [0], [1], [0, 0, 1, 1], [], []>} : vector<11x32xbf16>, vector<32x128xbf16>, vector<11x128xf32> -> vector<11x128xf32>
      %86 = arith.addf %79, %85 : vector<11x128xf32>
      %87 = vector.extract_strided_slice %64 {offsets = [33, 0], sizes = [11, 11], strides = [1, 1]} : vector<44x11xbf16> to vector<11x11xbf16>
      %88 = vector.extract_strided_slice %40 {offsets = [0, 96], sizes = [11, 32], strides = [1, 1]} : vector<11x128xbf16> to vector<11x32xbf16>
      %cst_46 = arith.constant dense<0.000000e+00> : vector<11x32xf32>
      %89 = tpu.matmul %87, %88, %cst_46 {dimension_numbers = #tpu.dot_dimension_numbers<[1], [0], [0], [1], [0, 0, 1, 1], [], []>} : vector<11x11xbf16>, vector<11x32xbf16>, vector<11x32xf32> -> vector<11x32xf32>
      %90 = arith.truncf %89 : vector<11x32xf32> to vector<11x32xbf16>
      %91 = vector.extract_strided_slice %18 {offsets = [96, 0], sizes = [32, 128], strides = [1, 1]} : vector<128x128xbf16> to vector<32x128xbf16>
      %cst_47 = arith.constant dense<0.000000e+00> : vector<11x128xf32>
      %92 = tpu.matmul %90, %91, %cst_47 {dimension_numbers = #tpu.dot_dimension_numbers<[1], [0], [0], [1], [0, 0, 1, 1], [], []>} : vector<11x32xbf16>, vector<32x128xbf16>, vector<11x128xf32> -> vector<11x128xf32>
      %93 = arith.addf %86, %92 : vector<11x128xf32>
      %94 = vector.broadcast %20 : vector<1x128xf32> to vector<11x128xf32>
      %95 = arith.addf %93, %94 : vector<11x128xf32>
      %96 = arith.addf %12, %95 : vector<11x128xf32>
      %97 = vector.extract_strided_slice %30 {offsets = [0, 0], sizes = [1, 128], strides = [1, 1]} : vector<4x128xf32> to vector<1x128xf32>
      %98 = vector.extract_strided_slice %30 {offsets = [1, 0], sizes = [1, 128], strides = [1, 1]} : vector<4x128xf32> to vector<1x128xf32>
      %cst_48 = arith.constant dense<0.000000e+00> : vector<11xf32>
      %99 = vector.multi_reduction <add>, %96, %cst_48 [1] : vector<11x128xf32> to vector<11xf32>
      %100 = vector.shape_cast %99 : vector<11xf32> to vector<11x1xf32>
      %cst_49 = arith.constant 1.280000e+02 : f32
      %101 = vector.broadcast %cst_49 : f32 to vector<11x1xf32>
      %102 = arith.divf %100, %101 : vector<11x1xf32>
      %103 = arith.mulf %96, %96 : vector<11x128xf32>
      %cst_50 = arith.constant dense<0.000000e+00> : vector<11xf32>
      %104 = vector.multi_reduction <add>, %103, %cst_50 [1] : vector<11x128xf32> to vector<11xf32>
      %105 = vector.shape_cast %104 : vector<11xf32> to vector<11x1xf32>
      %cst_51 = arith.constant 1.280000e+02 : f32
      %106 = vector.broadcast %cst_51 : f32 to vector<11x1xf32>
      %107 = arith.divf %105, %106 : vector<11x1xf32>
      %108 = arith.mulf %102, %102 : vector<11x1xf32>
      %109 = arith.subf %107, %108 : vector<11x1xf32>
      %110 = vector.broadcast %102 : vector<11x1xf32> to vector<11x128xf32>
      %111 = arith.subf %96, %110 : vector<11x128xf32>
      %cst_52 = arith.constant 9.99999974E-6 : f32
      %112 = vector.broadcast %cst_52 : f32 to vector<11x1xf32>
      %113 = arith.addf %109, %112 : vector<11x1xf32>
      %114 = math.rsqrt %113 : vector<11x1xf32>
      %115 = vector.broadcast %114 : vector<11x1xf32> to vector<11x128xf32>
      %116 = arith.mulf %111, %115 : vector<11x128xf32>
      %117 = vector.broadcast %97 : vector<1x128xf32> to vector<11x128xf32>
      %118 = arith.mulf %116, %117 : vector<11x128xf32>
      %119 = vector.broadcast %98 : vector<1x128xf32> to vector<11x128xf32>
      %120 = arith.addf %118, %119 : vector<11x128xf32>
      %121 = arith.truncf %120 : vector<11x128xf32> to vector<11x128xbf16>
      %cst_53 = arith.constant dense<0.000000e+00> : vector<11x256xf32>
      %122 = tpu.matmul %121, %22, %cst_53 {dimension_numbers = #tpu.dot_dimension_numbers<[1], [0], [0], [1], [0, 0, 1, 1], [], []>} : vector<11x128xbf16>, vector<128x256xbf16>, vector<11x256xf32> -> vector<11x256xf32>
      %123 = vector.broadcast %24 : vector<1x256xf32> to vector<11x256xf32>
      %124 = arith.addf %122, %123 : vector<11x256xf32>
      %cst_54 = arith.constant 0.000000e+00 : f32
      %125 = vector.broadcast %cst_54 : f32 to vector<11x256xf32>
      %126 = arith.maximumf %124, %125 : vector<11x256xf32>
      %127 = arith.truncf %126 : vector<11x256xf32> to vector<11x256xbf16>
      %cst_55 = arith.constant dense<0.000000e+00> : vector<11x128xf32>
      %128 = tpu.matmul %127, %26, %cst_55 {dimension_numbers = #tpu.dot_dimension_numbers<[1], [0], [0], [1], [0, 0, 1, 1], [], []>} : vector<11x256xbf16>, vector<256x128xbf16>, vector<11x128xf32> -> vector<11x128xf32>
      %129 = vector.broadcast %28 : vector<1x128xf32> to vector<11x128xf32>
      %130 = arith.addf %128, %129 : vector<11x128xf32>
      %131 = arith.addf %120, %130 : vector<11x128xf32>
      %132 = vector.extract_strided_slice %30 {offsets = [2, 0], sizes = [1, 128], strides = [1, 1]} : vector<4x128xf32> to vector<1x128xf32>
      %133 = vector.extract_strided_slice %30 {offsets = [3, 0], sizes = [1, 128], strides = [1, 1]} : vector<4x128xf32> to vector<1x128xf32>
      %cst_56 = arith.constant dense<0.000000e+00> : vector<11xf32>
      %134 = vector.multi_reduction <add>, %131, %cst_56 [1] : vector<11x128xf32> to vector<11xf32>
      %135 = vector.shape_cast %134 : vector<11xf32> to vector<11x1xf32>
      %cst_57 = arith.constant 1.280000e+02 : f32
      %136 = vector.broadcast %cst_57 : f32 to vector<11x1xf32>
      %137 = arith.divf %135, %136 : vector<11x1xf32>
      %138 = arith.mulf %131, %131 : vector<11x128xf32>
      %cst_58 = arith.constant dense<0.000000e+00> : vector<11xf32>
      %139 = vector.multi_reduction <add>, %138, %cst_58 [1] : vector<11x128xf32> to vector<11xf32>
      %140 = vector.shape_cast %139 : vector<11xf32> to vector<11x1xf32>
      %cst_59 = arith.constant 1.280000e+02 : f32
      %141 = vector.broadcast %cst_59 : f32 to vector<11x1xf32>
      %142 = arith.divf %140, %141 : vector<11x1xf32>
      %143 = arith.mulf %137, %137 : vector<11x1xf32>
      %144 = arith.subf %142, %143 : vector<11x1xf32>
      %145 = vector.broadcast %137 : vector<11x1xf32> to vector<11x128xf32>
      %146 = arith.subf %131, %145 : vector<11x128xf32>
      %cst_60 = arith.constant 9.99999974E-6 : f32
      %147 = vector.broadcast %cst_60 : f32 to vector<11x1xf32>
      %148 = arith.addf %144, %147 : vector<11x1xf32>
      %149 = math.rsqrt %148 : vector<11x1xf32>
      %150 = vector.broadcast %149 : vector<11x1xf32> to vector<11x128xf32>
      %151 = arith.mulf %146, %150 : vector<11x128xf32>
      %152 = vector.broadcast %132 : vector<1x128xf32> to vector<11x128xf32>
      %153 = arith.mulf %151, %152 : vector<11x128xf32>
      %154 = vector.broadcast %133 : vector<1x128xf32> to vector<11x128xf32>
      %155 = arith.addf %153, %154 : vector<11x128xf32>
      %c0_61 = arith.constant 0 : index
      %c0_62 = arith.constant 0 : index
      %156 = vector.load %arg28[%c0_61, %c0_62] : memref<11x128xf32, #tpu.memory_space<vmem>>, vector<11x128xf32>
      tpu.vector_store %arg28[%c0_61, %c0_62], %155 {strides = array<i32>} : memref<11x128xf32, #tpu.memory_space<vmem>>, vector<11x128xf32>,
    } else {
    }
    %c2_i32_2 = arith.constant 2 : i32
    %6 = arith.cmpi sge, %arg0, %c2_i32_2 : i32
    %7 = arith.extui %6 : i1 to i32
    %c0_i32_3 = arith.constant 0 : i32
    %8 = arith.cmpi ne, %7, %c0_i32_3 : i32
    scf.if %8 {
      %c0 = arith.constant 0 : index
      %c0_5 = arith.constant 0 : index
      %12 = vector.load %arg28[%c0, %c0_5] : memref<11x128xf32, #tpu.memory_space<vmem>>, vector<11x128xf32>
      %c0_6 = arith.constant 0 : index
      %c0_7 = arith.constant 0 : index
      %13 = vector.load %arg2[%c0_6, %c0_7] : memref<32x128xbf16, #tpu.memory_space<vmem>>, vector<32x128xbf16>
      %c0_8 = arith.constant 0 : index
      %c0_9 = arith.constant 0 : index
      %c0_10 = arith.constant 0 : index
      %14 = vector.load %arg12[%c0_8, %c0_9, %c0_10] : memref<1x128x384xbf16, #tpu.memory_space<vmem>>, vector<1x128x384xbf16>
      %15 = vector.shape_cast %14 : vector<1x128x384xbf16> to vector<128x384xbf16>
      %c0_11 = arith.constant 0 : index
      %c0_12 = arith.constant 0 : index
      %c0_13 = arith.constant 0 : index
      %16 = vector.load %arg13[%c0_11, %c0_12, %c0_13] : memref<1x1x384xf32, #tpu.memory_space<vmem>>, vector<1x1x384xf32>
      %17 = vector.shape_cast %16 : vector<1x1x384xf32> to vector<1x384xf32>
      %c0_14 = arith.constant 0 : index
      %c0_15 = arith.constant 0 : index
      %c0_16 = arith.constant 0 : index
      %18 = vector.load %arg14[%c0_14, %c0_15, %c0_16] : memref<1x128x128xbf16, #tpu.memory_space<vmem>>, vector<1x128x128xbf16>
      %19 = vector.shape_cast %18 : vector<1x128x128xbf16> to vector<128x128xbf16>
      %c0_17 = arith.constant 0 : index
      %c0_18 = arith.constant 0 : index
      %c0_19 = arith.constant 0 : index
      %20 = vector.load %arg15[%c0_17, %c0_18, %c0_19] : memref<1x1x128xf32, #tpu.memory_space<vmem>>, vector<1x1x128xf32>
      %21 = vector.shape_cast %20 : vector<1x1x128xf32> to vector<1x128xf32>
      %c0_20 = arith.constant 0 : index
      %c0_21 = arith.constant 0 : index
      %c0_22 = arith.constant 0 : index
      %22 = vector.load %arg16[%c0_20, %c0_21, %c0_22] : memref<1x128x128xbf16, #tpu.memory_space<vmem>>, vector<1x128x128xbf16>
      %23 = vector.shape_cast %22 : vector<1x128x128xbf16> to vector<128x128xbf16>
      %c0_23 = arith.constant 0 : index
      %c0_24 = arith.constant 0 : index
      %c0_25 = arith.constant 0 : index
      %24 = vector.load %arg17[%c0_23, %c0_24, %c0_25] : memref<1x1x128xf32, #tpu.memory_space<vmem>>, vector<1x1x128xf32>
      %25 = vector.shape_cast %24 : vector<1x1x128xf32> to vector<1x128xf32>
      %c0_26 = arith.constant 0 : index
      %c0_27 = arith.constant 0 : index
      %c0_28 = arith.constant 0 : index
      %26 = vector.load %arg18[%c0_26, %c0_27, %c0_28] : memref<1x128x256xbf16, #tpu.memory_space<vmem>>, vector<1x128x256xbf16>
      %27 = vector.shape_cast %26 : vector<1x128x256xbf16> to vector<128x256xbf16>
      %c0_29 = arith.constant 0 : index
      %c0_30 = arith.constant 0 : index
      %c0_31 = arith.constant 0 : index
      %28 = vector.load %arg19[%c0_29, %c0_30, %c0_31] : memref<1x1x256xf32, #tpu.memory_space<vmem>>, vector<1x1x256xf32>
      %29 = vector.shape_cast %28 : vector<1x1x256xf32> to vector<1x256xf32>
      %c0_32 = arith.constant 0 : index
      %c0_33 = arith.constant 0 : index
      %c0_34 = arith.constant 0 : index
      %30 = vector.load %arg20[%c0_32, %c0_33, %c0_34] : memref<1x128x128xbf16, #tpu.memory_space<vmem>>, vector<1x128x128xbf16>
      %31 = vector.shape_cast %30 : vector<1x128x128xbf16> to vector<128x128xbf16>
      %c0_35 = arith.constant 0 : index
      %c0_36 = arith.constant 0 : index
      %c0_37 = arith.constant 0 : index
      %32 = vector.load %arg21[%c0_35, %c0_36, %c0_37] : memref<1x1x128xf32, #tpu.memory_space<vmem>>, vector<1x1x128xf32>
      %33 = vector.shape_cast %32 : vector<1x1x128xf32> to vector<1x128xf32>
      %c0_38 = arith.constant 0 : index
      %c0_39 = arith.constant 0 : index
      %c0_40 = arith.constant 0 : index
      %34 = vector.load %arg22[%c0_38, %c0_39, %c0_40] : memref<1x128x256xbf16, #tpu.memory_space<vmem>>, vector<1x128x256xbf16>
      %35 = vector.shape_cast %34 : vector<1x128x256xbf16> to vector<128x256xbf16>
      %c0_41 = arith.constant 0 : index
      %c0_42 = arith.constant 0 : index
      %c0_43 = arith.constant 0 : index
      %36 = vector.load %arg23[%c0_41, %c0_42, %c0_43] : memref<1x1x256xf32, #tpu.memory_space<vmem>>, vector<1x1x256xf32>
      %37 = vector.shape_cast %36 : vector<1x1x256xf32> to vector<1x256xf32>
      %c0_44 = arith.constant 0 : index
      %c0_45 = arith.constant 0 : index
      %c0_46 = arith.constant 0 : index
      %38 = vector.load %arg24[%c0_44, %c0_45, %c0_46] : memref<1x256x128xbf16, #tpu.memory_space<vmem>>, vector<1x256x128xbf16>
      %39 = vector.shape_cast %38 : vector<1x256x128xbf16> to vector<256x128xbf16>
      %c0_47 = arith.constant 0 : index
      %c0_48 = arith.constant 0 : index
      %c0_49 = arith.constant 0 : index
      %40 = vector.load %arg25[%c0_47, %c0_48, %c0_49] : memref<1x1x128xf32, #tpu.memory_space<vmem>>, vector<1x1x128xf32>
      %41 = vector.shape_cast %40 : vector<1x1x128xf32> to vector<1x128xf32>
      %c0_50 = arith.constant 0 : index
      %c0_51 = arith.constant 0 : index
      %c0_52 = arith.constant 0 : index
      %42 = vector.load %arg26[%c0_50, %c0_51, %c0_52] : memref<1x6x128xf32, #tpu.memory_space<vmem>>, vector<1x6x128xf32>
      %43 = vector.shape_cast %42 : vector<1x6x128xf32> to vector<6x128xf32>
      %44 = arith.truncf %12 : vector<11x128xf32> to vector<11x128xbf16>
      %cst = arith.constant dense<0.000000e+00> : vector<11x384xf32>
      %45 = tpu.matmul %44, %15, %cst {dimension_numbers = #tpu.dot_dimension_numbers<[1], [0], [0], [1], [0, 0, 1, 1], [], []>} : vector<11x128xbf16>, vector<128x384xbf16>, vector<11x384xf32> -> vector<11x384xf32>
      %46 = vector.broadcast %17 : vector<1x384xf32> to vector<11x384xf32>
      %47 = arith.addf %45, %46 : vector<11x384xf32>
      %48 = vector.extract_strided_slice %47 {offsets = [0, 0], sizes = [11, 128], strides = [1, 1]} : vector<11x384xf32> to vector<11x128xf32>
      %49 = vector.extract_strided_slice %47 {offsets = [0, 128], sizes = [11, 128], strides = [1, 1]} : vector<11x384xf32> to vector<11x128xf32>
      %50 = vector.extract_strided_slice %47 {offsets = [0, 256], sizes = [11, 128], strides = [1, 1]} : vector<11x384xf32> to vector<11x128xf32>
      %51 = arith.truncf %48 : vector<11x128xf32> to vector<11x128xbf16>
      %52 = arith.truncf %49 : vector<11x128xf32> to vector<11x128xbf16>
      %53 = arith.truncf %50 : vector<11x128xf32> to vector<11x128xbf16>
      %54 = vector.extract_strided_slice %51 {offsets = [0, 0], sizes = [11, 32], strides = [1, 1]} : vector<11x128xbf16> to vector<11x32xbf16>
      %55 = vector.extract_strided_slice %52 {offsets = [0, 0], sizes = [11, 32], strides = [1, 1]} : vector<11x128xbf16> to vector<11x32xbf16>
      %cst_53 = arith.constant dense<0.000000e+00> : vector<11x11xf32>
      %56 = tpu.matmul %54, %55, %cst_53 {dimension_numbers = #tpu.dot_dimension_numbers<[1], [1], [0], [0], [0, 0, 1, 0], [], []>} : vector<11x32xbf16>, vector<11x32xbf16>, vector<11x11xf32> -> vector<11x11xf32>
      %57 = vector.extract_strided_slice %51 {offsets = [0, 32], sizes = [11, 32], strides = [1, 1]} : vector<11x128xbf16> to vector<11x32xbf16>
      %58 = vector.extract_strided_slice %52 {offsets = [0, 32], sizes = [11, 32], strides = [1, 1]} : vector<11x128xbf16> to vector<11x32xbf16>
      %cst_54 = arith.constant dense<0.000000e+00> : vector<11x11xf32>
      %59 = tpu.matmul %57, %58, %cst_54 {dimension_numbers = #tpu.dot_dimension_numbers<[1], [1], [0], [0], [0, 0, 1, 0], [], []>} : vector<11x32xbf16>, vector<11x32xbf16>, vector<11x11xf32> -> vector<11x11xf32>
      %60 = vector.extract_strided_slice %51 {offsets = [0, 64], sizes = [11, 32], strides = [1, 1]} : vector<11x128xbf16> to vector<11x32xbf16>
      %61 = vector.extract_strided_slice %52 {offsets = [0, 64], sizes = [11, 32], strides = [1, 1]} : vector<11x128xbf16> to vector<11x32xbf16>
      %cst_55 = arith.constant dense<0.000000e+00> : vector<11x11xf32>
      %62 = tpu.matmul %60, %61, %cst_55 {dimension_numbers = #tpu.dot_dimension_numbers<[1], [1], [0], [0], [0, 0, 1, 0], [], []>} : vector<11x32xbf16>, vector<11x32xbf16>, vector<11x11xf32> -> vector<11x11xf32>
      %63 = vector.extract_strided_slice %51 {offsets = [0, 96], sizes = [11, 32], strides = [1, 1]} : vector<11x128xbf16> to vector<11x32xbf16>
      %64 = vector.extract_strided_slice %52 {offsets = [0, 96], sizes = [11, 32], strides = [1, 1]} : vector<11x128xbf16> to vector<11x32xbf16>
      %cst_56 = arith.constant dense<0.000000e+00> : vector<11x11xf32>
      %65 = tpu.matmul %63, %64, %cst_56 {dimension_numbers = #tpu.dot_dimension_numbers<[1], [1], [0], [0], [0, 0, 1, 0], [], []>} : vector<11x32xbf16>, vector<11x32xbf16>, vector<11x11xf32> -> vector<11x11xf32>
      %66 = tpu.concatenate %56, %59, %62, %65 in 0 : vector<11x11xf32>, vector<11x11xf32>, vector<11x11xf32>, vector<11x11xf32> -> vector<44x11xf32>
      %cst_57 = arith.constant dense<0xFF800000> : vector<44xf32>
      %67 = vector.multi_reduction <maximumf>, %66, %cst_57 [1] : vector<44x11xf32> to vector<44xf32>
      %68 = vector.shape_cast %67 : vector<44xf32> to vector<44x1xf32>
      %69 = vector.broadcast %68 : vector<44x1xf32> to vector<44x11xf32>
      %70 = arith.subf %66, %69 : vector<44x11xf32>
      %71 = math.exp %70 : vector<44x11xf32>
      %cst_58 = arith.constant dense<0.000000e+00> : vector<44xf32>
      %72 = vector.multi_reduction <add>, %71, %cst_58 [1] : vector<44x11xf32> to vector<44xf32>
      %73 = vector.shape_cast %72 : vector<44xf32> to vector<44x1xf32>
      %74 = tpu.reciprocal %73 {approx = true} : vector<44x1xf32> -> vector<44x1xf32>
      %75 = vector.broadcast %74 : vector<44x1xf32> to vector<44x11xf32>
      %76 = arith.mulf %71, %75 : vector<44x11xf32>
      %77 = arith.truncf %76 : vector<44x11xf32> to vector<44x11xbf16>
      %cst_59 = arith.constant 0.000000e+00 : f32
      %78 = vector.broadcast %cst_59 : f32 to vector<11x128xf32>
      %79 = vector.extract_strided_slice %77 {offsets = [0, 0], sizes = [11, 11], strides = [1, 1]} : vector<44x11xbf16> to vector<11x11xbf16>
      %80 = vector.extract_strided_slice %53 {offsets = [0, 0], sizes = [11, 32], strides = [1, 1]} : vector<11x128xbf16> to vector<11x32xbf16>
      %cst_60 = arith.constant dense<0.000000e+00> : vector<11x32xf32>
      %81 = tpu.matmul %79, %80, %cst_60 {dimension_numbers = #tpu.dot_dimension_numbers<[1], [0], [0], [1], [0, 0, 1, 1], [], []>} : vector<11x11xbf16>, vector<11x32xbf16>, vector<11x32xf32> -> vector<11x32xf32>
      %82 = arith.truncf %81 : vector<11x32xf32> to vector<11x32xbf16>
      %83 = vector.extract_strided_slice %19 {offsets = [0, 0], sizes = [32, 128], strides = [1, 1]} : vector<128x128xbf16> to vector<32x128xbf16>
      %cst_61 = arith.constant dense<0.000000e+00> : vector<11x128xf32>
      %84 = tpu.matmul %82, %83, %cst_61 {dimension_numbers = #tpu.dot_dimension_numbers<[1], [0], [0], [1], [0, 0, 1, 1], [], []>} : vector<11x32xbf16>, vector<32x128xbf16>, vector<11x128xf32> -> vector<11x128xf32>
      %85 = arith.addf %78, %84 : vector<11x128xf32>
      %86 = vector.extract_strided_slice %77 {offsets = [11, 0], sizes = [11, 11], strides = [1, 1]} : vector<44x11xbf16> to vector<11x11xbf16>
      %87 = vector.extract_strided_slice %53 {offsets = [0, 32], sizes = [11, 32], strides = [1, 1]} : vector<11x128xbf16> to vector<11x32xbf16>
      %cst_62 = arith.constant dense<0.000000e+00> : vector<11x32xf32>
      %88 = tpu.matmul %86, %87, %cst_62 {dimension_numbers = #tpu.dot_dimension_numbers<[1], [0], [0], [1], [0, 0, 1, 1], [], []>} : vector<11x11xbf16>, vector<11x32xbf16>, vector<11x32xf32> -> vector<11x32xf32>
      %89 = arith.truncf %88 : vector<11x32xf32> to vector<11x32xbf16>
      %90 = vector.extract_strided_slice %19 {offsets = [32, 0], sizes = [32, 128], strides = [1, 1]} : vector<128x128xbf16> to vector<32x128xbf16>
      %cst_63 = arith.constant dense<0.000000e+00> : vector<11x128xf32>
      %91 = tpu.matmul %89, %90, %cst_63 {dimension_numbers = #tpu.dot_dimension_numbers<[1], [0], [0], [1], [0, 0, 1, 1], [], []>} : vector<11x32xbf16>, vector<32x128xbf16>, vector<11x128xf32> -> vector<11x128xf32>
      %92 = arith.addf %85, %91 : vector<11x128xf32>
      %93 = vector.extract_strided_slice %77 {offsets = [22, 0], sizes = [11, 11], strides = [1, 1]} : vector<44x11xbf16> to vector<11x11xbf16>
      %94 = vector.extract_strided_slice %53 {offsets = [0, 64], sizes = [11, 32], strides = [1, 1]} : vector<11x128xbf16> to vector<11x32xbf16>
      %cst_64 = arith.constant dense<0.000000e+00> : vector<11x32xf32>
      %95 = tpu.matmul %93, %94, %cst_64 {dimension_numbers = #tpu.dot_dimension_numbers<[1], [0], [0], [1], [0, 0, 1, 1], [], []>} : vector<11x11xbf16>, vector<11x32xbf16>, vector<11x32xf32> -> vector<11x32xf32>
      %96 = arith.truncf %95 : vector<11x32xf32> to vector<11x32xbf16>
      %97 = vector.extract_strided_slice %19 {offsets = [64, 0], sizes = [32, 128], strides = [1, 1]} : vector<128x128xbf16> to vector<32x128xbf16>
      %cst_65 = arith.constant dense<0.000000e+00> : vector<11x128xf32>
      %98 = tpu.matmul %96, %97, %cst_65 {dimension_numbers = #tpu.dot_dimension_numbers<[1], [0], [0], [1], [0, 0, 1, 1], [], []>} : vector<11x32xbf16>, vector<32x128xbf16>, vector<11x128xf32> -> vector<11x128xf32>
      %99 = arith.addf %92, %98 : vector<11x128xf32>
      %100 = vector.extract_strided_slice %77 {offsets = [33, 0], sizes = [11, 11], strides = [1, 1]} : vector<44x11xbf16> to vector<11x11xbf16>
      %101 = vector.extract_strided_slice %53 {offsets = [0, 96], sizes = [11, 32], strides = [1, 1]} : vector<11x128xbf16> to vector<11x32xbf16>
      %cst_66 = arith.constant dense<0.000000e+00> : vector<11x32xf32>
      %102 = tpu.matmul %100, %101, %cst_66 {dimension_numbers = #tpu.dot_dimension_numbers<[1], [0], [0], [1], [0, 0, 1, 1], [], []>} : vector<11x11xbf16>, vector<11x32xbf16>, vector<11x32xf32> -> vector<11x32xf32>
      %103 = arith.truncf %102 : vector<11x32xf32> to vector<11x32xbf16>
      %104 = vector.extract_strided_slice %19 {offsets = [96, 0], sizes = [32, 128], strides = [1, 1]} : vector<128x128xbf16> to vector<32x128xbf16>
      %cst_67 = arith.constant dense<0.000000e+00> : vector<11x128xf32>
      %105 = tpu.matmul %103, %104, %cst_67 {dimension_numbers = #tpu.dot_dimension_numbers<[1], [0], [0], [1], [0, 0, 1, 1], [], []>} : vector<11x32xbf16>, vector<32x128xbf16>, vector<11x128xf32> -> vector<11x128xf32>
      %106 = arith.addf %99, %105 : vector<11x128xf32>
      %107 = vector.broadcast %21 : vector<1x128xf32> to vector<11x128xf32>
      %108 = arith.addf %106, %107 : vector<11x128xf32>
      %109 = arith.addf %12, %108 : vector<11x128xf32>
      %110 = vector.extract_strided_slice %43 {offsets = [0, 0], sizes = [1, 128], strides = [1, 1]} : vector<6x128xf32> to vector<1x128xf32>
      %111 = vector.extract_strided_slice %43 {offsets = [1, 0], sizes = [1, 128], strides = [1, 1]} : vector<6x128xf32> to vector<1x128xf32>
      %cst_68 = arith.constant dense<0.000000e+00> : vector<11xf32>
      %112 = vector.multi_reduction <add>, %109, %cst_68 [1] : vector<11x128xf32> to vector<11xf32>
      %113 = vector.shape_cast %112 : vector<11xf32> to vector<11x1xf32>
      %cst_69 = arith.constant 1.280000e+02 : f32
      %114 = vector.broadcast %cst_69 : f32 to vector<11x1xf32>
      %115 = arith.divf %113, %114 : vector<11x1xf32>
      %116 = arith.mulf %109, %109 : vector<11x128xf32>
      %cst_70 = arith.constant dense<0.000000e+00> : vector<11xf32>
      %117 = vector.multi_reduction <add>, %116, %cst_70 [1] : vector<11x128xf32> to vector<11xf32>
      %118 = vector.shape_cast %117 : vector<11xf32> to vector<11x1xf32>
      %cst_71 = arith.constant 1.280000e+02 : f32
      %119 = vector.broadcast %cst_71 : f32 to vector<11x1xf32>
      %120 = arith.divf %118, %119 : vector<11x1xf32>
      %121 = arith.mulf %115, %115 : vector<11x1xf32>
      %122 = arith.subf %120, %121 : vector<11x1xf32>
      %123 = vector.broadcast %115 : vector<11x1xf32> to vector<11x128xf32>
      %124 = arith.subf %109, %123 : vector<11x128xf32>
      %cst_72 = arith.constant 9.99999974E-6 : f32
      %125 = vector.broadcast %cst_72 : f32 to vector<11x1xf32>
      %126 = arith.addf %122, %125 : vector<11x1xf32>
      %127 = math.rsqrt %126 : vector<11x1xf32>
      %128 = vector.broadcast %127 : vector<11x1xf32> to vector<11x128xf32>
      %129 = arith.mulf %124, %128 : vector<11x128xf32>
      %130 = vector.broadcast %110 : vector<1x128xf32> to vector<11x128xf32>
      %131 = arith.mulf %129, %130 : vector<11x128xf32>
      %132 = vector.broadcast %111 : vector<1x128xf32> to vector<11x128xf32>
      %133 = arith.addf %131, %132 : vector<11x128xf32>
      %134 = arith.truncf %133 : vector<11x128xf32> to vector<11x128xbf16>
      %cst_73 = arith.constant dense<0.000000e+00> : vector<11x128xf32>
      %135 = tpu.matmul %134, %23, %cst_73 {dimension_numbers = #tpu.dot_dimension_numbers<[1], [0], [0], [1], [0, 0, 1, 1], [], []>} : vector<11x128xbf16>, vector<128x128xbf16>, vector<11x128xf32> -> vector<11x128xf32>
      %136 = vector.broadcast %25 : vector<1x128xf32> to vector<11x128xf32>
      %137 = arith.addf %135, %136 : vector<11x128xf32>
      %cst_74 = arith.constant dense<0.000000e+00> : vector<32x256xf32>
      %138 = tpu.matmul %13, %27, %cst_74 {dimension_numbers = #tpu.dot_dimension_numbers<[1], [0], [0], [1], [0, 0, 1, 1], [], []>} : vector<32x128xbf16>, vector<128x256xbf16>, vector<32x256xf32> -> vector<32x256xf32>
      %139 = vector.broadcast %29 : vector<1x256xf32> to vector<32x256xf32>
      %140 = arith.addf %138, %139 : vector<32x256xf32>
      %141 = vector.extract_strided_slice %140 {offsets = [0, 0], sizes = [32, 128], strides = [1, 1]} : vector<32x256xf32> to vector<32x128xf32>
      %142 = vector.extract_strided_slice %140 {offsets = [0, 128], sizes = [32, 128], strides = [1, 1]} : vector<32x256xf32> to vector<32x128xf32>
      %143 = arith.truncf %137 : vector<11x128xf32> to vector<11x128xbf16>
      %144 = arith.truncf %141 : vector<32x128xf32> to vector<32x128xbf16>
      %145 = arith.truncf %142 : vector<32x128xf32> to vector<32x128xbf16>
      %146 = vector.extract_strided_slice %143 {offsets = [0, 0], sizes = [11, 32], strides = [1, 1]} : vector<11x128xbf16> to vector<11x32xbf16>
      %147 = vector.extract_strided_slice %144 {offsets = [0, 0], sizes = [32, 32], strides = [1, 1]} : vector<32x128xbf16> to vector<32x32xbf16>
      %cst_75 = arith.constant dense<0.000000e+00> : vector<11x32xf32>
      %148 = tpu.matmul %146, %147, %cst_75 {dimension_numbers = #tpu.dot_dimension_numbers<[1], [1], [0], [0], [0, 0, 1, 0], [], []>} : vector<11x32xbf16>, vector<32x32xbf16>, vector<11x32xf32> -> vector<11x32xf32>
      %149 = vector.extract_strided_slice %143 {offsets = [0, 32], sizes = [11, 32], strides = [1, 1]} : vector<11x128xbf16> to vector<11x32xbf16>
      %150 = vector.extract_strided_slice %144 {offsets = [0, 32], sizes = [32, 32], strides = [1, 1]} : vector<32x128xbf16> to vector<32x32xbf16>
      %cst_76 = arith.constant dense<0.000000e+00> : vector<11x32xf32>
      %151 = tpu.matmul %149, %150, %cst_76 {dimension_numbers = #tpu.dot_dimension_numbers<[1], [1], [0], [0], [0, 0, 1, 0], [], []>} : vector<11x32xbf16>, vector<32x32xbf16>, vector<11x32xf32> -> vector<11x32xf32>
      %152 = vector.extract_strided_slice %143 {offsets = [0, 64], sizes = [11, 32], strides = [1, 1]} : vector<11x128xbf16> to vector<11x32xbf16>
      %153 = vector.extract_strided_slice %144 {offsets = [0, 64], sizes = [32, 32], strides = [1, 1]} : vector<32x128xbf16> to vector<32x32xbf16>
      %cst_77 = arith.constant dense<0.000000e+00> : vector<11x32xf32>
      %154 = tpu.matmul %152, %153, %cst_77 {dimension_numbers = #tpu.dot_dimension_numbers<[1], [1], [0], [0], [0, 0, 1, 0], [], []>} : vector<11x32xbf16>, vector<32x32xbf16>, vector<11x32xf32> -> vector<11x32xf32>
      %155 = vector.extract_strided_slice %143 {offsets = [0, 96], sizes = [11, 32], strides = [1, 1]} : vector<11x128xbf16> to vector<11x32xbf16>
      %156 = vector.extract_strided_slice %144 {offsets = [0, 96], sizes = [32, 32], strides = [1, 1]} : vector<32x128xbf16> to vector<32x32xbf16>
      %cst_78 = arith.constant dense<0.000000e+00> : vector<11x32xf32>
      %157 = tpu.matmul %155, %156, %cst_78 {dimension_numbers = #tpu.dot_dimension_numbers<[1], [1], [0], [0], [0, 0, 1, 0], [], []>} : vector<11x32xbf16>, vector<32x32xbf16>, vector<11x32xf32> -> vector<11x32xf32>
      %158 = tpu.concatenate %148, %151, %154, %157 in 0 : vector<11x32xf32>, vector<11x32xf32>, vector<11x32xf32>, vector<11x32xf32> -> vector<44x32xf32>
      %cst_79 = arith.constant dense<0xFF800000> : vector<44xf32>
      %159 = vector.multi_reduction <maximumf>, %158, %cst_79 [1] : vector<44x32xf32> to vector<44xf32>
      %160 = vector.shape_cast %159 : vector<44xf32> to vector<44x1xf32>
      %161 = vector.broadcast %160 : vector<44x1xf32> to vector<44x32xf32>
      %162 = arith.subf %158, %161 : vector<44x32xf32>
      %163 = math.exp %162 : vector<44x32xf32>
      %cst_80 = arith.constant dense<0.000000e+00> : vector<44xf32>
      %164 = vector.multi_reduction <add>, %163, %cst_80 [1] : vector<44x32xf32> to vector<44xf32>
      %165 = vector.shape_cast %164 : vector<44xf32> to vector<44x1xf32>
      %166 = tpu.reciprocal %165 {approx = true} : vector<44x1xf32> -> vector<44x1xf32>
      %167 = vector.broadcast %166 : vector<44x1xf32> to vector<44x32xf32>
      %168 = arith.mulf %163, %167 : vector<44x32xf32>
      %169 = arith.truncf %168 : vector<44x32xf32> to vector<44x32xbf16>
      %cst_81 = arith.constant 0.000000e+00 : f32
      %170 = vector.broadcast %cst_81 : f32 to vector<11x128xf32>
      %171 = vector.extract_strided_slice %169 {offsets = [0, 0], sizes = [11, 32], strides = [1, 1]} : vector<44x32xbf16> to vector<11x32xbf16>
      %172 = vector.extract_strided_slice %145 {offsets = [0, 0], sizes = [32, 32], strides = [1, 1]} : vector<32x128xbf16> to vector<32x32xbf16>
      %cst_82 = arith.constant dense<0.000000e+00> : vector<11x32xf32>
      %173 = tpu.matmul %171, %172, %cst_82 {dimension_numbers = #tpu.dot_dimension_numbers<[1], [0], [0], [1], [0, 0, 1, 1], [], []>} : vector<11x32xbf16>, vector<32x32xbf16>, vector<11x32xf32> -> vector<11x32xf32>
      %174 = arith.truncf %173 : vector<11x32xf32> to vector<11x32xbf16>
      %175 = vector.extract_strided_slice %31 {offsets = [0, 0], sizes = [32, 128], strides = [1, 1]} : vector<128x128xbf16> to vector<32x128xbf16>
      %cst_83 = arith.constant dense<0.000000e+00> : vector<11x128xf32>
      %176 = tpu.matmul %174, %175, %cst_83 {dimension_numbers = #tpu.dot_dimension_numbers<[1], [0], [0], [1], [0, 0, 1, 1], [], []>} : vector<11x32xbf16>, vector<32x128xbf16>, vector<11x128xf32> -> vector<11x128xf32>
      %177 = arith.addf %170, %176 : vector<11x128xf32>
      %178 = vector.extract_strided_slice %169 {offsets = [11, 0], sizes = [11, 32], strides = [1, 1]} : vector<44x32xbf16> to vector<11x32xbf16>
      %179 = vector.extract_strided_slice %145 {offsets = [0, 32], sizes = [32, 32], strides = [1, 1]} : vector<32x128xbf16> to vector<32x32xbf16>
      %cst_84 = arith.constant dense<0.000000e+00> : vector<11x32xf32>
      %180 = tpu.matmul %178, %179, %cst_84 {dimension_numbers = #tpu.dot_dimension_numbers<[1], [0], [0], [1], [0, 0, 1, 1], [], []>} : vector<11x32xbf16>, vector<32x32xbf16>, vector<11x32xf32> -> vector<11x32xf32>
      %181 = arith.truncf %180 : vector<11x32xf32> to vector<11x32xbf16>
      %182 = vector.extract_strided_slice %31 {offsets = [32, 0], sizes = [32, 128], strides = [1, 1]} : vector<128x128xbf16> to vector<32x128xbf16>
      %cst_85 = arith.constant dense<0.000000e+00> : vector<11x128xf32>
      %183 = tpu.matmul %181, %182, %cst_85 {dimension_numbers = #tpu.dot_dimension_numbers<[1], [0], [0], [1], [0, 0, 1, 1], [], []>} : vector<11x32xbf16>, vector<32x128xbf16>, vector<11x128xf32> -> vector<11x128xf32>
      %184 = arith.addf %177, %183 : vector<11x128xf32>
      %185 = vector.extract_strided_slice %169 {offsets = [22, 0], sizes = [11, 32], strides = [1, 1]} : vector<44x32xbf16> to vector<11x32xbf16>
      %186 = vector.extract_strided_slice %145 {offsets = [0, 64], sizes = [32, 32], strides = [1, 1]} : vector<32x128xbf16> to vector<32x32xbf16>
      %cst_86 = arith.constant dense<0.000000e+00> : vector<11x32xf32>
      %187 = tpu.matmul %185, %186, %cst_86 {dimension_numbers = #tpu.dot_dimension_numbers<[1], [0], [0], [1], [0, 0, 1, 1], [], []>} : vector<11x32xbf16>, vector<32x32xbf16>, vector<11x32xf32> -> vector<11x32xf32>
      %188 = arith.truncf %187 : vector<11x32xf32> to vector<11x32xbf16>
      %189 = vector.extract_strided_slice %31 {offsets = [64, 0], sizes = [32, 128], strides = [1, 1]} : vector<128x128xbf16> to vector<32x128xbf16>
      %cst_87 = arith.constant dense<0.000000e+00> : vector<11x128xf32>
      %190 = tpu.matmul %188, %189, %cst_87 {dimension_numbers = #tpu.dot_dimension_numbers<[1], [0], [0], [1], [0, 0, 1, 1], [], []>} : vector<11x32xbf16>, vector<32x128xbf16>, vector<11x128xf32> -> vector<11x128xf32>
      %191 = arith.addf %184, %190 : vector<11x128xf32>
      %192 = vector.extract_strided_slice %169 {offsets = [33, 0], sizes = [11, 32], strides = [1, 1]} : vector<44x32xbf16> to vector<11x32xbf16>
      %193 = vector.extract_strided_slice %145 {offsets = [0, 96], sizes = [32, 32], strides = [1, 1]} : vector<32x128xbf16> to vector<32x32xbf16>
      %cst_88 = arith.constant dense<0.000000e+00> : vector<11x32xf32>
      %194 = tpu.matmul %192, %193, %cst_88 {dimension_numbers = #tpu.dot_dimension_numbers<[1], [0], [0], [1], [0, 0, 1, 1], [], []>} : vector<11x32xbf16>, vector<32x32xbf16>, vector<11x32xf32> -> vector<11x32xf32>
      %195 = arith.truncf %194 : vector<11x32xf32> to vector<11x32xbf16>
      %196 = vector.extract_strided_slice %31 {offsets = [96, 0], sizes = [32, 128], strides = [1, 1]} : vector<128x128xbf16> to vector<32x128xbf16>
      %cst_89 = arith.constant dense<0.000000e+00> : vector<11x128xf32>
      %197 = tpu.matmul %195, %196, %cst_89 {dimension_numbers = #tpu.dot_dimension_numbers<[1], [0], [0], [1], [0, 0, 1, 1], [], []>} : vector<11x32xbf16>, vector<32x128xbf16>, vector<11x128xf32> -> vector<11x128xf32>
      %198 = arith.addf %191, %197 : vector<11x128xf32>
      %199 = vector.broadcast %33 : vector<1x128xf32> to vector<11x128xf32>
      %200 = arith.addf %198, %199 : vector<11x128xf32>
      %201 = arith.addf %133, %200 : vector<11x128xf32>
      %202 = vector.extract_strided_slice %43 {offsets = [2, 0], sizes = [1, 128], strides = [1, 1]} : vector<6x128xf32> to vector<1x128xf32>
      %203 = vector.extract_strided_slice %43 {offsets = [3, 0], sizes = [1, 128], strides = [1, 1]} : vector<6x128xf32> to vector<1x128xf32>
      %cst_90 = arith.constant dense<0.000000e+00> : vector<11xf32>
      %204 = vector.multi_reduction <add>, %201, %cst_90 [1] : vector<11x128xf32> to vector<11xf32>
      %205 = vector.shape_cast %204 : vector<11xf32> to vector<11x1xf32>
      %cst_91 = arith.constant 1.280000e+02 : f32
      %206 = vector.broadcast %cst_91 : f32 to vector<11x1xf32>
      %207 = arith.divf %205, %206 : vector<11x1xf32>
      %208 = arith.mulf %201, %201 : vector<11x128xf32>
      %cst_92 = arith.constant dense<0.000000e+00> : vector<11xf32>
      %209 = vector.multi_reduction <add>, %208, %cst_92 [1] : vector<11x128xf32> to vector<11xf32>
      %210 = vector.shape_cast %209 : vector<11xf32> to vector<11x1xf32>
      %cst_93 = arith.constant 1.280000e+02 : f32
      %211 = vector.broadcast %cst_93 : f32 to vector<11x1xf32>
      %212 = arith.divf %210, %211 : vector<11x1xf32>
      %213 = arith.mulf %207, %207 : vector<11x1xf32>
      %214 = arith.subf %212, %213 : vector<11x1xf32>
      %215 = vector.broadcast %207 : vector<11x1xf32> to vector<11x128xf32>
      %216 = arith.subf %201, %215 : vector<11x128xf32>
      %cst_94 = arith.constant 9.99999974E-6 : f32
      %217 = vector.broadcast %cst_94 : f32 to vector<11x1xf32>
      %218 = arith.addf %214, %217 : vector<11x1xf32>
      %219 = math.rsqrt %218 : vector<11x1xf32>
      %220 = vector.broadcast %219 : vector<11x1xf32> to vector<11x128xf32>
      %221 = arith.mulf %216, %220 : vector<11x128xf32>
      %222 = vector.broadcast %202 : vector<1x128xf32> to vector<11x128xf32>
      %223 = arith.mulf %221, %222 : vector<11x128xf32>
      %224 = vector.broadcast %203 : vector<1x128xf32> to vector<11x128xf32>
      %225 = arith.addf %223, %224 : vector<11x128xf32>
      %226 = arith.truncf %225 : vector<11x128xf32> to vector<11x128xbf16>
      %cst_95 = arith.constant dense<0.000000e+00> : vector<11x256xf32>
      %227 = tpu.matmul %226, %35, %cst_95 {dimension_numbers = #tpu.dot_dimension_numbers<[1], [0], [0], [1], [0, 0, 1, 1], [], []>} : vector<11x128xbf16>, vector<128x256xbf16>, vector<11x256xf32> -> vector<11x256xf32>
      %228 = vector.broadcast %37 : vector<1x256xf32> to vector<11x256xf32>
      %229 = arith.addf %227, %228 : vector<11x256xf32>
      %cst_96 = arith.constant 0.000000e+00 : f32
      %230 = vector.broadcast %cst_96 : f32 to vector<11x256xf32>
      %231 = arith.maximumf %229, %230 : vector<11x256xf32>
      %232 = arith.truncf %231 : vector<11x256xf32> to vector<11x256xbf16>
      %cst_97 = arith.constant dense<0.000000e+00> : vector<11x128xf32>
      %233 = tpu.matmul %232, %39, %cst_97 {dimension_numbers = #tpu.dot_dimension_numbers<[1], [0], [0], [1], [0, 0, 1, 1], [], []>} : vector<11x256xbf16>, vector<256x128xbf16>, vector<11x128xf32> -> vector<11x128xf32>
      %234 = vector.broadcast %41 : vector<1x128xf32> to vector<11x128xf32>
      %235 = arith.addf %233, %234 : vector<11x128xf32>
      %236 = arith.addf %225, %235 : vector<11x128xf32>
      %237 = vector.extract_strided_slice %43 {offsets = [4, 0], sizes = [1, 128], strides = [1, 1]} : vector<6x128xf32> to vector<1x128xf32>
      %238 = vector.extract_strided_slice %43 {offsets = [5, 0], sizes = [1, 128], strides = [1, 1]} : vector<6x128xf32> to vector<1x128xf32>
      %cst_98 = arith.constant dense<0.000000e+00> : vector<11xf32>
      %239 = vector.multi_reduction <add>, %236, %cst_98 [1] : vector<11x128xf32> to vector<11xf32>
      %240 = vector.shape_cast %239 : vector<11xf32> to vector<11x1xf32>
      %cst_99 = arith.constant 1.280000e+02 : f32
      %241 = vector.broadcast %cst_99 : f32 to vector<11x1xf32>
      %242 = arith.divf %240, %241 : vector<11x1xf32>
      %243 = arith.mulf %236, %236 : vector<11x128xf32>
      %cst_100 = arith.constant dense<0.000000e+00> : vector<11xf32>
      %244 = vector.multi_reduction <add>, %243, %cst_100 [1] : vector<11x128xf32> to vector<11xf32>
      %245 = vector.shape_cast %244 : vector<11xf32> to vector<11x1xf32>
      %cst_101 = arith.constant 1.280000e+02 : f32
      %246 = vector.broadcast %cst_101 : f32 to vector<11x1xf32>
      %247 = arith.divf %245, %246 : vector<11x1xf32>
      %248 = arith.mulf %242, %242 : vector<11x1xf32>
      %249 = arith.subf %247, %248 : vector<11x1xf32>
      %250 = vector.broadcast %242 : vector<11x1xf32> to vector<11x128xf32>
      %251 = arith.subf %236, %250 : vector<11x128xf32>
      %cst_102 = arith.constant 9.99999974E-6 : f32
      %252 = vector.broadcast %cst_102 : f32 to vector<11x1xf32>
      %253 = arith.addf %249, %252 : vector<11x1xf32>
      %254 = math.rsqrt %253 : vector<11x1xf32>
      %255 = vector.broadcast %254 : vector<11x1xf32> to vector<11x128xf32>
      %256 = arith.mulf %251, %255 : vector<11x128xf32>
      %257 = vector.broadcast %237 : vector<1x128xf32> to vector<11x128xf32>
      %258 = arith.mulf %256, %257 : vector<11x128xf32>
      %259 = vector.broadcast %238 : vector<1x128xf32> to vector<11x128xf32>
      %260 = arith.addf %258, %259 : vector<11x128xf32>
      %c0_103 = arith.constant 0 : index
      %c0_104 = arith.constant 0 : index
      %261 = vector.load %arg28[%c0_103, %c0_104] : memref<11x128xf32, #tpu.memory_space<vmem>>, vector<11x128xf32>
      tpu.vector_store %arg28[%c0_103, %c0_104], %260 {strides = array<i32>} : memref<11x128xf32, #tpu.memory_space<vmem>>, vector<11x128xf32>,
    } else {
    }
    %c3_i32 = arith.constant 3 : i32
    %9 = arith.cmpi eq, %arg0, %c3_i32 : i32
    %10 = arith.extui %9 : i1 to i32
    %c0_i32_4 = arith.constant 0 : i32
    %11 = arith.cmpi ne, %10, %c0_i32_4 : i32
    scf.if %11 {
      %c0 = arith.constant 0 : index
      %c0_5 = arith.constant 0 : index
      %12 = vector.load %arg28[%c0, %c0_5] : memref<11x128xf32, #tpu.memory_space<vmem>>, vector<11x128xf32>
      %c0_6 = arith.constant 0 : index
      %c0_7 = arith.constant 0 : index
      %13 = vector.load %arg27[%c0_6, %c0_7] : memref<11x128xf32, #tpu.memory_space<vmem>>, vector<11x128xf32>
      tpu.vector_store %arg27[%c0_6, %c0_7], %12 {strides = array<i32>} : memref<11x128xf32, #tpu.memory_space<vmem>>, vector<11x128xf32>,
    } else {
    }
    return
  }
  func.func @transform_0(%arg0: i32) -> (i32, i32) {
    %c0_i32 = arith.constant 0 : i32
    %c0_i32_0 = arith.constant 0 : i32
    %c0_i32_1 = arith.constant 0 : i32
    return %c0_i32, %c0_i32_0 : i32, i32
  }
  func.func @transform_1(%arg0: i32) -> (i32, i32) {
    %c0_i32 = arith.constant 0 : i32
    %c0_i32_0 = arith.constant 0 : i32
    %c0_i32_1 = arith.constant 0 : i32
    return %c0_i32, %c0_i32_0 : i32, i32
  }
  func.func @transform_2(%arg0: i32) -> (i32, i32, i32) {
    %c1_i32 = arith.constant 1 : i32
    %0 = arith.minsi %arg0, %c1_i32 : i32
    %c0_i32 = arith.constant 0 : i32
    %c0_i32_0 = arith.constant 0 : i32
    %c0_i32_1 = arith.constant 0 : i32
    return %0, %c0_i32, %c0_i32_0 : i32, i32, i32
  }
  func.func @transform_3(%arg0: i32) -> (i32, i32, i32) {
    %c1_i32 = arith.constant 1 : i32
    %0 = arith.minsi %arg0, %c1_i32 : i32
    %c0_i32 = arith.constant 0 : i32
    %c0_i32_0 = arith.constant 0 : i32
    %c0_i32_1 = arith.constant 0 : i32
    return %0, %c0_i32, %c0_i32_0 : i32, i32, i32
  }
  func.func @transform_4(%arg0: i32) -> (i32, i32, i32) {
    %c1_i32 = arith.constant 1 : i32
    %0 = arith.minsi %arg0, %c1_i32 : i32
    %c0_i32 = arith.constant 0 : i32
    %c0_i32_0 = arith.constant 0 : i32
    %c0_i32_1 = arith.constant 0 : i32
    return %0, %c0_i32, %c0_i32_0 : i32, i32, i32
  }
  func.func @transform_5(%arg0: i32) -> (i32, i32, i32) {
    %c1_i32 = arith.constant 1 : i32
    %0 = arith.minsi %arg0, %c1_i32 : i32
    %c0_i32 = arith.constant 0 : i32
    %c0_i32_0 = arith.constant 0 : i32
    %c0_i32_1 = arith.constant 0 : i32
    return %0, %c0_i32, %c0_i32_0 : i32, i32, i32
  }
  func.func @transform_6(%arg0: i32) -> (i32, i32, i32) {
    %c1_i32 = arith.constant 1 : i32
    %0 = arith.minsi %arg0, %c1_i32 : i32
    %c0_i32 = arith.constant 0 : i32
    %c0_i32_0 = arith.constant 0 : i32
    %c0_i32_1 = arith.constant 0 : i32
    return %0, %c0_i32, %c0_i32_0 : i32, i32, i32
  }
  func.func @transform_7(%arg0: i32) -> (i32, i32, i32) {
    %c1_i32 = arith.constant 1 : i32
    %0 = arith.minsi %arg0, %c1_i32 : i32
    %c0_i32 = arith.constant 0 : i32
    %c0_i32_0 = arith.constant 0 : i32
    %c0_i32_1 = arith.constant 0 : i32
    return %0, %c0_i32, %c0_i32_0 : i32, i32, i32
  }
  func.func @transform_8(%arg0: i32) -> (i32, i32, i32) {
    %c1_i32 = arith.constant 1 : i32
    %0 = arith.minsi %arg0, %c1_i32 : i32
    %c0_i32 = arith.constant 0 : i32
    %c0_i32_0 = arith.constant 0 : i32
    %c0_i32_1 = arith.constant 0 : i32
    return %0, %c0_i32, %c0_i32_0 : i32, i32, i32
  }
  func.func @transform_9(%arg0: i32) -> (i32, i32, i32) {
    %c1_i32 = arith.constant 1 : i32
    %0 = arith.minsi %arg0, %c1_i32 : i32
    %c0_i32 = arith.constant 0 : i32
    %c0_i32_0 = arith.constant 0 : i32
    %c0_i32_1 = arith.constant 0 : i32
    return %0, %c0_i32, %c0_i32_0 : i32, i32, i32
  }
  func.func @transform_10(%arg0: i32) -> (i32, i32, i32) {
    %c1_i32 = arith.constant 1 : i32
    %0 = arith.minsi %arg0, %c1_i32 : i32
    %c0_i32 = arith.constant 0 : i32
    %c0_i32_0 = arith.constant 0 : i32
    %c0_i32_1 = arith.constant 0 : i32
    return %0, %c0_i32, %c0_i32_0 : i32, i32, i32
  }
  func.func @transform_11(%arg0: i32) -> (i32, i32, i32) {
    %c2_i32 = arith.constant 2 : i32
    %0 = arith.subi %arg0, %c2_i32 : i32
    %c0_i32 = arith.constant 0 : i32
    %1 = arith.maxsi %0, %c0_i32 : i32
    %c0_i32_0 = arith.constant 0 : i32
    %c0_i32_1 = arith.constant 0 : i32
    %c0_i32_2 = arith.constant 0 : i32
    return %1, %c0_i32_0, %c0_i32_1 : i32, i32, i32
  }
  func.func @transform_12(%arg0: i32) -> (i32, i32, i32) {
    %c2_i32 = arith.constant 2 : i32
    %0 = arith.subi %arg0, %c2_i32 : i32
    %c0_i32 = arith.constant 0 : i32
    %1 = arith.maxsi %0, %c0_i32 : i32
    %c0_i32_0 = arith.constant 0 : i32
    %c0_i32_1 = arith.constant 0 : i32
    %c0_i32_2 = arith.constant 0 : i32
    return %1, %c0_i32_0, %c0_i32_1 : i32, i32, i32
  }
  func.func @transform_13(%arg0: i32) -> (i32, i32, i32) {
    %c2_i32 = arith.constant 2 : i32
    %0 = arith.subi %arg0, %c2_i32 : i32
    %c0_i32 = arith.constant 0 : i32
    %1 = arith.maxsi %0, %c0_i32 : i32
    %c0_i32_0 = arith.constant 0 : i32
    %c0_i32_1 = arith.constant 0 : i32
    %c0_i32_2 = arith.constant 0 : i32
    return %1, %c0_i32_0, %c0_i32_1 : i32, i32, i32
  }
  func.func @transform_14(%arg0: i32) -> (i32, i32, i32) {
    %c2_i32 = arith.constant 2 : i32
    %0 = arith.subi %arg0, %c2_i32 : i32
    %c0_i32 = arith.constant 0 : i32
    %1 = arith.maxsi %0, %c0_i32 : i32
    %c0_i32_0 = arith.constant 0 : i32
    %c0_i32_1 = arith.constant 0 : i32
    %c0_i32_2 = arith.constant 0 : i32
    return %1, %c0_i32_0, %c0_i32_1 : i32, i32, i32
  }
  func.func @transform_15(%arg0: i32) -> (i32, i32, i32) {
    %c2_i32 = arith.constant 2 : i32
    %0 = arith.subi %arg0, %c2_i32 : i32
    %c0_i32 = arith.constant 0 : i32
    %1 = arith.maxsi %0, %c0_i32 : i32
    %c0_i32_0 = arith.constant 0 : i32
    %c0_i32_1 = arith.constant 0 : i32
    %c0_i32_2 = arith.constant 0 : i32
    return %1, %c0_i32_0, %c0_i32_1 : i32, i32, i32
  }
  func.func @transform_16(%arg0: i32) -> (i32, i32, i32) {
    %c2_i32 = arith.constant 2 : i32
    %0 = arith.subi %arg0, %c2_i32 : i32
    %c0_i32 = arith.constant 0 : i32
    %1 = arith.maxsi %0, %c0_i32 : i32
    %c0_i32_0 = arith.constant 0 : i32
    %c0_i32_1 = arith.constant 0 : i32
    %c0_i32_2 = arith.constant 0 : i32
    return %1, %c0_i32_0, %c0_i32_1 : i32, i32, i32
  }
  func.func @transform_17(%arg0: i32) -> (i32, i32, i32) {
    %c2_i32 = arith.constant 2 : i32
    %0 = arith.subi %arg0, %c2_i32 : i32
    %c0_i32 = arith.constant 0 : i32
    %1 = arith.maxsi %0, %c0_i32 : i32
    %c0_i32_0 = arith.constant 0 : i32
    %c0_i32_1 = arith.constant 0 : i32
    %c0_i32_2 = arith.constant 0 : i32
    return %1, %c0_i32_0, %c0_i32_1 : i32, i32, i32
  }
  func.func @transform_18(%arg0: i32) -> (i32, i32, i32) {
    %c2_i32 = arith.constant 2 : i32
    %0 = arith.subi %arg0, %c2_i32 : i32
    %c0_i32 = arith.constant 0 : i32
    %1 = arith.maxsi %0, %c0_i32 : i32
    %c0_i32_0 = arith.constant 0 : i32
    %c0_i32_1 = arith.constant 0 : i32
    %c0_i32_2 = arith.constant 0 : i32
    return %1, %c0_i32_0, %c0_i32_1 : i32, i32, i32
  }
  func.func @transform_19(%arg0: i32) -> (i32, i32, i32) {
    %c2_i32 = arith.constant 2 : i32
    %0 = arith.subi %arg0, %c2_i32 : i32
    %c0_i32 = arith.constant 0 : i32
    %1 = arith.maxsi %0, %c0_i32 : i32
    %c0_i32_0 = arith.constant 0 : i32
    %c0_i32_1 = arith.constant 0 : i32
    %c0_i32_2 = arith.constant 0 : i32
    return %1, %c0_i32_0, %c0_i32_1 : i32, i32, i32
  }
  func.func @transform_20(%arg0: i32) -> (i32, i32, i32) {
    %c2_i32 = arith.constant 2 : i32
    %0 = arith.subi %arg0, %c2_i32 : i32
    %c0_i32 = arith.constant 0 : i32
    %1 = arith.maxsi %0, %c0_i32 : i32
    %c0_i32_0 = arith.constant 0 : i32
    %c0_i32_1 = arith.constant 0 : i32
    %c0_i32_2 = arith.constant 0 : i32
    return %1, %c0_i32_0, %c0_i32_1 : i32, i32, i32
  }
  func.func @transform_21(%arg0: i32) -> (i32, i32, i32) {
    %c2_i32 = arith.constant 2 : i32
    %0 = arith.subi %arg0, %c2_i32 : i32
    %c0_i32 = arith.constant 0 : i32
    %1 = arith.maxsi %0, %c0_i32 : i32
    %c0_i32_0 = arith.constant 0 : i32
    %c0_i32_1 = arith.constant 0 : i32
    %c0_i32_2 = arith.constant 0 : i32
    return %1, %c0_i32_0, %c0_i32_1 : i32, i32, i32
  }
  func.func @transform_22(%arg0: i32) -> (i32, i32, i32) {
    %c2_i32 = arith.constant 2 : i32
    %0 = arith.subi %arg0, %c2_i32 : i32
    %c0_i32 = arith.constant 0 : i32
    %1 = arith.maxsi %0, %c0_i32 : i32
    %c0_i32_0 = arith.constant 0 : i32
    %c0_i32_1 = arith.constant 0 : i32
    %c0_i32_2 = arith.constant 0 : i32
    return %1, %c0_i32_0, %c0_i32_1 : i32, i32, i32
  }
  func.func @transform_23(%arg0: i32) -> (i32, i32, i32) {
    %c2_i32 = arith.constant 2 : i32
    %0 = arith.subi %arg0, %c2_i32 : i32
    %c0_i32 = arith.constant 0 : i32
    %1 = arith.maxsi %0, %c0_i32 : i32
    %c0_i32_0 = arith.constant 0 : i32
    %c0_i32_1 = arith.constant 0 : i32
    %c0_i32_2 = arith.constant 0 : i32
    return %1, %c0_i32_0, %c0_i32_1 : i32, i32, i32
  }
  func.func @transform_24(%arg0: i32) -> (i32, i32, i32) {
    %c2_i32 = arith.constant 2 : i32
    %0 = arith.subi %arg0, %c2_i32 : i32
    %c0_i32 = arith.constant 0 : i32
    %1 = arith.maxsi %0, %c0_i32 : i32
    %c0_i32_0 = arith.constant 0 : i32
    %c0_i32_1 = arith.constant 0 : i32
    %c0_i32_2 = arith.constant 0 : i32
    return %1, %c0_i32_0, %c0_i32_1 : i32, i32, i32
  }
  func.func @transform_25(%arg0: i32) -> (i32, i32, i32) {
    %c2_i32 = arith.constant 2 : i32
    %0 = arith.subi %arg0, %c2_i32 : i32
    %c0_i32 = arith.constant 0 : i32
    %1 = arith.maxsi %0, %c0_i32 : i32
    %c0_i32_0 = arith.constant 0 : i32
    %c0_i32_1 = arith.constant 0 : i32
    %c0_i32_2 = arith.constant 0 : i32
    return %1, %c0_i32_0, %c0_i32_1 : i32, i32, i32
  }
  func.func @transform_26(%arg0: i32) -> (i32, i32) {
    %c0_i32 = arith.constant 0 : i32
    %c0_i32_0 = arith.constant 0 : i32
    %c0_i32_1 = arith.constant 0 : i32
    return %c0_i32, %c0_i32_0 : i32, i32
  }
}

</mosaic_0001>

<bundles_post_ra>
// kernel: region_transformer_forward.1
= control target key start
LH: loop header
LB: loop body
LE: loop exit
PB: predicated region body
PF: predicated region fallthrough
CT: control target
= control target key end

     0   :  { %s9792_s0 = inlined_call_operand.vmem [shape: f32[11,128], index: 0, kind: input, shape index: {}]   ;;  %s9793_s1 = inlined_call_operand.vmem [shape: bf16[32,128], index: 1, kind: input, shape index: {}]   ;;  %s9794_s2 = inlined_call_operand.hbm [shape: bf16[2,128,384], index: 2, kind: input, shape index: {}]   ;;  %s9795_s3 = inlined_call_operand.vmem [shape: f32[2,1,384], index: 3, kind: input, shape index: {}]   ;;  %s9796_s4 = inlined_call_operand.vmem [shape: bf16[2,128,128], index: 4, kind: input, shape index: {}]   ;;  %s9797_s5 = inlined_call_operand.hbm [shape: f32[2,1,128], index: 5, kind: input, shape index: {}]   ;;  %s9798_s6 = inlined_call_operand.hbm [shape: bf16[2,128,256], index: 6, kind: input, shape index: {}]   ;;  %s9799_s7 = inlined_call_operand.vmem [shape: f32[2,1,256], index: 7, kind: input, shape index: {}]   ;;  %s9800_s8 = inlined_call_operand.hbm [shape: bf16[2,256,128], index: 8, kind: input, shape index: {}]   ;;  %s9801_s9 = inlined_call_operand.hbm [shape: f32[2,1,128], index: 9, kind: input, shape index: {}]   ;;  %s9802_s10 = inlined_call_operand.vmem [shape: f32[2,4,128], index: 10, kind: input, shape index: {}]   ;;  %s9803_s11 = inlined_call_operand.hbm [shape: bf16[2,128,384], index: 11, kind: input, shape index: {}]   ;;  %s9804_s12 = inlined_call_operand.vmem [shape: f32[2,1,384], index: 12, kind: input, shape index: {}]   ;;  %s9805_s13 = inlined_call_operand.hbm [shape: bf16[2,128,128], index: 13, kind: input, shape index: {}]   ;;  %s9806_s14 = inlined_call_operand.hbm [shape: f32[2,1,128], index: 14, kind: input, shape index: {}]   ;;  %s9807_s15 = inlined_call_operand.hbm [shape: bf16[2,128,128], index: 15, kind: input, shape index: {}]   ;;  %s9808_s16 = inlined_call_operand.hbm [shape: f32[2,1,128], index: 16, kind: input, shape index: {}]   ;;  %s9809_s17 = inlined_call_operand.hbm [shape: bf16[2,128,256], index: 17, kind: input, shape index: {}]   ;;  %s9810_s18 = inlined_call_operand.vmem [shape: f32[2,1,256], index: 18, kind: input, shape index: {}]   ;;  %s9811_s19 = inlined_call_operand.hbm [shape: bf16[2,128,128], index: 19, kind: input, shape index: {}]   ;;  %s9812_s20 = inlined_call_operand.hbm [shape: f32[2,1,128], index: 20, kind: input, shape index: {}]   ;;  %s9813_s21 = inlined_call_operand.hbm [shape: bf16[2,128,256], index: 21, kind: input, shape index: {}]   ;;  %s9814_s22 = inlined_call_operand.hbm [shape: f32[2,1,256], index: 22, kind: input, shape index: {}]   ;;  %s9815_s23 = inlined_call_operand.hbm [shape: bf16[2,256,128], index: 23, kind: input, shape index: {}]   ;;  %s9816_s24 = inlined_call_operand.hbm [shape: f32[2,1,128], index: 24, kind: input, shape index: {}]   ;;  %s9817_s25 = inlined_call_operand.vmem [shape: f32[2,6,128], index: 25, kind: input, shape index: {}]   ;;  %s9818_s26 = inlined_call_operand.vmem [shape: f32[11,128], index: 26, kind: output, shape index: {}]  }
   0x1   :  { %9884 = sst [smem:[#allocation56_spill]] %s9792_s0 }
   0x2   :  { %9885 = sst [smem:[#allocation57_spill]] %s9793_s1 }
   0x3   :  { %9886 = sst [smem:[#allocation58_spill]] %s9794_s2 }
   0x4   :  { %9887 = sst [smem:[#allocation59_spill]] %s9795_s3 }
   0x5   :  { %9888 = sst [smem:[#allocation60_spill]] %s9796_s4 }
   0x6   :  { %9889 = sst [smem:[#allocation61_spill]] %s9797_s5 }
   0x7   :  { %9890 = sst [smem:[#allocation62_spill]] %s9798_s6 }
   0x8   :  { %9891 = sst [smem:[#allocation63_spill]] %s9799_s7 }
   0x9   :  { %9892 = sst [smem:[#allocation64_spill]] %s9800_s8 }
   0xa   :  { %9893 = sst [smem:[#allocation65_spill]] %s9801_s9 }
   0xb   :  { %9894 = sst [smem:[#allocation66_spill]] %s9802_s10 }
   0xc   :  { %9895 = sst [smem:[#allocation67_spill]] %s9803_s11 }
   0xd   :  { %9896 = sst [smem:[#allocation68_spill]] %s9804_s12 }
   0xe   :  { %9897 = sst [smem:[#allocation69_spill]] %s9805_s13 }
   0xf   :  { %9898 = sst [smem:[#allocation70_spill]] %s9806_s14 }
  0x10   :  { %9899 = sst [smem:[#allocation71_spill]] %s9807_s15 }
  0x11   :  { %9900 = sst [smem:[#allocation72_spill]] %s9808_s16 }
  0x12   :  { %9901 = sst [smem:[#allocation73_spill]] %s9809_s17 }
  0x13   :  { %9902 = sst [smem:[#allocation74_spill]] %s9810_s18 }
  0x14   :  { %9903 = sst [smem:[#allocation75_spill]] %s9811_s19 }
  0x15   :  { %9904 = sst [smem:[#allocation76_spill]] %s9812_s20 }
  0x16   :  { %9905 = sst [smem:[#allocation77_spill]] %s9813_s21 }
  0x17   :  { %9906 = sst [smem:[#allocation78_spill]] %s9814_s22 }
  0x18   :  { %9907 = sst [smem:[#allocation79_spill]] %s9815_s23 }
  0x19   :  { %9908 = sst [smem:[#allocation80_spill]] %s9816_s24 }
  0x1a   :  { %9909 = sst [smem:[#allocation81_spill]] %s9817_s25 }
  0x1b   :  { %9910 = sst [smem:[#allocation82_spill]] %s9818_s26 }
  0x1c   :  { %31 = vsyncpa [#allocation4], 0 }
  0x1d   :  { %33 = vsyncpa [#allocation4 + $0x1], 0 }
  0x1e   :  { %34 = vsyncpa [#allocation6], 0 }
  0x1f   :  { %36 = vsyncpa [#allocation6 + $0x1], 0 }
  0x20   :  { %37 = vsyncpa [#allocation9], 0 }
  0x21   :  { %39 = vsyncpa [#allocation9 + $0x1], 0 }
  0x22   :  { %40 = vsyncpa [#allocation12], 0 }
  0x23   :  { %42 = vsyncpa [#allocation12 + $0x1], 0 }
  0x24   :  { %43 = vsyncpa [#allocation15], 0 }
  0x25   :  { %45 = vsyncpa [#allocation15 + $0x1], 0 }
  0x26   :  { %46 = vsyncpa [#allocation18], 0 }
  0x27   :  { %48 = vsyncpa [#allocation18 + $0x1], 0 }
  0x28   :  { %49 = vsyncpa [#allocation21], 0 }
  0x29   :  { %51 = vsyncpa [#allocation21 + $0x1], 0 }
  0x2a   :  { %52 = vsyncpa [#allocation24], 0 }
  0x2b   :  { %54 = vsyncpa [#allocation24 + $0x1], 0 }
  0x2c   :  { %55 = vsyncpa [#allocation27], 0 }
  0x2d   :  { %57 = vsyncpa [#allocation27 + $0x1], 0  ;;  %s8309_s27 = smov 0   ;;  %s8311_s3 = smov 0  }
  0x2e   :  { %s8313_s7 = smov 0   ;;  %s8315_s28 = smov 0  }
  0x2f   :  { %s8317_s8 = smov 0   ;;  %s8319_s4 = smov 0  }
  0x30   :  { %s8321_s29 = smov 0  }
  0x31 LB: > { %9911 = sst [smem:[#allocation38_spill]] %s8115_s3  ;;  %s8343_s0 = sadd.s32 4294967295, %s8135_s29   ;;  %s8135_s29 = sphi %s8321_s29, %s10004_s29   ;;  %s8131_s4 = sphi %s8319_s4, %s10010_s4   ;;  %s8127_s8 = sphi %s8317_s8, %s10009_s8   ;;  %s8123_s28 = sphi %s8315_s28, %s10008_s28   ;;  %s8119_s7 = sphi %s8313_s7, %s10007_s7   ;;  %s8115_s3 = sphi %s8311_s3, %s10006_s3   ;;  %s8111_s27 = sphi %s8309_s27, %s10005_s27  }
  0x32   : > { %9912 = sst [smem:[#allocation39_spill]] %s8119_s7  ;;  %s8346_s9 = sadd.s32 1, %s8135_s29  }
  0x33   : > { %9913 = sst [smem:[#allocation40_spill]] %s8127_s8  ;;  %p109_p0 = scmp.lt.s32.totalorder %s8135_s29, 1 }
  0x34   : > { %9914 = sst [smem:[#allocation41_spill]] %s8131_s4  ;;  %p111_p1 = scmp.lt.s32.totalorder %s8346_s9, 1 }
  0x35   : > { %9915 = sst [smem:[#allocation42_spill]] %s8135_s29  ;;  %s116_s30 = sadd.s32 1, %s8131_s4 }
  0x36   : > { %9916 = sst [smem:[#allocation43_spill]] %s8343_s0  ;;  %p123_p2 = scmp.ne.s32.totalorder %s8131_s4, %s8127_s8 }
  0x37   : > { %9917 = sst [smem:[#allocation44_spill]] %s8346_s9  ;;  %p124_p3 = scmp.eq.s32.totalorder %s8135_s29, 0 }
  0x38   : > { %s8354_s2 = scalar_select %p109_p0, %s8135_s29, 1 }
  0x39   : > { %s112_s5 = scalar_select %p111_p1, %s8346_s9, 1 }
  0x3a   : > { %p129_p4 = scmp.ne.s32.totalorder %s8127_s8, %s8123_s28  ;;  %p130_p5 = scmp.eq.s32.totalorder %s8343_s0, 0 }
  0x3b   : > { %s113_s10 = ssub.s32 %s8354_s2, %s112_s5  ;;  %p8363_p7 = por %p124_p3, %p123_p2 }
  0x3c   : > { %p114_p6 = scmp.eq.s32.totalorder %s113_s10, 0  ;;  %p8369_p8 = por %p130_p5, %p129_p4 }
  0x3d   : > { %s6361_s26 = sadd.s32 4294967294, %s8135_s29  ;;  %s6362_s28 = sadd.s32 4294967294, %s8346_s9 }
  0x3e   : > { %s9919_s1 = scalar_select %p8369_p8, 1, 0 }
  0x3f   : > { %s8375_s25 = scalar_select %p114_p6, %s8131_s4, %s116_s30  }
  0x40   : > { %9920 = sst [smem:[#allocation45_spill]] %s9919_s1  ;;  %p380_p9 = scmp.gt.s32.totalorder %s6361_s26, 0 }
  0x41   : > { %9921 = sst [smem:[#allocation46_spill]] %s8375_s25  ;;  %p383_p10 = scmp.gt.s32.totalorder %s6362_s28, 0 }
  0x42   : > { %s10012_s26 = smov (!%p380_p9, %s6361_s26), 0  ;;  %p395_p11 = scmp.ne.s32.totalorder %s8119_s7, %s8115_s3 }
  0x43   : > { %s10014_s28 = smov (!%p383_p10, %s6362_s28), 0  ;;  %p401_p12 = scmp.ne.s32.totalorder %s8115_s3, %s8111_s27 }
  0x44   : > { %s385_s5 = ssub.s32 %s10012_s26, %s10014_s28  ;;  %s388_s10 = sadd.s32 1, %s8119_s7 }
  0x45   : > { %p386_p13 = scmp.eq.s32.totalorder %s385_s5, 0  ;;  %p8388_p0 = por %p395_p11, %p124_p3 }
  0x46   : > { %p8394_p1 = por %p401_p12, %p130_p5  ;;  %p6392_p2 = scmp.ge.s32.totalorder %s8135_s29, 4 }
  0x47   : > { %s8399_s25 = scalar_select %p386_p13, %s8119_s7, %s388_s10  }
  0x48   : > { %s9923_s30 = scalar_select %p8394_p1, 1, 0 }
  0x49   : > { %9925 = sst [smem:[#allocation48_spill]] %s8399_s25  ;;  %896 = sbr.rel (%p6392_p2) target bundleno = 534 (0x216), region = 24 }
  0x4a   : > { %9924 = sst [smem:[#allocation47_spill]] %s9923_s30  ;;  %s8403_s27 = sand.u32 (!%p6392_p2), 1, %s8131_s4  }
  0x4b   : > { %s8406_s28 = sand.u32 (!%p6392_p2), 1, %s8135_s29   ;;  %s9842_s5 = sshll.u32 (!%p6392_p2), %s8354_s2, 4 }
  0x4c   : > { %s949_s9 = scalar_lea.vmem (!%p6392_p2), [#allocation5], %s8403_s27  ;;  %s9926_s30 = sld [smem:[#allocation61_spill]] (!%p6392_p2) }
  0x4d   : > { %s958_s18 = sshll.u32 (!%p6392_p2), %s949_s9, 4  ;;  %s9848_s0 = scalar_lea.sflag (!%p6392_p2), [#allocation6], %s8406_s28  ;;  %s959_s18 = int_to_ptr.vmem [resolvable:$true] %s958_s18 }
  0x52   : > { %s956_s3 = scalar_lea.hbm %s9926_s30, %s9842_s5  ;;  %s7607_s29 = scalar_lea.hbm %s9926_s30, 32 }
  0x53   : > { %s7603_s1 = scalar_lea.hbm %s956_s3, 16  ;;  %p7608_p6 = scmp.lt.s32.totalorder %s956_s3, %s9926_s30 }
  0x54   : > { %p7604_p3 = scmp.ne.s32.totalorder %s956_s3, %s7603_s1  ;;  %p7609_p9 = scmp.lt.s32.totalorder %s7607_s29, %s7603_s1 }
  0x56   : > { %p7605_p4 = pnand %p7604_p3, %p8363_p7  ;;  %p7610_p10 = por %p7609_p9, %p7608_p6 }
  0x58   : > { %p7606_p5 = pneg %p7605_p4 }
  0x5a   : > { %p7611_p11 = pnand %p7610_p10, %p7606_p5 }
  0x5c   : > { %7614 = shalt.err (!%p7611_p11)
}
  0x5d   : > { %s7615_s25 = scalar_lea.vmem %s959_s18, 16  ;;  %s8137_s9 = smov [#allocation5]  }
  0x5e   : > { %p7616_p12 = scmp.ne.s32.totalorder %s959_s18, %s7615_s25  ;;  %s7619_s10 = sshll.u32 %s8137_s9, 4  ;;  %s7620_s10 = int_to_ptr.vmem [resolvable:$false] %s7619_s10 }
  0x5f   : > { %s7621_s5 = scalar_lea.vmem %s7620_s10, 32  ;;  %p7622_p3 = scmp.lt.s32.totalorder %s959_s18, %s7620_s10 }
  0x60   : > { %p7617_p13 = pnand %p7616_p12, %p8363_p7  ;;  %p7623_p4 = scmp.lt.s32.totalorder %s7621_s5, %s7615_s25 }
  0x62   : > { %p7618_p2 = pneg %p7617_p13  ;;  %p7624_p1 = por %p7623_p4, %p7622_p3 }
  0x64   : > { %p7625_p8 = pnand %p7624_p1, %p7618_p2 }
  0x66   : > { %7628 = shalt.err (!%p7625_p8)
}
  0x67   : > { %7200 = dma.hbm_to_vmem [thread:$0]  (%p8363_p7), %s956_s3, 16, %s959_s18, %s9848_s0  }
  0x68   : > { %s6395_s22 = sshll.u32 %s8403_s27, 7  ;;  %s6696_s24 = sshll.u32 %s8354_s2, 11 }
  0x69   : > { %s9927_s29 = sld [smem:[#allocation62_spill]]  ;;  %s8437_s5 = scalar_lea.vmem [#allocation7], %s6395_s22 }
  0x6a   : > { %s9929_s20 = sld [smem:[#allocation64_spill]]  ;;  %s1003_s18 = scalar_lea.vmem [#allocation8], %s6395_s22 }
  0x6b   : > { %s1012_s3 = sshll.u32 %s1003_s18, 4  ;;  %s9851_s0 = scalar_lea.sflag [#allocation9], %s8406_s28  ;;  %s8445_s3 = int_to_ptr.vmem [resolvable:$true] %s1012_s3 }
  0x6f   : > { %s9928_s1 = smov %s9927_s29  ;;  %s8435_s9 = scalar_lea.hbm %s9927_s29, %s6696_s24 }
  0x70   : > { %s8443_s17 = scalar_lea.hbm %s9929_s20, %s6696_s24  ;;  %s7633_s25 = scalar_lea.hbm %s9929_s20, 4096 }
  0x71   : > { %s7629_s8 = scalar_lea.hbm %s8443_s17, 2048  ;;  %p7634_p6 = scmp.lt.s32.totalorder %s8443_s17, %s9929_s20 }
  0x72   : > { %p7630_p8 = scmp.ne.s32.totalorder %s8443_s17, %s7629_s8  ;;  %p7635_p9 = scmp.lt.s32.totalorder %s7633_s25, %s7629_s8 }
  0x74   : > { %p7631_p1 = pnand %p7630_p8, %p8363_p7  ;;  %p7636_p10 = por %p7635_p9, %p7634_p6 }
  0x76   : > { %p7632_p5 = pneg %p7631_p1 }
  0x78   : > { %p7637_p11 = pnand %p7636_p10, %p7632_p5 }
  0x7a   : > { %7640 = shalt.err (!%p7637_p11)
}
  0x7b   : > { %s7641_s22 = scalar_lea.vmem %s8445_s3, 2048  ;;  %s8138_s10 = smov [#allocation8]  }
  0x7c   : > { %p7642_p12 = scmp.ne.s32.totalorder %s8445_s3, %s7641_s22  ;;  %s7645_s18 = sshll.u32 %s8138_s10, 4  ;;  %s7646_s18 = int_to_ptr.vmem [resolvable:$false] %s7645_s18 }
  0x7d   : > { %s7647_s4 = scalar_lea.vmem %s7646_s18, 4096  ;;  %p7648_p3 = scmp.lt.s32.totalorder %s8445_s3, %s7646_s18 }
  0x7e   : > { %p7643_p13 = pnand %p7642_p12, %p8363_p7  ;;  %p7649_p4 = scmp.lt.s32.totalorder %s7647_s4, %s7641_s22 }
  0x80   : > { %p7644_p2 = pneg %p7643_p13  ;;  %p7650_p8 = por %p7649_p4, %p7648_p3 }
  0x82   : > { %p7651_p1 = pnand %p7650_p8, %p7644_p2 }
  0x84   : > { %7654 = shalt.err (!%p7651_p1)
}
  0x85   : > { %s9852_s25 = smov 64   ;;  %s9854_s8 = smov 4  }
  0x86   : > { %7202 = dma.hbm_to_vmem [thread:$0]  (%p8363_p7), %s8443_s17, 2048, %s8445_s3, %s9851_s0, %s9852_s25, %s9852_s25, %s9854_s8  }
  0x87   : > { %s8474_s29 = sand.u32 1, %s8119_s7   ;;  %s7194_s24 = smul.u32 3072, %s10012_s26 }
  0x88   : > { %s7193_s30 = smul.u32 192, %s8474_s29  ;;  %s8479_s22 = sshll.u32 %s10012_s26, 4 }
  0x89   : > { %s9930_s11 = sld [smem:[#allocation67_spill]]  ;;  %s9858_s25 = scalar_lea.sflag [#allocation12], %s8406_s28 }
  0x8a   : > { %s1056_s20 = scalar_lea.vmem [#allocation11], %s7193_s30  ;;  %s9931_s14 = sld [smem:[#allocation70_spill]] }
  0x8b   : > { %s1066_s15 = sshll.u32 %s1056_s20, 4  ;;  %s8486_s15 = int_to_ptr.vmem [resolvable:$true] %s1066_s15 }
  0x8f   : > { %s8484_s4 = scalar_lea.hbm %s9930_s11, %s7194_s24  ;;  %s7659_s18 = scalar_lea.hbm %s9930_s11, 6144 }
  0x90   : > { %s8492_s0 = scalar_lea.hbm %s9931_s14, %s8479_s22  ;;  %s7655_s8 = scalar_lea.hbm %s8484_s4, 3072 }
  0x91   : > { %p7656_p5 = scmp.ne.s32.totalorder %s8484_s4, %s7655_s8  ;;  %p7660_p10 = scmp.lt.s32.totalorder %s8484_s4, %s9930_s11 }
  0x92   : > { %p7661_p11 = scmp.lt.s32.totalorder %s7659_s18, %s7655_s8 }
  0x93   : > { %p7657_p6 = pnand %p7656_p5, %p8388_p0 }
  0x94   : > { %p7662_p12 = por %p7661_p11, %p7660_p10 }
  0x95   : > { %p7658_p9 = pneg %p7657_p6 }
  0x97   : > { %p7663_p13 = pnand %p7662_p12, %p7658_p9 }
  0x99   : > { %7666 = shalt.err (!%p7663_p13)
}
  0x9a   : > { %s7667_s20 = scalar_lea.vmem %s8486_s15, 3072  ;;  %s8141_s17 = smov [#allocation11]  }
  0x9b   : > { %p7668_p2 = scmp.ne.s32.totalorder %s8486_s15, %s7667_s20  ;;  %s7671_s3 = sshll.u32 %s8141_s17, 4  ;;  %s7672_s3 = int_to_ptr.vmem [resolvable:$false] %s7671_s3 }
  0x9c   : > { %s7673_s24 = scalar_lea.vmem %s7672_s3, 6144  ;;  %p7674_p8 = scmp.lt.s32.totalorder %s8486_s15, %s7672_s3 }
  0x9d   : > { %p7669_p3 = pnand %p7668_p2, %p8388_p0  ;;  %p7675_p1 = scmp.lt.s32.totalorder %s7673_s24, %s7667_s20 }
  0x9f   : > { %p7670_p4 = pneg %p7669_p3  ;;  %p7676_p5 = por %p7675_p1, %p7674_p8 }
  0xa1   : > { %p7677_p6 = pnand %p7676_p5, %p7670_p4 }
  0xa3   : > { %7680 = shalt.err (!%p7677_p6)
}
  0xa4   : > { %s9860_s7 = smov 192   ;;  %s9862_s8 = smov 12  }
  0xa5   : > { %7204 = dma.hbm_to_vmem [thread:$0]  (%p8388_p0), %s8484_s4, 3072, %s8486_s15, %s9858_s25, %s9860_s7, %s9860_s7, %s9862_s8  }
  0xa6   : > { %s1116_s10 = scalar_lea.vmem [#allocation14], %s8474_s29  ;;  %s9859_s30 = scalar_lea.sflag [#allocation15], %s8406_s28 }
  0xa7   : > { %s1126_s18 = sshll.u32 %s1116_s10, 4  ;;  %s7681_s20 = scalar_lea.hbm %s8492_s0, 16  ;;  %s1127_s18 = int_to_ptr.vmem [resolvable:$true] %s1126_s18 }
  0xa8   : > { %p7682_p9 = scmp.ne.s32.totalorder %s8492_s0, %s7681_s20  ;;  %s7685_s24 = scalar_lea.hbm %s9931_s14, 32 }
  0xa9   : > { %p7686_p12 = scmp.lt.s32.totalorder %s8492_s0, %s9931_s14  ;;  %p7687_p13 = scmp.lt.s32.totalorder %s7685_s24, %s7681_s20 }
  0xaa   : > { %p7683_p10 = pnand %p7682_p9, %p8388_p0 }
  0xab   : > { %p7688_p2 = por %p7687_p13, %p7686_p12 }
  0xac   : > { %p7684_p11 = pneg %p7683_p10 }
  0xae   : > { %p7689_p3 = pnand %p7688_p2, %p7684_p11 }
  0xb0   : > { %7692 = shalt.err (!%p7689_p3)
}
  0xb1   : > { %s7693_s15 = scalar_lea.vmem %s1127_s18, 16  ;;  %s8144_s4 = smov [#allocation14]  }
  0xb2   : > { %p7694_p4 = scmp.ne.s32.totalorder %s1127_s18, %s7693_s15  ;;  %s7697_s10 = sshll.u32 %s8144_s4, 4  ;;  %s7698_s10 = int_to_ptr.vmem [resolvable:$false] %s7697_s10 }
  0xb3   : > { %s7699_s25 = scalar_lea.vmem %s7698_s10, 32  ;;  %p7700_p5 = scmp.lt.s32.totalorder %s1127_s18, %s7698_s10 }
  0xb4   : > { %p7695_p8 = pnand %p7694_p4, %p8388_p0  ;;  %p7701_p6 = scmp.lt.s32.totalorder %s7699_s25, %s7693_s15 }
  0xb6   : > { %p7696_p1 = pneg %p7695_p8  ;;  %p7702_p9 = por %p7701_p6, %p7700_p5 }
  0xb8   : > { %p7703_p10 = pnand %p7702_p9, %p7696_p1 }
  0xba   : > { %7706 = shalt.err (!%p7703_p10)
}
  0xbb   : > { %7206 = dma.hbm_to_vmem [thread:$0]  (%p8388_p0), %s8492_s0, 16, %s1127_s18, %s9859_s30  }
  0xbc   : > { %s9932_s16 = sld [smem:[#allocation72_spill]]  ;;  %s1160_s25 = scalar_lea.vmem [#allocation17], %s8474_s29 }
  0xbd   : > { %s1170_s17 = sshll.u32 %s1160_s25, 4  ;;  %s8548_s3 = sshll.u32 %s8474_s29, 6  ;;  %s1171_s17 = int_to_ptr.vmem [resolvable:$true] %s1170_s17 }
  0xbe   : > { %s9861_s24 = scalar_lea.sflag [#allocation18], %s8406_s28 }
  0xc2   : > { %s8544_s20 = scalar_lea.hbm %s9932_s16, %s8479_s22  ;;  %s7711_s4 = scalar_lea.hbm %s9932_s16, 32 }
  0xc3   : > { %s7707_s15 = scalar_lea.hbm %s8544_s20, 16  ;;  %p7712_p2 = scmp.lt.s32.totalorder %s8544_s20, %s9932_s16 }
  0xc4   : > { %p7708_p11 = scmp.ne.s32.totalorder %s8544_s20, %s7707_s15  ;;  %p7713_p3 = scmp.lt.s32.totalorder %s7711_s4, %s7707_s15 }
  0xc6   : > { %p7709_p12 = pnand %p7708_p11, %p8388_p0  ;;  %p7714_p4 = por %p7713_p3, %p7712_p2 }
  0xc8   : > { %p7710_p13 = pneg %p7709_p12 }
  0xca   : > { %p7715_p8 = pnand %p7714_p4, %p7710_p13 }
  0xcc   : > { %7718 = shalt.err (!%p7715_p8)
}
  0xcd   : > { %s7719_s13 = scalar_lea.vmem %s1171_s17, 16  ;;  %s8145_s25 = smov [#allocation17]  }
  0xce   : > { %p7720_p1 = scmp.ne.s32.totalorder %s1171_s17, %s7719_s13  ;;  %s7723_s30 = sshll.u32 %s8145_s25, 4  ;;  %s7724_s30 = int_to_ptr.vmem [resolvable:$false] %s7723_s30 }
  0xcf   : > { %s7725_s7 = scalar_lea.vmem %s7724_s30, 32  ;;  %p7726_p9 = scmp.lt.s32.totalorder %s1171_s17, %s7724_s30 }
  0xd0   : > { %p7721_p5 = pnand %p7720_p1, %p8388_p0  ;;  %p7727_p10 = scmp.lt.s32.totalorder %s7725_s7, %s7719_s13 }
  0xd2   : > { %p7722_p6 = pneg %p7721_p5  ;;  %p7728_p11 = por %p7727_p10, %p7726_p9 }
  0xd4   : > { %p7729_p12 = pnand %p7728_p11, %p7722_p6 }
  0xd6   : > { %7732 = shalt.err (!%p7729_p12)
}
  0xd7   : > { %7208 = dma.hbm_to_vmem [thread:$0]  (%p8388_p0), %s8544_s20, 16, %s1171_s17, %s9861_s24  }
  0xd8   : > { %s8570_s15 = sshll.u32 %s10012_s26, 10  ;;  %s9933_s19 = sld [smem:[#allocation75_spill]] }
  0xd9   : > { %s1218_s30 = scalar_lea.vmem [#allocation20], %s8548_s3  ;;  %s9863_s10 = scalar_lea.sflag [#allocation21], %s8406_s28 }
  0xda   : > { %s1228_s4 = sshll.u32 %s1218_s30, 4  ;;  %s8579_s4 = int_to_ptr.vmem [resolvable:$true] %s1228_s4 }
  0xde   : > { %s8576_s7 = scalar_lea.hbm %s9933_s19, %s8570_s15  ;;  %s7737_s13 = scalar_lea.hbm %s9933_s19, 2048 }
  0xdf   : > { %s7733_s11 = scalar_lea.hbm %s8576_s7, 1024  ;;  %p7738_p4 = scmp.lt.s32.totalorder %s8576_s7, %s9933_s19 }
  0xe0   : > { %p7734_p13 = scmp.ne.s32.totalorder %s8576_s7, %s7733_s11  ;;  %p7739_p8 = scmp.lt.s32.totalorder %s7737_s13, %s7733_s11 }
  0xe2   : > { %p7735_p2 = pnand %p7734_p13, %p8388_p0  ;;  %p7740_p1 = por %p7739_p8, %p7738_p4 }
  0xe4   : > { %p7736_p3 = pneg %p7735_p2 }
  0xe6   : > { %p7741_p5 = pnand %p7740_p1, %p7736_p3 }
  0xe8   : > { %7744 = shalt.err (!%p7741_p5)
}
  0xe9   : > { %s7745_s18 = scalar_lea.vmem %s8579_s4, 1024  ;;  %s8146_s30 = smov [#allocation20]  }
  0xea   : > { %p7746_p6 = scmp.ne.s32.totalorder %s8579_s4, %s7745_s18  ;;  %s7749_s20 = sshll.u32 %s8146_s30, 4  ;;  %s7750_s20 = int_to_ptr.vmem [resolvable:$false] %s7749_s20 }
  0xeb   : > { %s7751_s17 = scalar_lea.vmem %s7750_s20, 2048  ;;  %p7752_p11 = scmp.lt.s32.totalorder %s8579_s4, %s7750_s20 }
  0xec   : > { %p7747_p9 = pnand %p7746_p6, %p8388_p0  ;;  %p7753_p12 = scmp.lt.s32.totalorder %s7751_s17, %s7745_s18 }
  0xee   : > { %p7748_p10 = pneg %p7747_p9  ;;  %p7754_p13 = por %p7753_p12, %p7752_p11 }
  0xf0   : > { %p7755_p2 = pnand %p7754_p13, %p7748_p10 }
  0xf2   : > { %7758 = shalt.err (!%p7755_p2)
}
  0xf3   : > { %s9934_s11 = smov 4   ;;  %s9935_s13 = smov 64  }
  0xf4   : > { %7210 = dma.hbm_to_vmem [thread:$0]  (%p8388_p0), %s8576_s7, 1024, %s8579_s4, %s9863_s10, %s9935_s13, %s9935_s13, %s9934_s11  }
  0xf5   : > { %s8608_s25 = sshll.u32 %s8474_s29, 7  ;;  %s8611_s0 = sshll.u32 %s10012_s26, 11 }
  0xf6   : > { %s9936_s21 = sld [smem:[#allocation77_spill]]  ;;  %s1262_s17 = scalar_lea.vmem [#allocation23], %s8608_s25 }
  0xf7   : > { %s1272_s24 = sshll.u32 %s1262_s17, 4  ;;  %s8620_s24 = int_to_ptr.vmem [resolvable:$true] %s1272_s24 }
  0xfc   : > { %s8617_s20 = scalar_lea.hbm %s9936_s21, %s8611_s0  ;;  %s7763_s14 = scalar_lea.hbm %s9936_s21, 4096 }
  0xfd   : > { %s7759_s7 = scalar_lea.hbm %s8617_s20, 2048  ;;  %p7764_p1 = scmp.lt.s32.totalorder %s8617_s20, %s9936_s21 }
  0xfe   : > { %p7760_p3 = scmp.ne.s32.totalorder %s8617_s20, %s7759_s7  ;;  %p7765_p5 = scmp.lt.s32.totalorder %s7763_s14, %s7759_s7 }
 0x100   : > { %p7761_p4 = pnand %p7760_p3, %p8388_p0  ;;  %p7766_p6 = por %p7765_p5, %p7764_p1 }
 0x102   : > { %p7762_p8 = pneg %p7761_p4 }
 0x104   : > { %p7767_p9 = pnand %p7766_p6, %p7762_p8 }
 0x106   : > { %7770 = shalt.err (!%p7767_p9)
}
 0x107   : > { %s7771_s17 = scalar_lea.vmem %s8620_s24, 2048  ;;  %s8147_s8 = smov [#allocation23]  }
 0x108   : > { %p7772_p10 = scmp.ne.s32.totalorder %s8620_s24, %s7771_s17  ;;  %s7775_s10 = sshll.u32 %s8147_s8, 4  ;;  %s7776_s10 = int_to_ptr.vmem [resolvable:$false] %s7775_s10 }
 0x109   : > { %s7777_s4 = scalar_lea.vmem %s7776_s10, 4096  ;;  %p7778_p13 = scmp.lt.s32.totalorder %s8620_s24, %s7776_s10 }
 0x10a   : > { %p7773_p11 = pnand %p7772_p10, %p8388_p0  ;;  %p7779_p2 = scmp.lt.s32.totalorder %s7777_s4, %s7771_s17 }
 0x10c   : > { %p7774_p12 = pneg %p7773_p11  ;;  %p7780_p3 = por %p7779_p2, %p7778_p13 }
 0x10e   : > { %p7781_p4 = pnand %p7780_p3, %p7774_p12 }
 0x110   : > { %7784 = shalt.err (!%p7781_p4)
}
 0x111   : > { %s9864_s14 = smov 128   ;;  %s9866_s7 = smov 8  }
 0x112   : > { %s9937_s8 = scalar_lea.sflag [#allocation24], %s8406_s28  ;;  %s9938_s23 = sld [smem:[#allocation79_spill]] }
 0x113   : > { %7212 = dma.hbm_to_vmem [thread:$0]  (%p8388_p0), %s8617_s20, 2048, %s8620_s24, %s9937_s8, %s9864_s14, %s9864_s14, %s9866_s7  }
 0x114   : > { %s1308_s10 = scalar_lea.vmem [#allocation26], %s8608_s25  ;;  %s7191_s16 = smul.u32 192, %s8403_s27 }
 0x115   : > { %s1318_s4 = sshll.u32 %s1308_s10, 4  ;;  %s9868_s19 = scalar_lea.sflag [#allocation27], %s8406_s28  ;;  %s8655_s4 = int_to_ptr.vmem [resolvable:$true] %s1318_s4 }
 0x118   : > { %s8652_s17 = scalar_lea.hbm %s9938_s23, %s8611_s0  ;;  %s7789_s8 = scalar_lea.hbm %s9938_s23, 4096 }
 0x119   : > { %s7785_s21 = scalar_lea.hbm %s8652_s17, 2048  ;;  %p7790_p6 = scmp.lt.s32.totalorder %s8652_s17, %s9938_s23 }
 0x11a   : > { %p7786_p8 = scmp.ne.s32.totalorder %s8652_s17, %s7785_s21  ;;  %p7791_p9 = scmp.lt.s32.totalorder %s7789_s8, %s7785_s21 }
 0x11c   : > { %p7787_p1 = pnand %p7786_p8, %p8388_p0  ;;  %p7792_p10 = por %p7791_p9, %p7790_p6 }
 0x11e   : > { %p7788_p5 = pneg %p7787_p1 }
 0x120   : > { %p7793_p11 = pnand %p7792_p10, %p7788_p5 }
 0x122   : > { %7796 = shalt.err (!%p7793_p11)
}
 0x123   : > { %s7797_s10 = scalar_lea.vmem %s8655_s4, 2048  ;;  %s8150_s14 = smov [#allocation26]  }
 0x124   : > { %p7798_p12 = scmp.ne.s32.totalorder %s8655_s4, %s7797_s10  ;;  %s7801_s24 = sshll.u32 %s8150_s14, 4  ;;  %s7802_s24 = int_to_ptr.vmem [resolvable:$false] %s7801_s24 }
 0x125   : > { %s7803_s20 = scalar_lea.vmem %s7802_s24, 4096  ;;  %p7804_p3 = scmp.lt.s32.totalorder %s8655_s4, %s7802_s24 }
 0x126   : > { %p7799_p13 = pnand %p7798_p12, %p8388_p0  ;;  %p7805_p4 = scmp.lt.s32.totalorder %s7803_s20, %s7797_s10 }
 0x128   : > { %p7800_p2 = pneg %p7799_p13  ;;  %p7806_p8 = por %p7805_p4, %p7804_p3 }
 0x12a   : > { %p7807_p1 = pnand %p7806_p8, %p7800_p2 }
 0x12c   : > { %7810 = shalt.err (!%p7807_p1)
}
 0x12d   : > { %7214 = dma.hbm_to_vmem [thread:$0]  (%p8388_p0), %s8652_s17, 2048, %s8655_s4, %s9868_s19, %s9935_s13, %s9935_s13, %s9934_s11  }
 0x12e   : > { %s7192_s21 = smul.u32 3072, %s8354_s2  ;;  %s904_s14 = scalar_lea.vmem [#allocation3], %s7191_s16 }
 0x12f   : > { %s913_s8 = sshll.u32 %s904_s14, 4  ;;  %s9939_s18 = sshll.u32 %s8437_s5, 4  ;;  %s8689_s18 = int_to_ptr.vmem [resolvable:$true] %s9939_s18  ;;  %s8696_s8 = int_to_ptr.vmem [resolvable:$true] %s913_s8 }
 0x130   : > { %s9940_s24 = sld [smem:[#allocation58_spill]]  ;;  %s901_s7 = scalar_lea.sflag [#allocation4], %s8403_s27 }
 0x136   : > { %s8694_s20 = scalar_lea.hbm %s9940_s24, %s7192_s21  ;;  %s7815_s17 = scalar_lea.hbm %s9940_s24, 6144 }
 0x137   : > { %s7811_s23 = scalar_lea.hbm %s8694_s20, 3072  ;;  %p7816_p10 = scmp.lt.s32.totalorder %s8694_s20, %s9940_s24 }
 0x138   : > { %p7812_p5 = scmp.ne.s32.totalorder %s8694_s20, %s7811_s23  ;;  %p7817_p11 = scmp.lt.s32.totalorder %s7815_s17, %s7811_s23 }
 0x13a   : > { %p7813_p6 = pnand %p7812_p5, %p8363_p7  ;;  %p7818_p12 = por %p7817_p11, %p7816_p10 }
 0x13c   : > { %p7814_p9 = pneg %p7813_p6 }
 0x13e   : > { %p7819_p13 = pnand %p7818_p12, %p7814_p9 }
 0x140   : > { %7822 = shalt.err (!%p7819_p13)
}
 0x141   : > { %s7823_s21 = scalar_lea.vmem %s8696_s8, 3072  ;;  %s8151_s30 = smov [#allocation3]  }
 0x142   : > { %p7824_p2 = scmp.ne.s32.totalorder %s8696_s8, %s7823_s21  ;;  %s7827_s10 = sshll.u32 %s8151_s30, 4  ;;  %s7828_s10 = int_to_ptr.vmem [resolvable:$false] %s7827_s10 }
 0x143   : > { %s7829_s16 = scalar_lea.vmem %s7828_s10, 6144  ;;  %p7830_p8 = scmp.lt.s32.totalorder %s8696_s8, %s7828_s10 }
 0x144   : > { %p7825_p3 = pnand %p7824_p2, %p8363_p7  ;;  %p7831_p1 = scmp.lt.s32.totalorder %s7829_s16, %s7823_s21 }
 0x146   : > { %p7826_p4 = pneg %p7825_p3  ;;  %p7832_p5 = por %p7831_p1, %p7830_p8 }
 0x148   : > { %p7833_p6 = pnand %p7832_p5, %p7826_p4 }
 0x14a   : > { %7836 = shalt.err (!%p7833_p6)
}
 0x14b   : > { %s9941_s23 = smov 12   ;;  %s9942_s5 = smov 192  }
 0x14c   : > { %7199 = dma.hbm_to_vmem [thread:$0]  (%p8363_p7), %s8694_s20, 3072, %s8696_s8, %s901_s7, %s9942_s5, %s9942_s5, %s9941_s23  }
 0x14d   : > { %s7837_s17 = scalar_lea.hbm %s8435_s9, 2048  ;;  %s7841_s21 = scalar_lea.hbm %s9928_s1, 4096 }
 0x14e   : > { %p7838_p9 = scmp.ne.s32.totalorder %s8435_s9, %s7837_s17  ;;  %p7842_p12 = scmp.lt.s32.totalorder %s8435_s9, %s9928_s1 }
 0x14f   : > { %p7843_p13 = scmp.lt.s32.totalorder %s7841_s21, %s7837_s17 }
 0x150   : > { %p7839_p10 = pnand %p7838_p9, %p8363_p7 }
 0x151   : > { %p7844_p2 = por %p7843_p13, %p7842_p12 }
 0x152   : > { %p7840_p11 = pneg %p7839_p10 }
 0x154   : > { %p7845_p3 = pnand %p7844_p2, %p7840_p11 }
 0x156   : > { %7848 = shalt.err (!%p7845_p3)
}
 0x157   : > { %s7849_s7 = scalar_lea.vmem %s8689_s18, 2048  ;;  %s8152_s8 = smov [#allocation7]  }
 0x158   : > { %p7850_p4 = scmp.ne.s32.totalorder %s8689_s18, %s7849_s7  ;;  %s7853_s20 = sshll.u32 %s8152_s8, 4  ;;  %s7854_s20 = int_to_ptr.vmem [resolvable:$false] %s7853_s20 }
 0x159   : > { %s7855_s16 = scalar_lea.vmem %s7854_s20, 4096  ;;  %p7856_p5 = scmp.lt.s32.totalorder %s8689_s18, %s7854_s20 }
 0x15a   : > { %p7851_p8 = pnand %p7850_p4, %p8363_p7  ;;  %p7857_p6 = scmp.lt.s32.totalorder %s7855_s16, %s7849_s7 }
 0x15c   : > { %p7852_p1 = pneg %p7851_p8  ;;  %p7858_p9 = por %p7857_p6, %p7856_p5 }
 0x15e   : > { %p7859_p10 = pnand %p7858_p9, %p7852_p1 }
 0x160   : > { %7862 = shalt.err (!%p7859_p10)
}
 0x161   : > { %s9943_s23 = smov 8   ;;  %s9944_s5 = smov 128  }
 0x162   : > { %s9945_s17 = scalar_lea.sflag [#allocation6], %s8406_s28  ;;  %s9946_s4 = sshll.u32 %s8354_s2, 4 }
 0x163   : > { %7201 = dma.hbm_to_vmem [thread:$0]  (%p8363_p7), %s8435_s9, 2048, %s8689_s18, %s9945_s17, %s9944_s5, %s9944_s5, %s9943_s23  }
 0x164   : > { %s9947_s30 = sld [smem:[#allocation65_spill]]  ;;  %s1025_s7 = scalar_lea.vmem [#allocation10], %s8403_s27 }
 0x165   : > { %s1034_s8 = sshll.u32 %s1025_s7, 4  ;;  %s9948_s19 = sld [smem:[#allocation69_spill]]  ;;  %s1035_s8 = int_to_ptr.vmem [resolvable:$true] %s1034_s8 }
 0x16a   : > { %s8752_s10 = scalar_lea.hbm %s9947_s30, %s9946_s4  ;;  %s7867_s18 = scalar_lea.hbm %s9947_s30, 32 }
 0x16b   : > { %s8759_s1 = scalar_lea.hbm %s9948_s19, %s8570_s15  ;;  %s7863_s24 = scalar_lea.hbm %s8752_s10, 16 }
 0x16c   : > { %p7864_p11 = scmp.ne.s32.totalorder %s8752_s10, %s7863_s24  ;;  %p7868_p2 = scmp.lt.s32.totalorder %s8752_s10, %s9947_s30 }
 0x16d   : > { %p7869_p3 = scmp.lt.s32.totalorder %s7867_s18, %s7863_s24 }
 0x16e   : > { %p7865_p12 = pnand %p7864_p11, %p8363_p7 }
 0x16f   : > { %p7870_p4 = por %p7869_p3, %p7868_p2 }
 0x170   : > { %p7866_p13 = pneg %p7865_p12 }
 0x172   : > { %p7871_p8 = pnand %p7870_p4, %p7866_p13 }
 0x174   : > { %7874 = shalt.err (!%p7871_p8)
}
 0x175   : > { %s7875_s27 = scalar_lea.vmem %s1035_s8, 16  ;;  %s8153_s14 = smov [#allocation10]  }
 0x176   : > { %p7876_p1 = scmp.ne.s32.totalorder %s1035_s8, %s7875_s27  ;;  %s7879_s21 = sshll.u32 %s8153_s14, 4  ;;  %s7880_s21 = int_to_ptr.vmem [resolvable:$false] %s7879_s21 }
 0x177   : > { %s7881_s7 = scalar_lea.vmem %s7880_s21, 32  ;;  %p7882_p9 = scmp.lt.s32.totalorder %s1035_s8, %s7880_s21 }
 0x178   : > { %p7877_p5 = pnand %p7876_p1, %p8363_p7  ;;  %p7883_p10 = scmp.lt.s32.totalorder %s7881_s7, %s7875_s27 }
 0x17a   : > { %p7878_p6 = pneg %p7877_p5  ;;  %p7884_p11 = por %p7883_p10, %p7882_p9 }
 0x17c   : > { %p7885_p12 = pnand %p7884_p11, %p7878_p6 }
 0x17e   : > { %7888 = shalt.err (!%p7885_p12)
}
 0x17f   : > { %s9949_s24 = scalar_lea.sflag [#allocation9], %s8406_s28  ;;  %s1093_s20 = scalar_lea.vmem [#allocation13], %s8548_s3 }
 0x180   : > { %7203 = dma.hbm_to_vmem [thread:$0]  (%p8363_p7), %s8752_s10, 16, %s1035_s8, %s9949_s24  }
 0x181   : > { %s1103_s16 = sshll.u32 %s1093_s20, 4  ;;  %s9950_s18 = sld [smem:[#allocation71_spill]]  ;;  %s8780_s16 = int_to_ptr.vmem [resolvable:$true] %s1103_s16 }
 0x182   : > { %s7889_s6 = scalar_lea.hbm %s8759_s1, 1024  ;;  %s7893_s14 = scalar_lea.hbm %s9948_s19, 2048 }
 0x183   : > { %p7890_p13 = scmp.ne.s32.totalorder %s8759_s1, %s7889_s6  ;;  %p7894_p7 = scmp.lt.s32.totalorder %s8759_s1, %s9948_s19 }
 0x184   : > { %p7895_p4 = scmp.lt.s32.totalorder %s7893_s14, %s7889_s6 }
 0x185   : > { %p7891_p2 = pnand %p7890_p13, %p8388_p0 }
 0x186   : > { %p7896_p8 = por %p7895_p4, %p7894_p7 }
 0x187   : > { %s8786_s17 = scalar_lea.hbm %s9950_s18, %s8570_s15  ;;  %p7892_p3 = pneg %p7891_p2 }
 0x189   : > { %p7897_p1 = pnand %p7896_p8, %p7892_p3 }
 0x18b   : > { %7900 = shalt.err (!%p7897_p1)
}
 0x18c   : > { %s7901_s15 = scalar_lea.vmem %s8780_s16, 1024  ;;  %s8154_s8 = smov [#allocation13]  }
 0x18d   : > { %p7902_p5 = scmp.ne.s32.totalorder %s8780_s16, %s7901_s15  ;;  %s7905_s7 = sshll.u32 %s8154_s8, 4  ;;  %s7906_s7 = int_to_ptr.vmem [resolvable:$false] %s7905_s7 }
 0x18e   : > { %s7907_s24 = scalar_lea.vmem %s7906_s7, 2048  ;;  %p7908_p10 = scmp.lt.s32.totalorder %s8780_s16, %s7906_s7 }
 0x18f   : > { %p7903_p6 = pnand %p7902_p5, %p8388_p0  ;;  %p7909_p11 = scmp.lt.s32.totalorder %s7907_s24, %s7901_s15 }
 0x191   : > { %p7904_p9 = pneg %p7903_p6  ;;  %p7910_p12 = por %p7909_p11, %p7908_p10 }
 0x193   : > { %p7911_p13 = pnand %p7910_p12, %p7904_p9 }
 0x195   : > { %7914 = shalt.err (!%p7911_p13)
}
 0x196   : > { %s9951_s20 = scalar_lea.sflag [#allocation12], %s8406_s28  ;;  %s1137_s2 = scalar_lea.vmem [#allocation16], %s8548_s3 }
 0x197   : > { %7205 = dma.hbm_to_vmem [thread:$0]  (%p8388_p0), %s8759_s1, 1024, %s8780_s16, %s9951_s20, %s9935_s13, %s9935_s13, %s9934_s11  }
 0x198   : > { %s1147_s9 = sshll.u32 %s1137_s2, 4  ;;  %s9952_s27 = sld [smem:[#allocation73_spill]]  ;;  %s8814_s9 = int_to_ptr.vmem [resolvable:$true] %s1147_s9 }
 0x199   : > { %s7915_s10 = scalar_lea.hbm %s8786_s17, 1024  ;;  %s7919_s7 = scalar_lea.hbm %s9950_s18, 2048 }
 0x19a   : > { %p7916_p2 = scmp.ne.s32.totalorder %s8786_s17, %s7915_s10  ;;  %p7920_p4 = scmp.lt.s32.totalorder %s8786_s17, %s9950_s18 }
 0x19b   : > { %p7921_p8 = scmp.lt.s32.totalorder %s7919_s7, %s7915_s10 }
 0x19c   : > { %p7917_p3 = pnand %p7916_p2, %p8388_p0 }
 0x19d   : > { %p7922_p1 = por %p7921_p8, %p7920_p4 }
 0x19e   : > { %s9953_s14 = smov %s9952_s27  ;;  %s8820_s21 = scalar_lea.hbm %s9952_s27, %s8611_s0 }
 0x19f   : > { %p7918_p7 = pneg %p7917_p3 }
 0x1a1   : > { %p7923_p5 = pnand %p7922_p1, %p7918_p7 }
 0x1a3   : > { %7926 = shalt.err (!%p7923_p5)
}
 0x1a4   : > { %s7927_s3 = scalar_lea.vmem %s8814_s9, 1024  ;;  %s8155_s0 = smov [#allocation16]  }
 0x1a5   : > { %p7928_p6 = scmp.ne.s32.totalorder %s8814_s9, %s7927_s3  ;;  %s7931_s16 = sshll.u32 %s8155_s0, 4  ;;  %s7932_s16 = int_to_ptr.vmem [resolvable:$false] %s7931_s16 }
 0x1a6   : > { %s7933_s20 = scalar_lea.vmem %s7932_s16, 2048  ;;  %p7934_p11 = scmp.lt.s32.totalorder %s8814_s9, %s7932_s16 }
 0x1a7   : > { %p7929_p9 = pnand %p7928_p6, %p8388_p0  ;;  %p7935_p12 = scmp.lt.s32.totalorder %s7933_s20, %s7927_s3 }
 0x1a9   : > { %p7930_p10 = pneg %p7929_p9  ;;  %p7936_p13 = por %p7935_p12, %p7934_p11 }
 0x1ab   : > { %p7937_p2 = pnand %p7936_p13, %p7930_p10 }
 0x1ad   : > { %7940 = shalt.err (!%p7937_p2)
}
 0x1ae   : > { %s9954_s2 = scalar_lea.sflag [#allocation15], %s8406_s28  ;;  %s1181_s6 = scalar_lea.vmem [#allocation19], %s8608_s25 }
 0x1af   : > { %7207 = dma.hbm_to_vmem [thread:$0]  (%p8388_p0), %s8786_s17, 1024, %s8814_s9, %s9954_s2, %s9935_s13, %s9935_s13, %s9934_s11  }
 0x1b0   : > { %s1191_s4 = sshll.u32 %s1181_s6, 4  ;;  %s9955_s15 = sld [smem:[#allocation76_spill]]  ;;  %s8848_s4 = int_to_ptr.vmem [resolvable:$true] %s1191_s4 }
 0x1b1   : > { %s7941_s7 = scalar_lea.hbm %s8820_s21, 2048  ;;  %s7945_s3 = scalar_lea.hbm %s9953_s14, 4096 }
 0x1b2   : > { %p7942_p3 = scmp.ne.s32.totalorder %s8820_s21, %s7941_s7  ;;  %p7946_p8 = scmp.lt.s32.totalorder %s8820_s21, %s9953_s14 }
 0x1b3   : > { %p7947_p1 = scmp.lt.s32.totalorder %s7945_s3, %s7941_s7 }
 0x1b4   : > { %p7943_p7 = pnand %p7942_p3, %p8388_p0 }
 0x1b5   : > { %p7948_p5 = por %p7947_p1, %p7946_p8 }
 0x1b6   : > { %s8854_s8 = scalar_lea.hbm %s9955_s15, %s8479_s22  ;;  %p7944_p4 = pneg %p7943_p7 }
 0x1b8   : > { %p7949_p6 = pnand %p7948_p5, %p7944_p4 }
 0x1ba   : > { %7952 = shalt.err (!%p7949_p6)
}
 0x1bb   : > { %s7953_s13 = scalar_lea.vmem %s8848_s4, 2048  ;;  %s8156_s25 = smov [#allocation19]  }
 0x1bc   : > { %p7954_p9 = scmp.ne.s32.totalorder %s8848_s4, %s7953_s13  ;;  %s7957_s17 = sshll.u32 %s8156_s25, 4  ;;  %s7958_s17 = int_to_ptr.vmem [resolvable:$false] %s7957_s17 }
 0x1bd   : > { %s7959_s9 = scalar_lea.vmem %s7958_s17, 4096  ;;  %p7960_p12 = scmp.lt.s32.totalorder %s8848_s4, %s7958_s17 }
 0x1be   : > { %p7955_p10 = pnand %p7954_p9, %p8388_p0  ;;  %p7961_p13 = scmp.lt.s32.totalorder %s7959_s9, %s7953_s13 }
 0x1c0   : > { %p7956_p11 = pneg %p7955_p10  ;;  %p7962_p2 = por %p7961_p13, %p7960_p12 }
 0x1c2   : > { %p7963_p3 = pnand %p7962_p2, %p7956_p11 }
 0x1c4   : > { %7966 = shalt.err (!%p7963_p3)
}
 0x1c5   : > { %s9956_s16 = scalar_lea.sflag [#allocation18], %s8406_s28  ;;  %s1241_s20 = scalar_lea.vmem [#allocation22], %s8474_s29 }
 0x1c6   : > { %7209 = dma.hbm_to_vmem [thread:$0]  (%p8388_p0), %s8820_s21, 2048, %s8848_s4, %s9956_s16, %s9944_s5, %s9944_s5, %s9943_s23  }
 0x1c7   : > { %s1251_s2 = sshll.u32 %s1241_s20, 4  ;;  %s6430_s6 = sshll.u32 %s8474_s29, 1  ;;  %s1252_s2 = int_to_ptr.vmem [resolvable:$true] %s1251_s2 }
 0x1c8   : > { %s7967_s27 = scalar_lea.hbm %s8854_s8, 16  ;;  %s7971_s24 = scalar_lea.hbm %s9955_s15, 32 }
 0x1c9   : > { %p7968_p7 = scmp.ne.s32.totalorder %s8854_s8, %s7967_s27  ;;  %p7972_p1 = scmp.lt.s32.totalorder %s8854_s8, %s9955_s15 }
 0x1ca   : > { %p7973_p5 = scmp.lt.s32.totalorder %s7971_s24, %s7967_s27 }
 0x1cb   : > { %p7969_p4 = pnand %p7968_p7, %p8388_p0 }
 0x1cc   : > { %p7974_p6 = por %p7973_p5, %p7972_p1 }
 0x1cd   : > { %p7970_p8 = pneg %p7969_p4 }
 0x1cf   : > { %p7975_p9 = pnand %p7974_p6, %p7970_p8 }
 0x1d1   : > { %7978 = shalt.err (!%p7975_p9)
}
 0x1d2   : > { %s7979_s23 = scalar_lea.vmem %s1252_s2, 16  ;;  %s8157_s5 = smov [#allocation22]  }
 0x1d3   : > { %p7980_p10 = scmp.ne.s32.totalorder %s1252_s2, %s7979_s23  ;;  %s7983_s21 = sshll.u32 %s8157_s5, 4  ;;  %s7984_s21 = int_to_ptr.vmem [resolvable:$false] %s7983_s21 }
 0x1d4   : > { %s7985_s4 = scalar_lea.vmem %s7984_s21, 32  ;;  %p7986_p13 = scmp.lt.s32.totalorder %s1252_s2, %s7984_s21 }
 0x1d5   : > { %p7981_p11 = pnand %p7980_p10, %p8388_p0  ;;  %p7987_p2 = scmp.lt.s32.totalorder %s7985_s4, %s7979_s23 }
 0x1d7   : > { %p7982_p12 = pneg %p7981_p11  ;;  %p7988_p3 = por %p7987_p2, %p7986_p13 }
 0x1d9   : > { %p7989_p7 = pnand %p7988_p3, %p7982_p12 }
 0x1db   : > { %7992 = shalt.err (!%p7989_p7)
}
 0x1dc   : > { %s9957_s0 = scalar_lea.sflag [#allocation21], %s8406_s28  ;;  %s6703_s11 = sshll.u32 %s10012_s26, 5 }
 0x1dd   : > { %7211 = dma.hbm_to_vmem [thread:$0]  (%p8388_p0), %s8854_s8, 16, %s1252_s2, %s9957_s0  }
 0x1de   : > { %s1286_s13 = scalar_lea.vmem [#allocation25], %s6430_s6  ;;  %s9958_s16 = sld [smem:[#allocation78_spill]] }
 0x1df   : > { %s1297_s25 = sshll.u32 %s1286_s13, 4  ;;  %s1298_s25 = int_to_ptr.vmem [resolvable:$true] %s1297_s25 }
 0x1e4   : > { %s1295_s20 = scalar_lea.hbm %s9958_s16, %s6703_s11  ;;  %s7997_s24 = scalar_lea.hbm %s9958_s16, 64 }
 0x1e5   : > { %s7993_s27 = scalar_lea.hbm %s1295_s20, 32  ;;  %p7998_p5 = scmp.lt.s32.totalorder %s1295_s20, %s9958_s16 }
 0x1e6   : > { %p7994_p4 = scmp.ne.s32.totalorder %s1295_s20, %s7993_s27  ;;  %p7999_p6 = scmp.lt.s32.totalorder %s7997_s24, %s7993_s27 }
 0x1e8   : > { %p7995_p8 = pnand %p7994_p4, %p8388_p0  ;;  %p8000_p9 = por %p7999_p6, %p7998_p5 }
 0x1ea   : > { %p7996_p1 = pneg %p7995_p8 }
 0x1ec   : > { %p8001_p10 = pnand %p8000_p9, %p7996_p1 }
 0x1ee   : > { %8004 = shalt.err (!%p8001_p10)
}
 0x1ef   : > { %s8005_s26 = scalar_lea.vmem %s1298_s25, 32  ;;  %s8158_s8 = smov [#allocation25]  }
 0x1f0   : > { %p8006_p11 = scmp.ne.s32.totalorder %s1298_s25, %s8005_s26  ;;  %s8009_s2 = sshll.u32 %s8158_s8, 4  ;;  %s8010_s2 = int_to_ptr.vmem [resolvable:$false] %s8009_s2 }
 0x1f1   : > { %s8011_s6 = scalar_lea.vmem %s8010_s2, 64  ;;  %p8012_p2 = scmp.lt.s32.totalorder %s1298_s25, %s8010_s2 }
 0x1f2   : > { %p8007_p12 = pnand %p8006_p11, %p8388_p0  ;;  %p8013_p3 = scmp.lt.s32.totalorder %s8011_s6, %s8005_s26 }
 0x1f4   : > { %p8008_p13 = pneg %p8007_p12  ;;  %p8014_p7 = por %p8013_p3, %p8012_p2 }
 0x1f6   : > { %p8015_p4 = pnand %p8014_p7, %p8008_p13 }
 0x1f8   : > { %8018 = shalt.err (!%p8015_p4)
}
 0x1f9   : > { %s9959_s23 = scalar_lea.sflag [#allocation24], %s8406_s28  ;;  %s9960_s4 = sld [smem:[#allocation80_spill]] }
 0x1fa   : > { %7213 = dma.hbm_to_vmem [thread:$0]  (%p8388_p0), %s1295_s20, 32, %s1298_s25, %s9959_s23  }
 0x1fb   : > { %s1331_s13 = scalar_lea.vmem [#allocation28], %s8474_s29 }
 0x1fc   : > { %s1341_s17 = sshll.u32 %s1331_s13, 4  ;;  %s1342_s17 = int_to_ptr.vmem [resolvable:$true] %s1341_s17 }
 0x1ff   : > { %s9961_s0 = smov %s9960_s4  ;;  %s1339_s11 = scalar_lea.hbm %s9960_s4, %s8479_s22 }
 0x200   : > { %s8019_s9 = scalar_lea.hbm %s1339_s11, 16  ;;  %s8023_s7 = scalar_lea.hbm %s9961_s0, 32 }
 0x201   : > { %p8020_p8 = scmp.ne.s32.totalorder %s1339_s11, %s8019_s9  ;;  %p8024_p6 = scmp.lt.s32.totalorder %s1339_s11, %s9961_s0 }
 0x202   : > { %p8025_p9 = scmp.lt.s32.totalorder %s8023_s7, %s8019_s9 }
 0x203   : > { %p8021_p1 = pnand %p8020_p8, %p8388_p0 }
 0x204   : > { %p8026_p10 = por %p8025_p9, %p8024_p6 }
 0x205   : > { %p8022_p5 = pneg %p8021_p1 }
 0x207   : > { %p8027_p11 = pnand %p8026_p10, %p8022_p5 }
 0x209   : > { %8030 = shalt.err (!%p8027_p11)
}
 0x20a   : > { %s8031_s29 = scalar_lea.vmem %s1342_s17, 16  ;;  %s8159_s22 = smov [#allocation28]  }
 0x20b   : > { %p8032_p12 = scmp.ne.s32.totalorder %s1342_s17, %s8031_s29  ;;  %s8035_s25 = sshll.u32 %s8159_s22, 4  ;;  %s8036_s25 = int_to_ptr.vmem [resolvable:$false] %s8035_s25 }
 0x20c   : > { %s8037_s20 = scalar_lea.vmem %s8036_s25, 32  ;;  %p8038_p3 = scmp.lt.s32.totalorder %s1342_s17, %s8036_s25 }
 0x20d   : > { %p8033_p13 = pnand %p8032_p12, %p8388_p0  ;;  %p8039_p7 = scmp.lt.s32.totalorder %s8037_s20, %s8031_s29 }
 0x20f   : > { %p8034_p2 = pneg %p8033_p13  ;;  %p8040_p4 = por %p8039_p7, %p8038_p3 }
 0x211   : > { %p8041_p8 = pnand %p8040_p4, %p8034_p2 }
 0x213   : > { %8044 = shalt.err (!%p8041_p8)
}
 0x214   : > { %s9962_s3 = scalar_lea.sflag [#allocation27], %s8406_s28 }
 0x215   : > { %7215 = dma.hbm_to_vmem [thread:$0]  (%p8388_p0), %s1339_s11, 16, %s1342_s17, %s9962_s3  }
 0x216 PF: > { %s9963_s26 = sld [smem:[#allocation42_spill]] }
 0x21c   : > { %p6440_p1 = scmp.ge.s32.totalorder %s9963_s26, 1  ;;  %p1359_p5 = scmp.lt.s32.totalorder %s9963_s26, 5 }
 0x21e   : > { %p1360_p6 = pnand %p6440_p1, %p1359_p5 }
 0x220   : > { %1363 = sbr.rel (%p1360_p6) target bundleno = 6803 (0x1a93), region = 124 }
 0x225   : > { %s9964_s8 = sld [smem:[#allocation40_spill]] }
 0x226   : > { %s9965_s2 = sld [smem:[#allocation45_spill]] }
 0x22b   : > { %s8941_s6 = sand.u32 1, %s9964_s8  }
 0x22c   : > { %s7195_s23 = smul.u32 192, %s8941_s6  ;;  %s1366_s5 = scalar_lea.sflag [#allocation4], %s8941_s6 }
 0x22d   : > { %p9966_p9 = scmp.ne.s32.totalorder %s9965_s2, 0 }
 0x22e   : > { %s8945_s21 = scalar_lea.vmem [#allocation3], %s7195_s23 }
 0x22f   : > { %8074 = dma.done.wait (%p9966_p9), %s1366_s5, 3072  }
 0x230   : > { %8076 = vsyncadd (%p9966_p9), %s1366_s5, 4294964224  ;;  %s9967_s12 = sld [smem:[#allocation43_spill]] }
 0x236   : > { %s8952_s28 = sand.u32 1, %s9967_s12  }
 0x237   : > { %s1375_s4 = scalar_lea.sflag [#allocation6], %s8952_s28 }
 0x238   : > { %8078 = dma.done.wait (%p9966_p9), %s1375_s4, 2064  }
 0x239   : > { %8080 = vsyncadd (%p9966_p9), %s1375_s4, 4294965232  ;;  %s6441_s13 = sshll.u32 %s8941_s6, 7  ;;  %s1392_s9 = scalar_lea.sflag [#allocation9], %s8952_s28 }
 0x23a   : > { %s8961_s17 = scalar_lea.vmem [#allocation7], %s6441_s13  ;;  %s8964_s27 = scalar_lea.vmem [#allocation8], %s6441_s13 }
 0x23b   : > { %8082 = dma.done.wait (%p9966_p9), %s1392_s9, 2064  }
 0x23c   : > { %8084 = vsyncadd (%p9966_p9), %s1392_s9, 4294965232  ;;  %s9968_s10 = sld [smem:[#allocation38_spill]]  ;;  %s1409_s22 = scalar_lea.sflag [#allocation12], %s8952_s28 }
 0x23d   : > { %s9969_s7 = sld [smem:[#allocation47_spill]] }
 0x242   : > { %s8971_s24 = sand.u32 1, %s9968_s10  }
 0x243   : > { %s7196_s1 = smul.u32 192, %s8971_s24  ;;  %p9971_p0 = scmp.ne.s32.totalorder %s9969_s7, 0 }
 0x245   : > { %s8976_s25 = scalar_lea.vmem [#allocation11], %s7196_s1 }
 0x246   : > { %9970 = sst [smem:[#allocation49_spill]] %s8976_s25 }
 0x247   : > { %8086 = dma.done.wait (%p9971_p0), %s1409_s22, 4096  }
 0x248   : > { %8088 = vsyncadd (%p9971_p0), %s1409_s22, 4294963200  ;;  %s6443_s20 = sshll.u32 %s8971_s24, 6  ;;  %s1427_s26 = scalar_lea.sflag [#allocation15], %s8952_s28 }
 0x249   : > { %s8983_s3 = scalar_lea.vmem [#allocation13], %s6443_s20 }
 0x24a   : > { %8090 = dma.done.wait (%p9971_p0), %s1427_s26, 1040  }
 0x24b   : > { %8092 = vsyncadd (%p9971_p0), %s1427_s26, 4294966256  ;;  %s8991_s2 = scalar_lea.vmem [#allocation16], %s6443_s20  ;;  %s1444_s23 = scalar_lea.sflag [#allocation18], %s8952_s28 }
 0x24c   : > { %9972 = sst [smem:[#allocation50_spill]] %s8991_s2 }
 0x24d   : > { %8094 = dma.done.wait (%p9971_p0), %s1444_s23, 2064  }
 0x24e   : > { %8096 = vsyncadd (%p9971_p0), %s1444_s23, 4294965232  ;;  %s6445_s4 = sshll.u32 %s8971_s24, 7  ;;  %s1461_s9 = scalar_lea.sflag [#allocation21], %s8952_s28 }
 0x24f   : > { %s9000_s13 = scalar_lea.vmem [#allocation19], %s6445_s4  ;;  %s9003_s10 = scalar_lea.vmem [#allocation20], %s6443_s20 }
 0x250   : > { %9973 = sst [smem:[#allocation51_spill]] %s9000_s13 }
 0x251   : > { %9974 = sst [smem:[#allocation52_spill]] %s9003_s10 }
 0x252   : > { %8098 = dma.done.wait (%p9971_p0), %s1461_s9, 1040  }
 0x253   : > { %8100 = vsyncadd (%p9971_p0), %s1461_s9, 4294966256  ;;  %s1478_s22 = scalar_lea.sflag [#allocation24], %s8952_s28  ;;  %s9011_s26 = scalar_lea.vmem [#allocation23], %s6445_s4 }
 0x254   : > { %9975 = sst [smem:[#allocation53_spill]] %s9011_s26 }
 0x255   : > { %8102 = dma.done.wait (%p9971_p0), %s1478_s22, 2080  }
 0x256   : > { %8104 = vsyncadd (%p9971_p0), %s1478_s22, 4294965216  ;;  %s6448_s20 = sshll.u32 %s8971_s24, 1  ;;  %s1496_s5 = scalar_lea.sflag [#allocation27], %s8952_s28 }
 0x257   : > { %s9018_s23 = scalar_lea.vmem [#allocation25], %s6448_s20  ;;  %s9021_s9 = scalar_lea.vmem [#allocation26], %s6445_s4 }
 0x258   : > { %9976 = sst [smem:[#allocation54_spill]] %s9018_s23 }
 0x259   : > { %9977 = sst [smem:[#allocation55_spill]] %s9021_s9 }
 0x25a   : > { %8106 = dma.done.wait (%p9971_p0), %s1496_s5, 2064  }
 0x25b   : > { %8108 = vsyncadd (%p9971_p0), %s1496_s5, 4294965232  ;;  %p1693_p10 = scmp.lt.s32.totalorder %s9967_s12, 1  ;;  %s6466_s1 = sadd.s32 4294967294, %s9967_s12 }
 0x25c   : > { %p1738_p11 = scmp.gt.s32.totalorder %s6466_s1, 0  ;;  %p6467_p12 = scmp.lt.s32.totalorder %s6466_s1, 1 }
 0x25d   : > { %s1694_s22 = scalar_select %p1693_p10, %s9967_s12, 1 }
 0x25e   : > { %s10018_s1 = smov (!%p1738_p11, %s6466_s1), 0  ;;  %s9978_s29 = sld [smem:[#allocation60_spill]] }
 0x25f   : > { %s10016_s22 = smov (!%p1693_p10, %s1694_s22), 1  ;;  %s9979_s14 = sld [smem:[#allocation59_spill]] }
 0x260   : > { %s7197_s20 = smul.u32 3, %s10016_s22  ;;  %s6705_s28 = sshll.u32 %s10016_s22, 6 }
 0x261   : > { %s6461_s7 = sshll.u32 %s10016_s22, 1  ;;  %s9980_s19 = sld [smem:[#allocation63_spill]] }
 0x262   : > { %s6465_s23 = sshll.u32 %s10016_s22, 2  ;;  %s9981_s10 = sld [smem:[#allocation66_spill]] }
 0x263   : > { %s10020_s1 = smov (!%p6467_p12, %s10018_s1), 1  ;;  %s9982_s13 = sld [smem:[#allocation74_spill]] }
 0x264   : > { %s9033_s11 = scalar_lea.vmem %s9978_s29, %s6705_s28  ;;  %s7198_s29 = smul.u32 3, %s10020_s1 }
 0x265   : > { %s9038_s15 = scalar_lea.vmem %s9979_s14, %s7197_s20  ;;  %s6478_s8 = sshll.u32 %s10020_s1, 1 }
 0x266   : > { %s6485_s14 = sshll.u32 %s10020_s1, 3  ;;  %s9983_s18 = sld [smem:[#allocation68_spill]] }
 0x267   : > { %s9043_s30 = scalar_lea.vmem %s9980_s19, %s6461_s7  ;;  %s9984_s7 = sld [smem:[#allocation81_spill]] }
 0x268   : > { %s9048_s2 = scalar_lea.vmem %s9981_s10, %s6465_s23  ;;  %s1507_s10 = scalar_lea.vmem [#allocation28], %s8971_s24 }
 0x269   : > { %s9053_s0 = scalar_lea.vmem %s9982_s13, %s6478_s8  ;;  %p6486_p13 = scmp.ne.s32.totalorder %s9967_s12, 0 }
 0x26a   : > { %s9985_s28 = sld [smem:[#allocation56_spill]] (!%p6486_p13) }
 0x26b   : > { %1804 = sbr.rel (%p6486_p13) target bundleno = 627 (0x273), region = 196 }
 0x26c   : > { %s9058_s19 = scalar_lea.vmem %s9983_s18, %s7198_s29 }
 0x26d   : > { %s9063_s26 = scalar_lea.vmem %s9984_s7, %s6485_s14 }
 0x270   : > { %s9986_s25 = smov %s9985_s28  ;;  %v1805_v0 = vld [vmem:[%s9985_s28] sm:$0xff] }
 0x271   : > { %v1806_v1 = vld [vmem:[%s9986_s25 + $0x8] sm:$0x7]  ;;  %1807 = vst [vmem:[#allocation2] sm:$0xff] %v1805_v0 }
 0x272   : > { %1808 = vst [vmem:[#allocation2 + $0x8] sm:$0x7] %v1806_v1 }
 0x273 PF: > { %s9987_s29 = sld [smem:[#allocation43_spill]] }
 0x279   : > { %p6487_p2 = scmp.ge.s32.totalorder %s9987_s29, 2 }
 0x27a   : > { %s8165_s12 = smov (!%p6487_p2), 32   ;;  %s9988_s8 = scalar_lea.vmem (!%p6487_p2), [#allocation5], %s8941_s6 }
 0x27b   : > { %1812 = sbr.rel (%p6487_p2) target bundleno = 2893 (0xb4d), region = 200 }
 0x280   : > { %v7309_v2 = vld [vmem:[%s8945_s21 + $0xac] ss:$12 sps:$4 sm:$0xff]   ;;  %v7311_v3 = vld [vmem:[%s8945_s21 + $0xa8] ss:$12 sps:$4 sm:$0xff]   ;;  %v8160_v4 = vmov 0   ;;  %v8161_v22 = vmov 0.0   ;;  %v1918_v31 = vlaneseq }
 0x281   : > { %2093 = vmatprep.mubr.bf16.mxu0 %v8160_v4  ;;  %2061 = vmatprep.subr.bf16.mxu0 %v7309_v2  ;;  %v7312_v5 = vld [vmem:[%s8945_s21 + $0x94] ss:$12 sps:$4 sm:$0xff]   ;;  %v7314_v6 = vld [vmem:[%s8945_s21 + $0x90] ss:$12 sps:$4 sm:$0xff]   ;;  %v7317_v8 = vld [vmem:[%s8945_s21 + $0x78] ss:$12 sps:$4 sm:$0xff]  }
 0x282   : > { %2062 = vmatpush1.bf16.msra.mxu0 %v7311_v3  ;;  %v7315_v7 = vld [vmem:[%s8945_s21 + $0x7c] ss:$12 sps:$4 sm:$0xff]   ;;  %v7318_v9 = vld [vmem:[%s8945_s21 + $0x64] ss:$12 sps:$4 sm:$0xff]   ;;  %v7320_v10 = vld [vmem:[%s8945_s21 + $0x60] ss:$12 sps:$4 sm:$0xff]   ;;  %6875 = vmatprep.subr.bf16.mxu1 %v8161_v22 }
 0x283   : > { %2063 = vmatprep.subr.bf16.mxu0 %v7312_v5  ;;  %v7321_v11 = vld [vmem:[%s8945_s21 + $0x4c] ss:$12 sps:$4 sm:$0xff]   ;;  %v7323_v12 = vld [vmem:[%s8945_s21 + $0x48] ss:$12 sps:$4 sm:$0xff]   ;;  %v7326_v14 = vld [vmem:[%s8945_s21 + $0x30] ss:$12 sps:$4 sm:$0xff]  }
 0x284   : > { %v7324_v13 = vld [vmem:[%s8945_s21 + $0x34] ss:$12 sps:$4 sm:$0xff]   ;;  %v7327_v15 = vld [vmem:[%s8945_s21 + $0x1c] ss:$12 sps:$4 sm:$0xff]   ;;  %v7329_v16 = vld [vmem:[%s8945_s21 + $0x18] ss:$12 sps:$4 sm:$0xff]  }
 0x285   : > { %v7330_v17 = vld [vmem:[%s8945_s21 + $0x4] ss:$12 sps:$4 sm:$0xff]   ;;  %v7332_v18 = vld [vmem:[%s8945_s21] ss:$12 sps:$4 sm:$0xff]   ;;  %v9093_v20 = vld [vmem:[#allocation2 + $0x8] sm:$0x7] }
 0x286   : > { %2064 = vmatpush1.bf16.msra.mxu0 %v7314_v6  ;;  %v9091_v19 = vld [vmem:[#allocation2] sm:$0xff]  ;;  %vm8162_vm0 = vmmov 0   ;;  %v7334_v24 = vld [vmem:[%s8945_s21 + $0x98] ss:$12 sps:$4 sm:$0xff]   ;;  %v7335_v25 = vld [vmem:[%s8945_s21 + $0x80] ss:$12 sps:$4 sm:$0xff]  }
 0x287   : > { %2065 = vmatprep.subr.bf16.mxu0 %v7315_v7  ;;  %v1916_v21 = vpack.c.bf16 %v9093_v20, %v9091_v19  ;;  %6891 = vmatprep.mubr.msk.bf16.mxu1 %vm8162_vm0, %v8161_v22  ;;  %v7333_v23 = vld [vmem:[%s8945_s21 + $0xb0] ss:$12 sps:$4 sm:$0xff]   ;;  %v7336_v26 = vld [vmem:[%s8945_s21 + $0x68] ss:$12 sps:$4 sm:$0xff]   ;;  %v7338_v28 = vld [vmem:[%s8945_s21 + $0x38] ss:$12 sps:$4 sm:$0xff]  }
 0x288   : > { %6876 = vmatpush3.bf16.msra.mxu1 %v7333_v23  ;;  %v7337_v27 = vld [vmem:[%s8945_s21 + $0x50] ss:$12 sps:$4 sm:$0xff]   ;;  %v7339_v29 = vld [vmem:[%s8945_s21 + $0x20] ss:$12 sps:$4 sm:$0xff]   ;;  %v7340_v30 = vld [vmem:[%s8945_s21 + $0x8] ss:$12 sps:$4 sm:$0xff]  }
 0x289   : > { %6877 = vmatprep.subr.bf16.mxu1 %v8161_v22  ;;  %v9121_v32 = vshrl.u32 %v1918_v31, 7  ;;  %v1847_v34 = vld [vmem:[%s9038_s15] sm:$0x7]  ;;  %vm2148_vm1 = vcmask 261120   ;;  %s8163_s21 = smov 96   ;;  %s8164_s15 = smov 64  }
 0x28a   : > { %2066 = vmatpush1.bf16.msra.mxu0 %v7317_v8  ;;  %vm2453_vm2 = vcmask 1044480   ;;  %vm2361_vm3 = vcmask 1045504   ;;  %v8166_v3 = vmov 65535   ;;  %vm2379_vm4 = vcmask 89088  }
 0x28b   : > { %2067 = vmatprep.subr.bf16.mxu0 %v7318_v9  ;;  %v9124_v33 = vsub.s32 0, %v9121_v32  ;;  %v9128_v35 = vsub.s32 1, %v9121_v32  ;;  %v1928_v49 = vsub.s32 2, %v9121_v32  ;;  %v2454_v5 = vsel %vm2453_vm2, 4294967295, %v8166_v3 }
 0x28c   : > { %6878 = vmatpush3.bf16.msra.mxu1 %v7334_v24  ;;  %v9165_v6 = vsel %vm2361_vm3, %v2454_v5, 0  ;;  %vm2353_vm5 = vcmask 1042432   ;;  %vm2370_vm6 = vcmask 1040384   ;;  %vm2395_vm7 = vcmask 84992  }
 0x28d   : > { %6879 = vmatprep.subr.bf16.mxu1 %v8161_v22  ;;  %v1921_v37 = vrot.slane %v1847_v34, %v9124_v33  ;;  %v1925_v39 = vrot.slane %v1847_v34, %v9128_v35  ;;  %v1929_v50 = vrot.slane %v1847_v34, %v1928_v49  ;;  %vm2501_vm8 = vsmask.f32 2304 }
 0x28e   : > { %2068 = vmatpush1.bf16.msra.mxu0 %v7320_v10 }
 0x28f   : > { %2069 = vmatprep.subr.bf16.mxu0 %v7321_v11 }
 0x290   : > { %6880 = vmatpush3.bf16.msra.mxu1 %v7335_v25 }
 0x291   : > { %6881 = vmatprep.subr.bf16.mxu1 %v8161_v22 }
 0x292   : > { %2070 = vmatpush1.bf16.msra.mxu0 %v7323_v12 }
 0x293   : > { %2071 = vmatprep.subr.bf16.mxu0 %v7324_v13 }
 0x294   : > { %6882 = vmatpush3.bf16.msra.mxu1 %v7336_v26 }
 0x295   : > { %6883 = vmatprep.subr.bf16.mxu1 %v8161_v22 }
 0x296   : > { %2072 = vmatpush1.bf16.msra.mxu0 %v7326_v14 }
 0x297   : > { %2073 = vmatprep.subr.bf16.mxu0 %v7327_v15 }
 0x298   : > { %6884 = vmatpush3.bf16.msra.mxu1 %v7337_v27 }
 0x299   : > { %6885 = vmatprep.subr.bf16.mxu1 %v8161_v22 }
 0x29a   : > { %2074 = vmatpush1.bf16.msra.mxu0 %v7329_v16 }
 0x29b   : > { %2075 = vmatprep.subr.bf16.mxu0 %v7330_v17 }
 0x29c   : > { %6886 = vmatpush3.bf16.msra.mxu1 %v7338_v28 }
 0x29d   : > { %6887 = vmatprep.subr.bf16.mxu1 %v8161_v22 }
 0x29e   : > { %2076 = vmatpush1.bf16.msra.mxu0 %v7332_v18 }
 0x29f   : > { %6895 = vmatprep.subr.bf16.mxu0 %v8161_v22 }
 0x2a0   : > { %6888 = vmatpush3.bf16.msra.mxu1 %v7339_v29 }
 0x2a1   : > { %2094 = vmatmul.mubr.bf16.vlgmr.msra.gmra.mxu0 %v1916_v21  ;;  %6889 = vmatprep.subr.bf16.mxu1 %v8161_v22 }
 0x2a2   : > { %6897 = vmatprep.mubr.msk.bf16.mxu0 %vm8162_vm0, %v8161_v22 }
 0x2a4   : > { %6890 = vmatpush3.bf16.msra.mxu1 %v7340_v30 }
 0x2a5   : > { %6901 = vmatprep.subr.bf16.mxu1 %v8161_v22 }
 0x2a7   : > { %6892 = vmatmul.mubr.bf16.vlgmr.msra.gmra.mxu1 %v1916_v21 }
 0x2a8   : > { %6903 = vmatprep.mubr.msk.bf16.mxu1 %vm8162_vm0, %v8161_v22 }
 0x361   : > { %v2095_v36 = vpop.f32.mrf.mxu0 }
 0x362   : > { %v2096_v41 = vadd.f32 %v2095_v36, %v1921_v37 }
 0x363   : > { %v2097_v38 = vpop.f32.mrf.mxu0 }
 0x364   : > { %v2098_v44 = vadd.f32 %v2097_v38, %v1925_v39 }
 0x365   : > { %v2099_v40 = vpop.f32.mrf.mxu0 }
 0x366   : > { %v2100_v42 = vadd.f32 %v2099_v40, %v1921_v37 }
 0x367   : > { %v2101_v43 = vpop.f32.mrf.mxu0  ;;  %v2138_v51 = vpop.f32.mrf.mxu1 }
 0x368   : > { %v2145_v45 = vpack.c.bf16 %v2100_v42, %v2096_v41  ;;  %v2102_v46 = vadd.f32 %v2101_v43, %v1925_v39  ;;  %v2139_v53 = vadd.f32 %v2138_v51, %v1929_v50 }
 0x369   : > { %v6893_v52 = vpop.f32.mrf.mxu1 }
 0x36a   : > { %v2146_v47 = vpack.c.bf16 %v2102_v46, %v2098_v44  ;;  %2197 = vrot.lane.b32.xlu1 %v2145_v45, %s8163_s21 }
 0x36b   : > { %v2141_v54 = vpop.f32.mrf.mxu1 }
 0x36c   : > { %2200 = vrot.lane.b32.xlu0 %v2146_v47, %s8163_s21  ;;  %v2153_v48 = vsel %vm2148_vm1, %v2146_v47, 0  ;;  %v2142_v55 = vadd.f32 %v2141_v54, %v1929_v50 }
 0x36d   : > { %6896 = vmatpush3.bf16.xpose.msra.mxu0 %v2153_v48  ;;  %v6894_v56 = vpop.f32.mrf.mxu1 }
 0x36e   : > { %2249 = vrot.lane.b32.xlu1 %v2145_v45, %s8164_s15  ;;  %6907 = vmatprep.subr.bf16.mxu0 %v8161_v22  ;;  %v9146_v57 = vpack.c.bf16 %v2142_v55, %v2139_v53 }
 0x370   : > { %2251 = vrot.lane.b32.xlu0 %v2146_v47, %s8164_s15  ;;  %v2457_v7 = vand.u32 %v9165_v6, %v9146_v57 }
 0x372   : > { %2300 = vrot.lane.b32.xlu1 %v2145_v45, %s8165_s12 }
 0x374   : > { %2302 = vrot.lane.b32.xlu0 %v2146_v47, %s8165_s12  ;;  %6898 = vmatmul.mubr.msk.bf16.vlgmr.msra.gmra.mxu0 %vm2148_vm1, %v2145_v45 }
 0x375   : > { %6909 = vmatprep.mubr.msk.bf16.mxu0 %vm8162_vm0, %v8161_v22 }
 0x3dc   : > { %v2198_v60 = vpop.permute.xlu1 %2197 }
 0x3de   : > { %v2201_v58 = vpop.permute.xlu0 %2200 }
 0x3df   : > { %v2206_v59 = vsel %vm2148_vm1, %v2201_v58, 0 }
 0x3e0   : > { %6902 = vmatpush3.bf16.xpose.msra.mxu1 %v2206_v59  ;;  %v2250_v1 = vpop.permute.xlu1 %2249 }
 0x3e1   : > { %6913 = vmatprep.subr.bf16.mxu1 %v8161_v22 }
 0x3e2   : > { %v2252_v61 = vpop.permute.xlu0 %2251 }
 0x3e3   : > { %v2257_v62 = vsel %vm2148_vm1, %v2252_v61, 0 }
 0x3e4   : > { %6908 = vmatpush3.bf16.xpose.msra.mxu0 %v2257_v62  ;;  %v2301_v2 = vpop.permute.xlu1 %2300 }
 0x3e5   : > { %6919 = vmatprep.subr.bf16.mxu0 %v8161_v22 }
 0x3e6   : > { %v2303_v63 = vpop.permute.xlu0 %2302 }
 0x3e7   : > { %v2308_v0 = vsel %vm2148_vm1, %v2303_v63, 0  ;;  %6904 = vmatmul.mubr.msk.bf16.vlgmr.msra.gmra.mxu1 %vm2148_vm1, %v2198_v60 }
 0x3e8   : > { %6914 = vmatpush3.bf16.xpose.msra.mxu1 %v2308_v0  ;;  %6915 = vmatprep.mubr.msk.bf16.mxu1 %vm8162_vm0, %v8161_v22 }
 0x3e9   : > { %6925 = vmatprep.subr.bf16.mxu1 %v8161_v22 }
 0x3eb   : > { %6910 = vmatmul.mubr.msk.bf16.vlgmr.msra.gmra.mxu0 %vm2148_vm1, %v2250_v1 }
 0x3ec   : > { %6921 = vmatprep.mubr.msk.bf16.mxu0 %vm8162_vm0, %v8161_v22  ;;  %6920 = vmatpush3.bf16.msra.mxu0 %v2457_v7 }
 0x3ed   : > { %6931 = vmatprep.subr.bf16.mxu0 %v8161_v22 }
 0x3ef   : > { %6916 = vmatmul.mubr.msk.bf16.vlgmr.msra.gmra.mxu1 %vm2148_vm1, %v2301_v2 }
 0x3f0   : > { %6927 = vmatprep.mubr.msk.bf16.mxu1 %vm8162_vm0, %v8161_v22 }
 0x434   : > { %v2189_v8 = vpop.f32.mrf.mxu0 }
 0x435   : > { %v2380_v9 = vsel %vm2379_vm4, %v2189_v8, -inf }
 0x436   : > { %2381 = vmax.xlane.f32.xlu0 %v2380_v9  ;;  %v6899_v10 = vpop.f32.mrf.mxu0 }
 0x438   : > { %v2192_v11 = vpop.f32.mrf.mxu0 }
 0x43a   : > { %v6900_v12 = vpop.f32.mrf.mxu0 }
 0x4a7   : > { %v2242_v13 = vpop.f32.mrf.mxu1 }
 0x4a8   : > { %v2354_v14 = vrot.slane %v2242_v13, 5 }
 0x4a9   : > { %v6905_v15 = vpop.f32.mrf.mxu1 }
 0x4aa   : > { %v2376_v16 = vsel %vm2353_vm5, %v2192_v11, %v2354_v14 }
 0x4ab   : > { %v2245_v17 = vpop.f32.mrf.mxu1  ;;  %v2293_v18 = vpop.f32.mrf.mxu0  ;;  %v2383_v21 = vsel %vm2379_vm4, %v2376_v16, -inf }
 0x4ac   : > { %v2355_v23 = vrot.slane %v2245_v17, 5  ;;  %v2362_v24 = vrot.slane %v2293_v18, 2  ;;  %2384 = vmax.xlane.f32.xlu1 %v2383_v21 }
 0x4ad   : > { %v6906_v25 = vpop.f32.mrf.mxu1  ;;  %v6911_v26 = vpop.f32.mrf.mxu0 }
 0x4ae   : > { %v2356_v27 = vsel %vm2353_vm5, %v2354_v14, %v2355_v23 }
 0x4af   : > { %v2296_v28 = vpop.f32.mrf.mxu0  ;;  %v2344_v29 = vpop.f32.mrf.mxu1  ;;  %v2377_v30 = vsel %vm2361_vm3, %v2356_v27, %v2362_v24 }
 0x4b0   : > { %v2363_v31 = vrot.slane %v2296_v28, 2  ;;  %v2371_v34 = vrot.slane %v2344_v29, 7  ;;  %v2386_v36 = vsel %vm2379_vm4, %v2377_v30, -inf }
 0x4b1   : > { %v6917_v37 = vpop.f32.mrf.mxu1  ;;  %2387 = vmax.xlane.f32.xlu0 %v2386_v36  ;;  %v6912_v38 = vpop.f32.mrf.mxu0 }
 0x4b2   : > { %v2364_v39 = vsel %vm2361_vm3, %v2362_v24, %v2363_v31  ;;  %v2378_v40 = vsel %vm2370_vm6, %v2363_v31, %v2371_v34 }
 0x4b3   : > { %v2347_v41 = vpop.f32.mrf.mxu1  ;;  %v2389_v42 = vsel %vm2379_vm4, %v2364_v39, -inf  ;;  %v2392_v5 = vsel %vm2379_vm4, %v2378_v40, -inf }
 0x4b4   : > { %v2372_v43 = vrot.slane %v2347_v41, 7 }
 0x4b5   : > { %v6918_v44 = vpop.f32.mrf.mxu1  ;;  %2390 = vmax.xlane.f32.xlu0 %v2389_v42 }
 0x4b6   : > { %v2373_v45 = vsel %vm2370_vm6, %v2371_v34, %v2372_v43 }
 0x4b7   : > { %v2396_v7 = vsel %vm2395_vm7, %v2373_v45, -inf }
 0x4bf   : > { %v2382_v46 = vpop.xlane.xlu0 %2381 }
 0x4c0   : > { %v2399_v47 = vsub.f32 %v2189_v8, %v2382_v46 }
 0x4c2   : > { %v2405_v48 = vmul.f32 1.442695, %v2399_v47 }
 0x4c4   : > { %7389 = vpow2.f32 %v2405_v48 }
 0x4d1   : > { %v7390_v50 = vpop.eup %7389 }
 0x4d2   : > { %v2417_v51 = vsel %vm2379_vm4, %v7390_v50, 0.0 }
 0x4d3   : > { %2418 = vadd.xlane.f32.xlu1 %v2417_v51 }
 0x535   : > { %v2385_v52 = vpop.xlane.xlu1 %2384 }
 0x536   : > { %v2400_v53 = vsub.f32 %v2376_v16, %v2385_v52  ;;  %v7341_v52 = vld [vmem:[%s9033_s11 + $0x8] sm:$0xff]  }
 0x538   : > { %v2407_v54 = vmul.f32 1.442695, %v2400_v53  ;;  %v7342_v53 = vld [vmem:[%s9033_s11] sm:$0xff]  }
 0x53a   : > { %7391 = vpow2.f32 %v2407_v54  ;;  %v2388_v55 = vpop.xlane.xlu0 %2387  ;;  %v7343_v54 = vld [vmem:[%s9033_s11 + $0x18] sm:$0xff]  }
 0x53b   : > { %v2401_v56 = vsub.f32 %v2377_v30, %v2388_v55  ;;  %v7344_v55 = vld [vmem:[%s9033_s11 + $0x10] sm:$0xff]  }
 0x53d   : > { %v2409_v58 = vmul.f32 1.442695, %v2401_v56 }
 0x53e   : > { %v2391_v59 = vpop.xlane.xlu0 %2390 }
 0x53f   : > { %7393 = vpow2.f32 %v2409_v58  ;;  %v2402_v60 = vsub.f32 %v2364_v39, %v2391_v59 }
 0x541   : > { %v2411_v61 = vmul.f32 1.442695, %v2402_v60 }
 0x543   : > { %7395 = vpow2.f32 %v2411_v61 }
 0x547   : > { %v7392_v62 = vpop.eup %7391 }
 0x548   : > { %v2420_v63 = vsel %vm2379_vm4, %v7392_v62, 0.0 }
 0x549   : > { %2421 = vadd.xlane.f32.xlu0 %v2420_v63 }
 0x54c   : > { %v7394_v0 = vpop.eup %7393 }
 0x54d   : > { %v2423_v1 = vsel %vm2379_vm4, %v7394_v0, 0.0 }
 0x54e   : > { %2424 = vadd.xlane.f32.xlu1 %v2423_v1 }
 0x550   : > { %v7396_v2 = vpop.eup %7395 }
 0x551   : > { %v2426_v3 = vsel %vm2379_vm4, %v7396_v2, 0.0 }
 0x552   : > { %2427 = vadd.xlane.f32.xlu0 %v2426_v3 }
 0x556   : > { %2393 = vmax.xlane.f32.xlu0 %v2392_v5 }
 0x55a   : > { %2397 = vmax.xlane.f32.xlu0 %v2396_v7 }
 0x55c   : > { %v2419_v8 = vpop.xlane.xlu1 %2418 }
 0x55d   : > { %7397 = vrcp.f32 %v2419_v8 }
 0x55f   : > { %2519 = vrot.lane.b32.xlu1 %v9146_v57, %s8163_s21 }
 0x563   : > { %2687 = vrot.lane.b32.xlu1 %v9146_v57, %s8164_s15 }
 0x56a   : > { %v7398_v14 = vpop.eup %7397 }
 0x56b   : > { %v2441_v18 = vmul.f32 %v7398_v14, %v7390_v50 }
 0x5d2   : > { %v2422_v9 = vpop.xlane.xlu0 %2421 }
 0x5d3   : > { %7399 = vrcp.f32 %v2422_v9 }
 0x5d7   : > { %v2425_v10 = vpop.xlane.xlu1 %2424 }
 0x5d8   : > { %7401 = vrcp.f32 %v2425_v10 }
 0x5db   : > { %v2520_v11 = vpop.permute.xlu1 %2519  ;;  %v2428_v12 = vpop.xlane.xlu0 %2427 }
 0x5dc   : > { %v2525_v13 = vand.u32 %v2520_v11, %v9165_v6  ;;  %7403 = vrcp.f32 %v2428_v12 }
 0x5de   : > { %6926 = vmatpush3.bf16.msra.mxu1 %v2525_v13 }
 0x5df   : > { %v2394_v15 = vpop.xlane.xlu0 %2393  ;;  %6939 = vmatprep.subr.bf16.mxu1 %v8161_v22  ;;  %v2688_v5 = vpop.permute.xlu1 %2687 }
 0x5e0   : > { %v7400_v16 = vpop.eup %7399  ;;  %v2403_v17 = vsub.f32 %v2378_v40, %v2394_v15  ;;  %v2693_v10 = vand.u32 %v2688_v5, %v9165_v6 }
 0x5e1   : > { %v2442_v21 = vmul.f32 %v7400_v16, %v7392_v62 }
 0x5e2   : > { %v2413_v23 = vmul.f32 1.442695, %v2403_v17 }
 0x5e3   : > { %v2398_v24 = vpop.xlane.xlu0 %2397  ;;  %v2447_v25 = vpack.c.bf16 %v2442_v21, %v2441_v18 }
 0x5e4   : > { %7405 = vpow2.f32 %v2413_v23  ;;  %v2404_v26 = vsub.f32 %v2373_v45, %v2398_v24 }
 0x5e5   : > { %6922 = vmatmul.mubr.msk.bf16.vlgmr.msra.gmra.mxu0 %vm2379_vm4, %v2447_v25  ;;  %v7402_v28 = vpop.eup %7401  ;;  %v2502_v34 = vshrl.u32 %v2447_v25, 16  ;;  %v2505_v36 = vshll.u32 %v2447_v25, 16  ;;  %v7345_v25 = vld [vmem:[%s9033_s11 + $0x28] sm:$0xff]  }
 0x5e6   : > { %v2415_v27 = vmul.f32 1.442695, %v2404_v26  ;;  %6935 = vmatprep.mubr.msk.bf16.mxu0 %vm8162_vm0, %v8161_v22  ;;  %v2443_v30 = vmul.f32 %v7402_v28, %v7394_v0  ;;  %6932 = vmatpush3.bf16.msra.mxu0 %v7343_v54 }
 0x5e7   : > { %v2504_v38 = vrot.slane %v2502_v34, 5  ;;  %v2507_v39 = vrot.slane %v2505_v36, 6  ;;  %6933 = vmatprep.subr.bf16.mxu0 %v8161_v22 }
 0x5e8   : > { %7407 = vpow2.f32 %v2415_v27 }
 0x5e9   : > { %v7404_v29 = vpop.eup %7403  ;;  %v2508_v46 = vor.u32 %v2507_v39, %v2504_v38 }
 0x5ea   : > { %v2444_v31 = vmul.f32 %v7404_v29, %v7396_v2  ;;  %6934 = vmatpush3.bf16.msra.mxu0 %v7344_v55 }
 0x5eb   : > { %6947 = vmatprep.subr.bf16.mxu0 %v8161_v22 }
 0x5ec   : > { %v9193_v37 = vpack.c.bf16 %v2444_v31, %v2443_v30 }
 0x5ee   : > { %v2510_v40 = vshrl.u32 %v9193_v37, 16  ;;  %v2513_v41 = vshll.u32 %v9193_v37, 16  ;;  %v2684_v15 = vrot.slane %v9193_v37, 3 }
 0x5f0   : > { %v2512_v42 = vrot.slane %v2510_v40, 5  ;;  %v2515_v43 = vrot.slane %v2513_v41, 6  ;;  %v7347_v41 = vld [vmem:[%s9033_s11 + $0x38] sm:$0xff]  }
 0x5f1   : > { %v7406_v44 = vpop.eup %7405 }
 0x5f2   : > { %v2429_v45 = vsel %vm2379_vm4, %v7406_v44, 0.0  ;;  %v2516_v47 = vor.u32 %v2515_v43, %v2512_v42 }
 0x5f3   : > { %2430 = vadd.xlane.f32.xlu0 %v2429_v45  ;;  %v7348_v45 = vld [vmem:[%s9033_s11 + $0x30] sm:$0xff]  }
 0x5f4   : > { %v2517_v48 = vsel %vm2501_vm8, %v2508_v46, %v2516_v47 }
 0x5f5   : > { %v7408_v50 = vpop.eup %7407  ;;  %6928 = vmatmul.mubr.msk.bf16.vlgmr.msra.gmra.mxu1 %vm2379_vm4, %v2517_v48 }
 0x5f6   : > { %v2432_v51 = vsel %vm2395_vm7, %v7408_v50, 0.0  ;;  %6943 = vmatprep.mubr.msk.bf16.mxu1 %vm8162_vm0, %v8161_v22  ;;  %6940 = vmatpush3.bf16.msra.mxu1 %v7341_v52 }
 0x5f7   : > { %2433 = vadd.xlane.f32.xlu0 %v2432_v51  ;;  %6941 = vmatprep.subr.bf16.mxu1 %v8161_v22 }
 0x5fa   : > { %6942 = vmatpush3.bf16.msra.mxu1 %v7342_v53 }
 0x5fb   : > { %6953 = vmatprep.subr.bf16.mxu1 %v8161_v22 }
 0x60d   : > { %2802 = vrot.lane.b32.xlu0 %v9146_v57, %s8165_s12 }
 0x67c   : > { %v2431_v56 = vpop.xlane.xlu0 %2430 }
 0x680   : > { %v2434_v58 = vpop.xlane.xlu0 %2433 }
 0x681   : > { %7409 = vrcp.f32 %v2434_v58 }
 0x682   : > { %7411 = vrcp.f32 %v2431_v56  ;;  %v6532_v56 = vld [vmem:[%s9988_s8] ss:$0 sm:$0xff] }
 0x684   : > { %v2803_v14 = vpop.permute.xlu0 %2802 }
 0x685   : > { %v2808_v17 = vand.u32 %v2803_v14, %v9165_v6  ;;  %v7346_v6 = vld [vmem:[%s9033_s11 + $0x20] sm:$0xff]  }
 0x686   : > { %v7360_v14 = vld [vmem:[%s8961_s17 + $0x44] ss:$8 sps:$4 sm:$0xff]  }
 0x68e   : > { %v7410_v63 = vpop.eup %7409 }
 0x68f   : > { %v7412_v1 = vpop.eup %7411  ;;  %v2446_v2 = vmul.f32 %v7410_v63, %v7408_v50 }
 0x690   : > { %v2445_v7 = vmul.f32 %v7412_v1, %v7406_v44 }
 0x692   : > { %v2449_v12 = vpack.c.bf16 %v2446_v2, %v2445_v7 }
 0x694   : > { %v2685_v13 = vrot.slane %v2449_v12, 3  ;;  %v2798_v16 = vshll.u32 %v2449_v12, 16  ;;  %v2796_v23 = vshrl.u32 %v2449_v12, 16  ;;  %v7355_v12 = vld [vmem:[%s8961_s17 + $0x50] ss:$8 sps:$4 sm:$0xff]  }
 0x696   : > { %v2686_v18 = vsel %vm2453_vm2, %v2684_v15, %v2685_v13  ;;  %v2800_v21 = vrot.slane %v2798_v16, 1  ;;  %v7358_v13 = vld [vmem:[%s8961_s17 + $0x40] ss:$8 sps:$4 sm:$0xff]   ;;  %v7363_v15 = vld [vmem:[%s8961_s17 + $0x34] ss:$8 sps:$4 sm:$0xff]  }
 0x697   : > { %v7361_v16 = vld [vmem:[%s8961_s17 + $0x30] ss:$8 sps:$4 sm:$0xff]  }
 0x698   : > { %v2801_v24 = vor.u32 %v2800_v21, %v2796_v23  ;;  %v7369_v21 = vld [vmem:[%s8961_s17 + $0x14] ss:$8 sps:$4 sm:$0xff]   ;;  %v7367_v23 = vld [vmem:[%s8961_s17 + $0x10] ss:$8 sps:$4 sm:$0xff]  }
 0x6a5   : > { %v2493_v59 = vpop.f32.mrf.mxu0 }
 0x6a7   : > { %v6923_v57 = vpop.f32.mrf.mxu0 }
 0x6a9   : > { %v2496_v60 = vpop.f32.mrf.mxu0 }
 0x6aa   : > { %v2500_v61 = vpack.c.bf16 %v2496_v60, %v2493_v59 }
 0x6ab   : > { %v6924_v62 = vpop.f32.mrf.mxu0 }
 0x6ac   : > { %6944 = vmatmul.mubr.msk.bf16.vlgmr.msra.gmra.mxu1 %vm2148_vm1, %v2500_v61 }
 0x6ad   : > { %6957 = vmatprep.mubr.msk.bf16.mxu1 %vm8162_vm0, %v8161_v22  ;;  %6954 = vmatpush3.bf16.msra.mxu1 %v7345_v25  ;;  %v7370_v25 = vld [vmem:[%s8961_s17] ss:$8 sps:$4 sm:$0xff]  }
 0x6ae   : > { %6955 = vmatprep.subr.bf16.mxu1 %v8161_v22 }
 0x6b1   : > { %6956 = vmatpush3.bf16.msra.mxu1 %v7346_v6  ;;  %v7373_v6 = vld [vmem:[%s8964_s27 + $0x78] sm:$0xff]  }
 0x6b2   : > { %6967 = vmatprep.subr.bf16.mxu1 %v8161_v22 }
 0x6b5   : > { %v2561_v0 = vpop.f32.mrf.mxu1 }
 0x6b7   : > { %v6929_v3 = vpop.f32.mrf.mxu1 }
 0x6b9   : > { %v2564_v8 = vpop.f32.mrf.mxu1 }
 0x6ba   : > { %v2568_v9 = vpack.c.bf16 %v2564_v8, %v2561_v0  ;;  %v7349_v8 = vld [vmem:[%s8961_s17 + $0x70] ss:$8 sps:$4 sm:$0xff]  }
 0x6bb   : > { %v6930_v11 = vpop.f32.mrf.mxu1 }
 0x6bc   : > { %6936 = vmatmul.mubr.msk.bf16.vlgmr.msra.gmra.mxu0 %vm2148_vm1, %v2568_v9  ;;  %v7354_v9 = vld [vmem:[%s8961_s17 + $0x64] ss:$8 sps:$4 sm:$0xff]   ;;  %v7357_v11 = vld [vmem:[%s8961_s17 + $0x54] ss:$8 sps:$4 sm:$0xff]  }
 0x6bd   : > { %6948 = vmatpush3.bf16.msra.mxu0 %v2693_v10  ;;  %6949 = vmatprep.mubr.msk.bf16.mxu0 %vm8162_vm0, %v8161_v22  ;;  %v7352_v10 = vld [vmem:[%s8961_s17 + $0x60] ss:$8 sps:$4 sm:$0xff]  }
 0x6be   : > { %6961 = vmatprep.subr.bf16.mxu0 %v8161_v22 }
 0x6c4   : > { %6950 = vmatmul.mubr.msk.bf16.vlgmr.msra.gmra.mxu0 %vm2379_vm4, %v2686_v18  ;;  %v7364_v18 = vld [vmem:[%s8961_s17 + $0x20] ss:$8 sps:$4 sm:$0xff]  }
 0x6c5   : > { %6962 = vmatpush3.bf16.msra.mxu0 %v2808_v17  ;;  %6963 = vmatprep.mubr.msk.bf16.mxu0 %vm8162_vm0, %v8161_v22  ;;  %v7366_v17 = vld [vmem:[%s8961_s17 + $0x24] ss:$8 sps:$4 sm:$0xff]  }
 0x6cc   : > { %6964 = vmatmul.mubr.msk.bf16.vlgmr.msra.gmra.mxu0 %vm2379_vm4, %v2801_v24  ;;  %v7372_v24 = vld [vmem:[%s8961_s17 + $0x4] ss:$8 sps:$4 sm:$0xff]  }
 0x6cd   : > { %3085 = vmatprep.mubr.bf16.mxu0 %v8160_v4 }
 0x76c   : > { %v2674_v26 = vpop.f32.mrf.mxu1 }
 0x76e   : > { %v6945_v27 = vpop.f32.mrf.mxu1 }
 0x76f   : > { %v7375_v27 = vld [vmem:[%s8964_s27 + $0x70] sm:$0xff]  }
 0x770   : > { %v2677_v28 = vpop.f32.mrf.mxu1 }
 0x772   : > { %v6946_v29 = vpop.f32.mrf.mxu1 }
 0x773   : > { %v7377_v29 = vld [vmem:[%s8964_s27 + $0x68] sm:$0xff]  }
 0x77c   : > { %v2618_v30 = vpop.f32.mrf.mxu0 }
 0x77d   : > { %v2675_v31 = vadd.f32 %v2674_v26, %v2618_v30  ;;  %v7374_v26 = vld [vmem:[%s8964_s27 + $0x38] sm:$0xff]   ;;  %v7378_v30 = vld [vmem:[%s8964_s27 + $0x28] sm:$0xff]  }
 0x77e   : > { %v6937_v34 = vpop.f32.mrf.mxu0 }
 0x77f   : > { %v7380_v34 = vld [vmem:[%s8964_s27 + $0x20] sm:$0xff]  }
 0x780   : > { %v2621_v36 = vpop.f32.mrf.mxu0 }
 0x781   : > { %v2678_v37 = vadd.f32 %v2677_v28, %v2621_v36  ;;  %v7376_v28 = vld [vmem:[%s8964_s27 + $0x30] sm:$0xff]   ;;  %v7381_v36 = vld [vmem:[%s8964_s27 + $0x58] sm:$0xff]  }
 0x782   : > { %v6938_v4 = vpop.f32.mrf.mxu0 }
 0x784   : > { %v2729_v38 = vpop.f32.mrf.mxu0 }
 0x786   : > { %v6951_v39 = vpop.f32.mrf.mxu0 }
 0x788   : > { %v2732_v40 = vpop.f32.mrf.mxu0 }
 0x789   : > { %v2736_v42 = vpack.c.bf16 %v2732_v40, %v2729_v38 }
 0x78a   : > { %v6952_v43 = vpop.f32.mrf.mxu0 }
 0x78b   : > { %6958 = vmatmul.mubr.msk.bf16.vlgmr.msra.gmra.mxu1 %vm2148_vm1, %v2736_v42 }
 0x78c   : > { %v2844_v44 = vpop.f32.mrf.mxu0  ;;  %6968 = vmatpush3.bf16.msra.mxu1 %v7347_v41  ;;  %6971 = vmatprep.mubr.msk.bf16.mxu1 %vm8162_vm0, %v8161_v22 }
 0x78d   : > { %6969 = vmatprep.subr.bf16.mxu1 %v8161_v22 }
 0x78e   : > { %v6965_v46 = vpop.f32.mrf.mxu0 }
 0x790   : > { %v2847_v47 = vpop.f32.mrf.mxu0  ;;  %6970 = vmatpush3.bf16.msra.mxu1 %v7348_v45 }
 0x791   : > { %v2851_v48 = vpack.c.bf16 %v2847_v47, %v2844_v44  ;;  %6749 = vmatprep.subr.bf16.mxu1 %v7373_v6 }
 0x792   : > { %v6966_v50 = vpop.f32.mrf.mxu0 }
 0x793   : > { %6972 = vmatmul.mubr.msk.bf16.vlgmr.msra.gmra.mxu1 %vm2148_vm1, %v2851_v48 }
 0x794   : > { %6750 = vmatpush3.bf16.msra.mxu1 %v7374_v26 }
 0x795   : > { %6751 = vmatprep.subr.bf16.mxu1 %v7375_v27 }
 0x798   : > { %6752 = vmatpush3.bf16.msra.mxu1 %v7376_v28 }
 0x799   : > { %6753 = vmatprep.subr.bf16.mxu1 %v7377_v29 }
 0x79c   : > { %6754 = vmatpush3.bf16.msra.mxu1 %v7378_v30 }
 0x84b   : > { %v2786_v51 = vpop.f32.mrf.mxu1 }
 0x84c   : > { %v2793_v55 = vadd.f32 %v2786_v51, %v2675_v31  ;;  %v7379_v31 = vld [vmem:[%s8964_s27 + $0x60] sm:$0xff]  }
 0x84d   : > { %v6959_v52 = vpop.f32.mrf.mxu1  ;;  %6755 = vmatprep.subr.bf16.mxu1 %v7379_v31 }
 0x84e   : > { %6756 = vmatpush3.bf16.msra.mxu1 %v7380_v34  ;;  %v9282_v52 = vld [vmem:[%s9048_s2] sm:$0xf] }
 0x84f   : > { %v2789_v53 = vpop.f32.mrf.mxu1  ;;  %6757 = vmatprep.subr.bf16.mxu1 %v7381_v36 }
 0x850   : > { %v2794_v60 = vadd.f32 %v2789_v53, %v2678_v37  ;;  %v7382_v37 = vld [vmem:[%s8964_s27 + $0x18] sm:$0xff]  }
 0x851   : > { %v6960_v54 = vpop.f32.mrf.mxu1 }
 0x852   : > { %6758 = vmatpush3.bf16.msra.mxu1 %v7382_v37 }
 0x853   : > { %v2901_v58 = vpop.f32.mrf.mxu1 }
 0x854   : > { %v2908_v59 = vadd.f32 %v2901_v58, %v2793_v55 }
 0x855   : > { %v6973_v57 = vpop.f32.mrf.mxu1 }
 0x856   : > { %v2916_v22 = vadd.f32 %v6532_v56, %v2908_v59 }
 0x857   : > { %v2904_v61 = vpop.f32.mrf.mxu1 }
 0x858   : > { %v2909_v62 = vadd.f32 %v2904_v61, %v2794_v60  ;;  %v9242_v63 = vadd.f32 %v2916_v22, %v9091_v19  ;;  %v2958_v22 = vrot.slane %v9282_v52, %v9128_v35 }
 0x859   : > { %v6974_v0 = vpop.f32.mrf.mxu1 }
 0x85a   : > { %v2917_v1 = vadd.f32 %v6532_v56, %v2909_v62  ;;  %2920 = vadd.xlane.f32.xlu1 %v9242_v63  ;;  %v2928_v3 = vmul.f32 %v9242_v63, %v9242_v63  ;;  %v2952_v56 = vrot.slane %v9282_v52, %v9124_v33 }
 0x85c   : > { %v9246_v2 = vadd.f32 %v2917_v1, %v9093_v20  ;;  %v7351_v20 = vld [vmem:[%s8961_s17 + $0x74] ss:$8 sps:$4 sm:$0xff]  }
 0x85d   : > { %3053 = vmatprep.subr.bf16.mxu0 %v7351_v20  ;;  %v7383_v1 = vld [vmem:[%s8964_s27 + $0x50] sm:$0xff]   ;;  %v1881_v20 = vld [vmem:[%s9043_s30] sm:$0x3]  ;;  %s9989_s30 = scalar_lea.vmem [#allocation10], %s8941_s6 }
 0x85e   : > { %2930 = vadd.xlane.f32.xlu1 %v2928_v3  ;;  %v2922_v5 = vsel %vm2353_vm5, %v9246_v2, 0.0  ;;  %v2929_v19 = vmul.f32 %v9246_v2, %v9246_v2  ;;  %3054 = vmatpush1.bf16.msra.mxu0 %v7349_v8  ;;  %v7384_v3 = vld [vmem:[%s8964_s27 + $0x10] sm:$0xff]  }
 0x85f   : > { %2923 = vadd.xlane.f32.xlu0 %v2922_v5  ;;  %3055 = vmatprep.subr.bf16.mxu0 %v7354_v9  ;;  %v7385_v5 = vld [vmem:[%s8964_s27 + $0x48] sm:$0xff]   ;;  %v2970_v9 = vrot.slane %v1881_v20, %v9128_v35 }
 0x860   : > { %v2932_v7 = vsel %vm2353_vm5, %v2929_v19, 0.0  ;;  %6759 = vmatprep.subr.bf16.mxu1 %v7383_v1  ;;  %v7387_v19 = vld [vmem:[%s8964_s27 + $0x40] sm:$0xff]   ;;  %v6549_v35 = vld [vmem:[%s9989_s30] ss:$0 sm:$0xff] }
 0x861   : > { %6760 = vmatpush3.bf16.msra.mxu1 %v7384_v3 }
 0x862   : > { %2933 = vadd.xlane.f32.xlu1 %v2932_v7  ;;  %3056 = vmatpush1.bf16.msra.mxu0 %v7352_v10  ;;  %v7388_v7 = vld [vmem:[%s8964_s27] sm:$0xff]   ;;  %v2966_v10 = vrot.slane %v1881_v20, %v9124_v33 }
 0x863   : > { %3057 = vmatprep.subr.bf16.mxu0 %v7357_v11  ;;  %6761 = vmatprep.subr.bf16.mxu1 %v7385_v5 }
 0x866   : > { %3058 = vmatpush1.bf16.msra.mxu0 %v7355_v12 }
 0x867   : > { %3059 = vmatprep.subr.bf16.mxu0 %v7360_v14 }
 0x86a   : > { %3060 = vmatpush1.bf16.msra.mxu0 %v7358_v13 }
 0x86b   : > { %3061 = vmatprep.subr.bf16.mxu0 %v7363_v15 }
 0x86e   : > { %3062 = vmatpush1.bf16.msra.mxu0 %v7361_v16 }
 0x86f   : > { %3063 = vmatprep.subr.bf16.mxu0 %v7366_v17 }
 0x872   : > { %3064 = vmatpush1.bf16.msra.mxu0 %v7364_v18 }
 0x873   : > { %3065 = vmatprep.subr.bf16.mxu0 %v7369_v21 }
 0x876   : > { %3066 = vmatpush1.bf16.msra.mxu0 %v7367_v23 }
 0x877   : > { %3067 = vmatprep.subr.bf16.mxu0 %v7372_v24 }
 0x87a   : > { %3068 = vmatpush1.bf16.msra.mxu0 %v7370_v25 }
 0x8e3   : > { %v2921_v4 = vpop.xlane.xlu1 %2920 }
 0x8e4   : > { %v2926_v38 = vmul.f32 0.0078125, %v2921_v4 }
 0x8e6   : > { %v2937_v40 = vmul.f32 %v2926_v38, %v2926_v38  ;;  %v2941_v53 = vsub.f32 %v9242_v63, %v2926_v38 }
 0x8e7   : > { %v2931_v39 = vpop.xlane.xlu1 %2930 }
 0x8e8   : > { %v2935_v41 = vmul.f32 0.0078125, %v2931_v39  ;;  %v2924_v42 = vpop.xlane.xlu0 %2923 }
 0x8e9   : > { %v2927_v43 = vmul.f32 0.0078125, %v2924_v42 }
 0x8ea   : > { %v2939_v44 = vsub.f32 %v2935_v41, %v2937_v40 }
 0x8eb   : > { %v2938_v45 = vmul.f32 %v2927_v43, %v2927_v43  ;;  %v2934_v46 = vpop.xlane.xlu1 %2933  ;;  %v2942_v58 = vsub.f32 %v9246_v2, %v2927_v43  ;;  %v7386_v2 = vld [vmem:[%s8964_s27 + $0x8] sm:$0xff]  }
 0x8ec   : > { %v2943_v47 = vadd.f32 1e-05, %v2939_v44  ;;  %v2936_v48 = vmul.f32 0.0078125, %v2934_v46  ;;  %6762 = vmatpush3.bf16.msra.mxu1 %v7386_v2 }
 0x8ed   : > { %6763 = vmatprep.subr.bf16.mxu1 %v7387_v19 }
 0x8ee   : > { %7413 = vrsqrt.f32 %v2943_v47  ;;  %v2940_v50 = vsub.f32 %v2936_v48, %v2938_v45 }
 0x8f0   : > { %v2944_v51 = vadd.f32 1e-05, %v2940_v50  ;;  %6764 = vmatpush3.bf16.msra.mxu1 %v7388_v7 }
 0x8f2   : > { %7415 = vrsqrt.f32 %v2944_v51 }
 0x8fb   : > { %v7414_v54 = vpop.eup %7413 }
 0x8fc   : > { %v2947_v55 = vmul.f32 %v7414_v54, %v2941_v53 }
 0x8fe   : > { %v2953_v60 = vmul.f32 %v2952_v56, %v2947_v55 }
 0x8ff   : > { %v7416_v59 = vpop.eup %7415 }
 0x900   : > { %v2948_v57 = vmul.f32 %v7416_v59, %v2942_v58  ;;  %v2959_v62 = vadd.f32 %v2958_v22, %v2953_v60  ;;  %v3283_v58 = vsub.s32 3, %v9121_v32  ;;  %v3278_v59 = vrot.slane %v9282_v52, %v1928_v49 }
 0x902   : > { %v2954_v61 = vmul.f32 %v2952_v56, %v2948_v57 }
 0x904   : > { %v2960_v63 = vadd.f32 %v2958_v22, %v2954_v61  ;;  %v3284_v22 = vrot.slane %v9282_v52, %v3283_v58 }
 0x906   : > { %v2961_v0 = vpack.c.bf16 %v2960_v63, %v2959_v62 }
 0x908   : > { %3086 = vmatmul.mubr.bf16.vlgmr.msra.gmra.mxu0 %v2961_v0 }
 0x9c8   : > { %v3087_v8 = vpop.f32.mrf.mxu0 }
 0x9c9   : > { %v3088_v15 = vadd.f32 %v3087_v8, %v2966_v10 }
 0x9ca   : > { %v3089_v11 = vpop.f32.mrf.mxu0 }
 0x9cb   : > { %v3090_v13 = vadd.f32 %v3089_v11, %v2970_v9  ;;  %v3096_v24 = vmax.f32 %v3088_v15, 0.0 }
 0x9cc   : > { %v3091_v12 = vpop.f32.mrf.mxu0 }
 0x9cd   : > { %v3092_v14 = vadd.f32 %v3091_v12, %v2966_v10  ;;  %v3097_v21 = vmax.f32 %v3090_v13, 0.0 }
 0x9ce   : > { %v3093_v16 = vpop.f32.mrf.mxu0 }
 0x9cf   : > { %v3094_v17 = vadd.f32 %v3093_v16, %v2970_v9  ;;  %v3098_v18 = vmax.f32 %v3092_v14, 0.0 }
 0x9d1   : > { %v3099_v23 = vmax.f32 %v3094_v17, 0.0  ;;  %v3100_v6 = vpack.c.bf16 %v3098_v18, %v3096_v24 }
 0x9d3   : > { %v3101_v25 = vpack.c.bf16 %v3099_v23, %v3097_v21 }
 0x9d5   : > { %3236 = vmatprep.mubr.bf16.mxu1 %v3101_v25 }
 0x9d6   : > { %3237 = vmatmul.mubr.bf16.vlgmr.msra.gmra.mxu1 %v3100_v6 }
 0xa96   : > { %v6765_v26 = vpop.f32.mrf.mxu1 }
 0xa98   : > { %v6766_v33 = vpop.f32.mrf.mxu1 }
 0xa99   : > { %v6767_v27 = vadd.f32 %v6766_v33, %v6765_v26 }
 0xa9a   : > { %v6768_v28 = vpop.f32.mrf.mxu1 }
 0xa9b   : > { %v3239_v29 = vadd.f32 %v6767_v27, %v6549_v35 }
 0xa9c   : > { %v6769_v30 = vpop.f32.mrf.mxu1 }
 0xa9d   : > { %v6770_v31 = vadd.f32 %v6769_v30, %v6768_v28  ;;  %v3245_v34 = vadd.f32 %v3239_v29, %v2959_v62 }
 0xa9f   : > { %v3242_v36 = vadd.f32 %v6770_v31, %v6549_v35  ;;  %3247 = vadd.xlane.f32.xlu1 %v3245_v34  ;;  %v3254_v37 = vmul.f32 %v3245_v34, %v3245_v34 }
 0xaa1   : > { %v3246_v4 = vadd.f32 %v3242_v36, %v2960_v63  ;;  %3256 = vadd.xlane.f32.xlu0 %v3254_v37 }
 0xaa3   : > { %v3249_v38 = vsel %vm2353_vm5, %v3246_v4, 0.0  ;;  %v3255_v39 = vmul.f32 %v3246_v4, %v3246_v4 }
 0xaa4   : > { %3250 = vadd.xlane.f32.xlu1 %v3249_v38 }
 0xaa5   : > { %v3258_v40 = vsel %vm2353_vm5, %v3255_v39, 0.0 }
 0xaa8   : > { %3259 = vadd.xlane.f32.xlu1 %v3258_v40 }
 0xb28   : > { %v3248_v41 = vpop.xlane.xlu1 %3247 }
 0xb29   : > { %v3252_v42 = vmul.f32 0.0078125, %v3248_v41 }
 0xb2a   : > { %v3257_v43 = vpop.xlane.xlu0 %3256 }
 0xb2b   : > { %v3263_v44 = vmul.f32 %v3252_v42, %v3252_v42  ;;  %v3261_v45 = vmul.f32 0.0078125, %v3257_v43  ;;  %v3267_v57 = vsub.f32 %v3245_v34, %v3252_v42 }
 0xb2d   : > { %v3265_v46 = vsub.f32 %v3261_v45, %v3263_v44  ;;  %v3251_v47 = vpop.xlane.xlu1 %3250 }
 0xb2e   : > { %v3253_v48 = vmul.f32 0.0078125, %v3251_v47 }
 0xb2f   : > { %v3269_v50 = vadd.f32 1e-05, %v3265_v46 }
 0xb30   : > { %v3264_v53 = vmul.f32 %v3253_v48, %v3253_v48  ;;  %v3268_v0 = vsub.f32 %v3246_v4, %v3253_v48 }
 0xb31   : > { %7417 = vrsqrt.f32 %v3269_v50  ;;  %v3260_v51 = vpop.xlane.xlu1 %3259 }
 0xb32   : > { %v3262_v54 = vmul.f32 0.0078125, %v3260_v51 }
 0xb34   : > { %v3266_v55 = vsub.f32 %v3262_v54, %v3264_v53 }
 0xb36   : > { %v3270_v56 = vadd.f32 1e-05, %v3266_v55 }
 0xb38   : > { %7419 = vrsqrt.f32 %v3270_v56 }
 0xb3e   : > { %v7418_v60 = vpop.eup %7417 }
 0xb3f   : > { %v3273_v61 = vmul.f32 %v7418_v60, %v3267_v57 }
 0xb41   : > { %v3279_v62 = vmul.f32 %v3278_v59, %v3273_v61 }
 0xb43   : > { %v3285_v63 = vadd.f32 %v3284_v22, %v3279_v62 }
 0xb45   : > { %v7420_v1 = vpop.eup %7419  ;;  %3287 = vst [vmem:[#allocation2] sm:$0xff] %v3285_v63 }
 0xb46   : > { %v3274_v3 = vmul.f32 %v7420_v1, %v3268_v0 }
 0xb48   : > { %v3280_v5 = vmul.f32 %v3278_v59, %v3274_v3 }
 0xb4a   : > { %v3286_v2 = vadd.f32 %v3284_v22, %v3280_v5 }
 0xb4c   : > { %3288 = vst [vmem:[#allocation2 + $0x8] sm:$0x7] %v3286_v2 }
 0xb4d PF: > { %s9990_s6 = sld [smem:[#allocation43_spill]] }
 0xb53   : > { %p6566_p3 = scmp.lt.s32.totalorder %s9990_s6, 2 }
 0xb54   : > { %s9991_s11 = sld [smem:[#allocation49_spill]] (!%p6566_p3)  ;;  %s8170_s17 = smov (!%p6566_p3), 96  }
 0xb55   : > { %3292 = sbr.rel (%p6566_p3) target bundleno = 6788 (0x1a84), region = 204  ;;  %s8171_s27 = smov (!%p6566_p3), 64  }
 0xb56   : > { %s8172_s2 = smov (!%p6566_p3), 32   ;;  %s9992_s4 = sld [smem:[#allocation51_spill]] (!%p6566_p3) }
 0xb57   : > { %s9993_s20 = sld [smem:[#allocation57_spill]] (!%p6566_p3)  ;;  %s9994_s5 = scalar_lea.vmem (!%p6566_p3), [#allocation14], %s8971_s24 }
 0xb58   : > { %s9995_s18 = sld [smem:[#allocation50_spill]] (!%p6566_p3)  ;;  %s9998_s7 = scalar_lea.vmem (!%p6566_p3), [#allocation22], %s8971_s24 }
 0xb59   : > { %s9997_s22 = sld [smem:[#allocation52_spill]] (!%p6566_p3) }
 0xb5a   : > { %v7421_v32 = vld [vmem:[%s9991_s11 + $0xac] ss:$12 sps:$4 sm:$0xff]   ;;  %v7423_v49 = vld [vmem:[%s9991_s11 + $0xa8] ss:$12 sps:$4 sm:$0xff]   ;;  %v8167_v52 = vmov 0   ;;  %v9326_v21 = vld [vmem:[#allocation2] sm:$0xff]  ;;  %v3453_v31 = vlaneseq }
 0xb5b   : > { %3628 = vmatprep.mubr.bf16.mxu0 %v8167_v52  ;;  %3596 = vmatprep.subr.bf16.mxu0 %v7421_v32  ;;  %v7424_v19 = vld [vmem:[%s9991_s11 + $0x94] ss:$12 sps:$4 sm:$0xff]   ;;  %v7426_v7 = vld [vmem:[%s9991_s11 + $0x90] ss:$12 sps:$4 sm:$0xff]   ;;  %v7429_v8 = vld [vmem:[%s9991_s11 + $0x78] ss:$12 sps:$4 sm:$0xff]  }
 0xb5c   : > { %3597 = vmatpush1.bf16.msra.mxu0 %v7423_v49  ;;  %v7427_v20 = vld [vmem:[%s9991_s11 + $0x7c] ss:$12 sps:$4 sm:$0xff]   ;;  %v7430_v9 = vld [vmem:[%s9991_s11 + $0x64] ss:$12 sps:$4 sm:$0xff]   ;;  %v7432_v10 = vld [vmem:[%s9991_s11 + $0x60] ss:$12 sps:$4 sm:$0xff]  }
 0xb5d   : > { %3598 = vmatprep.subr.bf16.mxu0 %v7424_v19  ;;  %v7433_v11 = vld [vmem:[%s9991_s11 + $0x4c] ss:$12 sps:$4 sm:$0xff]   ;;  %v7435_v12 = vld [vmem:[%s9991_s11 + $0x48] ss:$12 sps:$4 sm:$0xff]   ;;  %v7438_v14 = vld [vmem:[%s9991_s11 + $0x30] ss:$12 sps:$4 sm:$0xff]  }
 0xb5e   : > { %v7436_v13 = vld [vmem:[%s9991_s11 + $0x34] ss:$12 sps:$4 sm:$0xff]   ;;  %v7439_v15 = vld [vmem:[%s9991_s11 + $0x1c] ss:$12 sps:$4 sm:$0xff]   ;;  %v7441_v16 = vld [vmem:[%s9991_s11 + $0x18] ss:$12 sps:$4 sm:$0xff]  }
 0xb5f   : > { %v7442_v17 = vld [vmem:[%s9991_s11 + $0x4] ss:$12 sps:$4 sm:$0xff]   ;;  %v7444_v18 = vld [vmem:[%s9991_s11] ss:$12 sps:$4 sm:$0xff]   ;;  %v9328_v23 = vld [vmem:[#allocation2 + $0x8] sm:$0x7] }
 0xb60   : > { %3599 = vmatpush1.bf16.msra.mxu0 %v7426_v7  ;;  %v3451_v24 = vpack.c.bf16 %v9328_v23, %v9326_v21  ;;  %v8168_v25 = vmov 0.0   ;;  %vm8169_vm9 = vmmov 0   ;;  %v7445_v6 = vld [vmem:[%s9991_s11 + $0xb0] ss:$12 sps:$4 sm:$0xff]   ;;  %v7446_v26 = vld [vmem:[%s9991_s11 + $0x98] ss:$12 sps:$4 sm:$0xff]  }
 0xb61   : > { %3600 = vmatprep.subr.bf16.mxu0 %v7427_v20  ;;  %6975 = vmatprep.subr.bf16.mxu1 %v8168_v25  ;;  %v7447_v35 = vld [vmem:[%s9991_s11 + $0x80] ss:$12 sps:$4 sm:$0xff]   ;;  %v7448_v33 = vld [vmem:[%s9991_s11 + $0x68] ss:$12 sps:$4 sm:$0xff]   ;;  %v7449_v27 = vld [vmem:[%s9991_s11 + $0x50] ss:$12 sps:$4 sm:$0xff]  }
 0xb62   : > { %6991 = vmatprep.mubr.msk.bf16.mxu1 %vm8169_vm9, %v8168_v25  ;;  %6976 = vmatpush3.bf16.msra.mxu1 %v7445_v6  ;;  %v7450_v28 = vld [vmem:[%s9991_s11 + $0x38] ss:$12 sps:$4 sm:$0xff]   ;;  %v7451_v29 = vld [vmem:[%s9991_s11 + $0x20] ss:$12 sps:$4 sm:$0xff]   ;;  %v7452_v30 = vld [vmem:[%s9991_s11 + $0x8] ss:$12 sps:$4 sm:$0xff]  }
 0xb63   : > { %6977 = vmatprep.subr.bf16.mxu1 %v8168_v25  ;;  %v9356_v34 = vshrl.u32 %v3453_v31, 7  ;;  %v3331_v37 = vld [vmem:[%s9058_s19] sm:$0x7]  ;;  %vm3683_vm10 = vcmask 261120   ;;  %vm3988_vm11 = vcmask 1044480   ;;  %vm3896_vm12 = vcmask 1045504  }
 0xb64   : > { %3601 = vmatpush1.bf16.msra.mxu0 %v7429_v8  ;;  %v8173_v49 = vmov 65535   ;;  %vm3914_vm13 = vcmask 89088   ;;  %vm3888_vm14 = vcmask 1042432   ;;  %vm3905_vm15 = vcmask 1040384   ;;  %s10000_s23 = sld [smem:[#allocation55_spill]] }
 0xb65   : > { %3602 = vmatprep.subr.bf16.mxu0 %v7430_v9  ;;  %v9359_v36 = vsub.s32 0, %v9356_v34  ;;  %v9363_v4 = vsub.s32 1, %v9356_v34  ;;  %v3463_v53 = vsub.s32 2, %v9356_v34  ;;  %v3989_v19 = vsel %vm3988_vm11, 4294967295, %v8173_v49  ;;  %s10001_s9 = sld [smem:[#allocation54_spill]] }
 0xb66   : > { %6978 = vmatpush3.bf16.msra.mxu1 %v7446_v26  ;;  %v9400_v7 = vsel %vm3896_vm12, %v3989_v19, 0  ;;  %vm3930_vm0 = vcmask 84992   ;;  %vm4036_vm1 = vsmask.f32 2304  ;;  %vm5014_vm2 = vcmask 257024  }
 0xb67   : > { %6979 = vmatprep.subr.bf16.mxu1 %v8168_v25  ;;  %v3456_v39 = vrot.slane %v3331_v37, %v9359_v36  ;;  %v3460_v41 = vrot.slane %v3331_v37, %v9363_v4  ;;  %v3464_v54 = vrot.slane %v3331_v37, %v3463_v53 }
 0xb68   : > { %3603 = vmatpush1.bf16.msra.mxu0 %v7432_v10 }
 0xb69   : > { %3604 = vmatprep.subr.bf16.mxu0 %v7433_v11 }
 0xb6a   : > { %6980 = vmatpush3.bf16.msra.mxu1 %v7447_v35 }
 0xb6b   : > { %6981 = vmatprep.subr.bf16.mxu1 %v8168_v25 }
 0xb6c   : > { %3605 = vmatpush1.bf16.msra.mxu0 %v7435_v12 }
 0xb6d   : > { %3606 = vmatprep.subr.bf16.mxu0 %v7436_v13 }
 0xb6e   : > { %6982 = vmatpush3.bf16.msra.mxu1 %v7448_v33 }
 0xb6f   : > { %6983 = vmatprep.subr.bf16.mxu1 %v8168_v25 }
 0xb70   : > { %3607 = vmatpush1.bf16.msra.mxu0 %v7438_v14 }
 0xb71   : > { %3608 = vmatprep.subr.bf16.mxu0 %v7439_v15 }
 0xb72   : > { %6984 = vmatpush3.bf16.msra.mxu1 %v7449_v27 }
 0xb73   : > { %6985 = vmatprep.subr.bf16.mxu1 %v8168_v25 }
 0xb74   : > { %3609 = vmatpush1.bf16.msra.mxu0 %v7441_v16 }
 0xb75   : > { %3610 = vmatprep.subr.bf16.mxu0 %v7442_v17 }
 0xb76   : > { %6986 = vmatpush3.bf16.msra.mxu1 %v7450_v28 }
 0xb77   : > { %6987 = vmatprep.subr.bf16.mxu1 %v8168_v25 }
 0xb78   : > { %3611 = vmatpush1.bf16.msra.mxu0 %v7444_v18 }
 0xb79   : > { %6995 = vmatprep.subr.bf16.mxu0 %v8168_v25 }
 0xb7a   : > { %6988 = vmatpush3.bf16.msra.mxu1 %v7451_v29 }
 0xb7b   : > { %3629 = vmatmul.mubr.bf16.vlgmr.msra.gmra.mxu0 %v3451_v24  ;;  %6989 = vmatprep.subr.bf16.mxu1 %v8168_v25 }
 0xb7c   : > { %6997 = vmatprep.mubr.msk.bf16.mxu0 %vm8169_vm9, %v8168_v25 }
 0xb7e   : > { %6990 = vmatpush3.bf16.msra.mxu1 %v7452_v30 }
 0xb7f   : > { %7001 = vmatprep.subr.bf16.mxu1 %v8168_v25 }
 0xb81   : > { %6992 = vmatmul.mubr.bf16.vlgmr.msra.gmra.mxu1 %v3451_v24 }
 0xb82   : > { %7003 = vmatprep.mubr.msk.bf16.mxu1 %vm8169_vm9, %v8168_v25 }
 0xc3b   : > { %v3630_v38 = vpop.f32.mrf.mxu0 }
 0xc3c   : > { %v3631_v43 = vadd.f32 %v3630_v38, %v3456_v39 }
 0xc3d   : > { %v3632_v40 = vpop.f32.mrf.mxu0 }
 0xc3e   : > { %v3633_v46 = vadd.f32 %v3632_v40, %v3460_v41 }
 0xc3f   : > { %v3634_v42 = vpop.f32.mrf.mxu0 }
 0xc40   : > { %v3635_v44 = vadd.f32 %v3634_v42, %v3456_v39 }
 0xc41   : > { %v3636_v45 = vpop.f32.mrf.mxu0  ;;  %v3673_v55 = vpop.f32.mrf.mxu1 }
 0xc42   : > { %v3680_v47 = vpack.c.bf16 %v3635_v44, %v3631_v43  ;;  %v3637_v48 = vadd.f32 %v3636_v45, %v3460_v41  ;;  %v3674_v58 = vadd.f32 %v3673_v55, %v3464_v54 }
 0xc43   : > { %v6993_v56 = vpop.f32.mrf.mxu1 }
 0xc44   : > { %v3681_v50 = vpack.c.bf16 %v3637_v48, %v3633_v46  ;;  %3732 = vrot.lane.b32.xlu1 %v3680_v47, %s8170_s17 }
 0xc45   : > { %v3676_v59 = vpop.f32.mrf.mxu1 }
 0xc46   : > { %3735 = vrot.lane.b32.xlu0 %v3681_v50, %s8170_s17  ;;  %v3688_v51 = vsel %vm3683_vm10, %v3681_v50, 0  ;;  %v3677_v57 = vadd.f32 %v3676_v59, %v3464_v54 }
 0xc47   : > { %6996 = vmatpush3.bf16.xpose.msra.mxu0 %v3688_v51  ;;  %v6994_v60 = vpop.f32.mrf.mxu1 }
 0xc48   : > { %3784 = vrot.lane.b32.xlu1 %v3680_v47, %s8171_s27  ;;  %7007 = vmatprep.subr.bf16.mxu0 %v8168_v25  ;;  %v9381_v22 = vpack.c.bf16 %v3677_v57, %v3674_v58 }
 0xc4a   : > { %3786 = vrot.lane.b32.xlu0 %v3681_v50, %s8171_s27  ;;  %v3992_v20 = vand.u32 %v9400_v7, %v9381_v22 }
 0xc4c   : > { %3835 = vrot.lane.b32.xlu1 %v3680_v47, %s8172_s2 }
 0xc4e   : > { %3837 = vrot.lane.b32.xlu0 %v3681_v50, %s8172_s2  ;;  %6998 = vmatmul.mubr.msk.bf16.vlgmr.msra.gmra.mxu0 %vm3683_vm10, %v3680_v47 }
 0xc4f   : > { %7009 = vmatprep.mubr.msk.bf16.mxu0 %vm8169_vm9, %v8168_v25 }
 0xcb6   : > { %v3733_v63 = vpop.permute.xlu1 %3732 }
 0xcb8   : > { %v3736_v61 = vpop.permute.xlu0 %3735 }
 0xcb9   : > { %v3741_v62 = vsel %vm3683_vm10, %v3736_v61, 0 }
 0xcba   : > { %7002 = vmatpush3.bf16.xpose.msra.mxu1 %v3741_v62  ;;  %v3785_v2 = vpop.permute.xlu1 %3784 }
 0xcbb   : > { %7013 = vmatprep.subr.bf16.mxu1 %v8168_v25 }
 0xcbc   : > { %v3787_v0 = vpop.permute.xlu0 %3786 }
 0xcbd   : > { %v3792_v1 = vsel %vm3683_vm10, %v3787_v0, 0 }
 0xcbe   : > { %7008 = vmatpush3.bf16.xpose.msra.mxu0 %v3792_v1  ;;  %v3836_v32 = vpop.permute.xlu1 %3835 }
 0xcbf   : > { %7019 = vmatprep.subr.bf16.mxu0 %v8168_v25 }
 0xcc0   : > { %v3838_v3 = vpop.permute.xlu0 %3837 }
 0xcc1   : > { %v3843_v5 = vsel %vm3683_vm10, %v3838_v3, 0  ;;  %7004 = vmatmul.mubr.msk.bf16.vlgmr.msra.gmra.mxu1 %vm3683_vm10, %v3733_v63 }
 0xcc2   : > { %7014 = vmatpush3.bf16.xpose.msra.mxu1 %v3843_v5  ;;  %7015 = vmatprep.mubr.msk.bf16.mxu1 %vm8169_vm9, %v8168_v25 }
 0xcc3   : > { %7025 = vmatprep.subr.bf16.mxu1 %v8168_v25 }
 0xcc5   : > { %7010 = vmatmul.mubr.msk.bf16.vlgmr.msra.gmra.mxu0 %vm3683_vm10, %v3785_v2 }
 0xcc6   : > { %7021 = vmatprep.mubr.msk.bf16.mxu0 %vm8169_vm9, %v8168_v25  ;;  %7020 = vmatpush3.bf16.msra.mxu0 %v3992_v20 }
 0xcc7   : > { %7031 = vmatprep.subr.bf16.mxu0 %v8168_v25 }
 0xcc9   : > { %7016 = vmatmul.mubr.msk.bf16.vlgmr.msra.gmra.mxu1 %vm3683_vm10, %v3836_v32 }
 0xcca   : > { %7027 = vmatprep.mubr.msk.bf16.mxu1 %vm8169_vm9, %v8168_v25 }
 0xd0e   : > { %v3724_v8 = vpop.f32.mrf.mxu0 }
 0xd0f   : > { %v3915_v9 = vsel %vm3914_vm13, %v3724_v8, -inf }
 0xd10   : > { %3916 = vmax.xlane.f32.xlu0 %v3915_v9  ;;  %v6999_v10 = vpop.f32.mrf.mxu0 }
 0xd12   : > { %v3727_v11 = vpop.f32.mrf.mxu0 }
 0xd14   : > { %v7000_v12 = vpop.f32.mrf.mxu0 }
 0xd81   : > { %v3777_v13 = vpop.f32.mrf.mxu1 }
 0xd82   : > { %v3889_v14 = vrot.slane %v3777_v13, 5 }
 0xd83   : > { %v7005_v15 = vpop.f32.mrf.mxu1 }
 0xd84   : > { %v3911_v16 = vsel %vm3888_vm14, %v3727_v11, %v3889_v14 }
 0xd85   : > { %v3780_v17 = vpop.f32.mrf.mxu1  ;;  %v3828_v18 = vpop.f32.mrf.mxu0  ;;  %v3918_v24 = vsel %vm3914_vm13, %v3911_v16, -inf }
 0xd86   : > { %v3890_v6 = vrot.slane %v3780_v17, 5  ;;  %v3897_v26 = vrot.slane %v3828_v18, 2  ;;  %3919 = vmax.xlane.f32.xlu1 %v3918_v24 }
 0xd87   : > { %v7006_v35 = vpop.f32.mrf.mxu1  ;;  %v7011_v33 = vpop.f32.mrf.mxu0 }
 0xd88   : > { %v3891_v27 = vsel %vm3888_vm14, %v3889_v14, %v3890_v6 }
 0xd89   : > { %v3831_v28 = vpop.f32.mrf.mxu0  ;;  %v3879_v29 = vpop.f32.mrf.mxu1  ;;  %v3912_v30 = vsel %vm3896_vm12, %v3891_v27, %v3897_v26 }
 0xd8a   : > { %v3898_v31 = vrot.slane %v3831_v28, 2  ;;  %v3906_v37 = vrot.slane %v3879_v29, 7  ;;  %v3921_v38 = vsel %vm3914_vm13, %v3912_v30, -inf }
 0xd8b   : > { %v7017_v39 = vpop.f32.mrf.mxu1  ;;  %3922 = vmax.xlane.f32.xlu0 %v3921_v38  ;;  %v7012_v40 = vpop.f32.mrf.mxu0 }
 0xd8c   : > { %v3899_v41 = vsel %vm3896_vm12, %v3897_v26, %v3898_v31  ;;  %v3913_v42 = vsel %vm3905_vm15, %v3898_v31, %v3906_v37 }
 0xd8d   : > { %v3882_v43 = vpop.f32.mrf.mxu1  ;;  %v3924_v44 = vsel %vm3914_vm13, %v3899_v41, -inf  ;;  %v3927_v19 = vsel %vm3914_vm13, %v3913_v42, -inf }
 0xd8e   : > { %v3907_v45 = vrot.slane %v3882_v43, 7 }
 0xd8f   : > { %v7018_v46 = vpop.f32.mrf.mxu1  ;;  %3925 = vmax.xlane.f32.xlu0 %v3924_v44 }
 0xd90   : > { %v3908_v47 = vsel %vm3905_vm15, %v3906_v37, %v3907_v45 }
 0xd91   : > { %v3931_v20 = vsel %vm3930_vm0, %v3908_v47, -inf }
 0xd99   : > { %v3917_v48 = vpop.xlane.xlu0 %3916 }
 0xd9a   : > { %v3934_v50 = vsub.f32 %v3724_v8, %v3917_v48 }
 0xd9c   : > { %v3940_v51 = vmul.f32 1.442695, %v3934_v50 }
 0xd9e   : > { %7543 = vpow2.f32 %v3940_v51 }
 0xdab   : > { %v7544_v54 = vpop.eup %7543 }
 0xdac   : > { %v3952_v55 = vsel %vm3914_vm13, %v7544_v54, 0.0 }
 0xdad   : > { %3953 = vadd.xlane.f32.xlu1 %v3952_v55 }
 0xe0f   : > { %v3920_v56 = vpop.xlane.xlu1 %3919 }
 0xe10   : > { %v3935_v58 = vsub.f32 %v3911_v16, %v3920_v56  ;;  %v7453_v56 = vld [vmem:[%s8983_s3 + $0x8] sm:$0xff]  }
 0xe12   : > { %v3942_v59 = vmul.f32 1.442695, %v3935_v58  ;;  %v7454_v58 = vld [vmem:[%s8983_s3] sm:$0xff]  }
 0xe14   : > { %7545 = vpow2.f32 %v3942_v59  ;;  %v3923_v57 = vpop.xlane.xlu0 %3922  ;;  %v7455_v59 = vld [vmem:[%s8983_s3 + $0x18] sm:$0xff]  }
 0xe15   : > { %v3936_v60 = vsub.f32 %v3912_v30, %v3923_v57  ;;  %v7456_v57 = vld [vmem:[%s8983_s3 + $0x10] sm:$0xff]  }
 0xe17   : > { %v3944_v61 = vmul.f32 1.442695, %v3936_v60 }
 0xe18   : > { %v3926_v62 = vpop.xlane.xlu0 %3925 }
 0xe19   : > { %7547 = vpow2.f32 %v3944_v61  ;;  %v3937_v63 = vsub.f32 %v3899_v41, %v3926_v62 }
 0xe1b   : > { %v3946_v0 = vmul.f32 1.442695, %v3937_v63 }
 0xe1d   : > { %7549 = vpow2.f32 %v3946_v0 }
 0xe21   : > { %v7546_v1 = vpop.eup %7545 }
 0xe22   : > { %v3955_v3 = vsel %vm3914_vm13, %v7546_v1, 0.0 }
 0xe23   : > { %3956 = vadd.xlane.f32.xlu0 %v3955_v3 }
 0xe26   : > { %v7548_v5 = vpop.eup %7547 }
 0xe27   : > { %v3958_v2 = vsel %vm3914_vm13, %v7548_v5, 0.0 }
 0xe28   : > { %3959 = vadd.xlane.f32.xlu1 %v3958_v2 }
 0xe2a   : > { %v7550_v32 = vpop.eup %7549 }
 0xe2b   : > { %v3961_v49 = vsel %vm3914_vm13, %v7550_v32, 0.0 }
 0xe2c   : > { %3962 = vadd.xlane.f32.xlu0 %v3961_v49 }
 0xe30   : > { %3928 = vmax.xlane.f32.xlu0 %v3927_v19 }
 0xe34   : > { %3932 = vmax.xlane.f32.xlu0 %v3931_v20 }
 0xe36   : > { %v3954_v8 = vpop.xlane.xlu1 %3953 }
 0xe37   : > { %7551 = vrcp.f32 %v3954_v8 }
 0xe39   : > { %4054 = vrot.lane.b32.xlu1 %v9381_v22, %s8170_s17 }
 0xe3d   : > { %4222 = vrot.lane.b32.xlu1 %v9381_v22, %s8171_s27 }
 0xe44   : > { %v7552_v14 = vpop.eup %7551 }
 0xe45   : > { %v3976_v18 = vmul.f32 %v7552_v14, %v7544_v54 }
 0xeac   : > { %v3957_v9 = vpop.xlane.xlu0 %3956 }
 0xead   : > { %7553 = vrcp.f32 %v3957_v9 }
 0xeb1   : > { %v3960_v10 = vpop.xlane.xlu1 %3959 }
 0xeb2   : > { %7555 = vrcp.f32 %v3960_v10 }
 0xeb5   : > { %v4055_v11 = vpop.permute.xlu1 %4054  ;;  %v3963_v12 = vpop.xlane.xlu0 %3962 }
 0xeb6   : > { %v4060_v13 = vand.u32 %v4055_v11, %v9400_v7  ;;  %7557 = vrcp.f32 %v3963_v12 }
 0xeb8   : > { %7026 = vmatpush3.bf16.msra.mxu1 %v4060_v13 }
 0xeb9   : > { %v3929_v15 = vpop.xlane.xlu0 %3928  ;;  %7039 = vmatprep.subr.bf16.mxu1 %v8168_v25  ;;  %v4223_v19 = vpop.permute.xlu1 %4222 }
 0xeba   : > { %v7554_v16 = vpop.eup %7553  ;;  %v3938_v17 = vsub.f32 %v3913_v42, %v3929_v15  ;;  %v4228_v10 = vand.u32 %v4223_v19, %v9400_v7  ;;  %v7485_v19 = vld [vmem:[%s9993_s20] sm:$0xff]  }
 0xebb   : > { %v3977_v24 = vmul.f32 %v7554_v16, %v7546_v1 }
 0xebc   : > { %v3948_v6 = vmul.f32 1.442695, %v3938_v17 }
 0xebd   : > { %v3933_v26 = vpop.xlane.xlu0 %3932  ;;  %v3982_v35 = vpack.c.bf16 %v3977_v24, %v3976_v18 }
 0xebe   : > { %7559 = vpow2.f32 %v3948_v6  ;;  %v3939_v33 = vsub.f32 %v3908_v47, %v3933_v26 }
 0xebf   : > { %7022 = vmatmul.mubr.msk.bf16.vlgmr.msra.gmra.mxu0 %vm3914_vm13, %v3982_v35  ;;  %v7556_v28 = vpop.eup %7555  ;;  %v4037_v37 = vshrl.u32 %v3982_v35, 16  ;;  %v4040_v38 = vshll.u32 %v3982_v35, 16  ;;  %v7457_v35 = vld [vmem:[%s8983_s3 + $0x28] sm:$0xff]  }
 0xec0   : > { %v3950_v27 = vmul.f32 1.442695, %v3939_v33  ;;  %7035 = vmatprep.mubr.msk.bf16.mxu0 %vm8169_vm9, %v8168_v25  ;;  %v3978_v30 = vmul.f32 %v7556_v28, %v7548_v5  ;;  %7032 = vmatpush3.bf16.msra.mxu0 %v7455_v59  ;;  %v7466_v59 = vld [vmem:[%s9992_s4 + $0x64] ss:$8 sps:$4 sm:$0xff]  }
 0xec1   : > { %v4039_v40 = vrot.slane %v4037_v37, 5  ;;  %v4042_v41 = vrot.slane %v4040_v38, 6  ;;  %7033 = vmatprep.subr.bf16.mxu0 %v8168_v25 }
 0xec2   : > { %7561 = vpow2.f32 %v3950_v27 }
 0xec3   : > { %v7558_v29 = vpop.eup %7557  ;;  %v4043_v48 = vor.u32 %v4042_v41, %v4039_v40 }
 0xec4   : > { %v3979_v31 = vmul.f32 %v7558_v29, %v7550_v32  ;;  %7034 = vmatpush3.bf16.msra.mxu0 %v7456_v57  ;;  %v7464_v57 = vld [vmem:[%s9992_s4 + $0x60] ss:$8 sps:$4 sm:$0xff]  }
 0xec5   : > { %7047 = vmatprep.subr.bf16.mxu0 %v8168_v25 }
 0xec6   : > { %v9430_v39 = vpack.c.bf16 %v3979_v31, %v3978_v30 }
 0xec8   : > { %v4045_v42 = vshrl.u32 %v9430_v39, 16  ;;  %v4048_v43 = vshll.u32 %v9430_v39, 16  ;;  %v4219_v15 = vrot.slane %v9430_v39, 3 }
 0xeca   : > { %v4047_v44 = vrot.slane %v4045_v42, 5  ;;  %v4050_v45 = vrot.slane %v4048_v43, 6 }
 0xecb   : > { %v7560_v46 = vpop.eup %7559 }
 0xecc   : > { %v3964_v47 = vsel %vm3914_vm13, %v7560_v46, 0.0  ;;  %v4051_v50 = vor.u32 %v4050_v45, %v4047_v44  ;;  %v7459_v44 = vld [vmem:[%s8983_s3 + $0x38] sm:$0xff]  }
 0xecd   : > { %3965 = vadd.xlane.f32.xlu0 %v3964_v47 }
 0xece   : > { %v4052_v51 = vsel %vm4036_vm1, %v4043_v48, %v4051_v50  ;;  %v7460_v48 = vld [vmem:[%s8983_s3 + $0x30] sm:$0xff]  }
 0xecf   : > { %v7562_v54 = vpop.eup %7561  ;;  %7028 = vmatmul.mubr.msk.bf16.vlgmr.msra.gmra.mxu1 %vm3914_vm13, %v4052_v51 }
 0xed0   : > { %v3967_v55 = vsel %vm3930_vm0, %v7562_v54, 0.0  ;;  %7043 = vmatprep.mubr.msk.bf16.mxu1 %vm8169_vm9, %v8168_v25  ;;  %7040 = vmatpush3.bf16.msra.mxu1 %v7453_v56  ;;  %v7461_v56 = vld [vmem:[%s9992_s4 + $0x70] ss:$8 sps:$4 sm:$0xff]  }
 0xed1   : > { %3968 = vadd.xlane.f32.xlu0 %v3967_v55  ;;  %7041 = vmatprep.subr.bf16.mxu1 %v8168_v25 }
 0xed4   : > { %7042 = vmatpush3.bf16.msra.mxu1 %v7454_v58  ;;  %v7463_v58 = vld [vmem:[%s9992_s4 + $0x74] ss:$8 sps:$4 sm:$0xff]  }
 0xed5   : > { %7053 = vmatprep.subr.bf16.mxu1 %v8168_v25 }
 0xee7   : > { %4337 = vrot.lane.b32.xlu0 %v9381_v22, %s8172_s2 }
 0xf56   : > { %v3966_v60 = vpop.xlane.xlu0 %3965 }
 0xf5a   : > { %v3969_v61 = vpop.xlane.xlu0 %3968 }
 0xf5b   : > { %7563 = vrcp.f32 %v3969_v61  ;;  %v7467_v61 = vld [vmem:[%s9992_s4 + $0x50] ss:$8 sps:$4 sm:$0xff]  }
 0xf5c   : > { %7565 = vrcp.f32 %v3966_v60  ;;  %v7469_v60 = vld [vmem:[%s9992_s4 + $0x54] ss:$8 sps:$4 sm:$0xff]  }
 0xf5e   : > { %v4338_v14 = vpop.permute.xlu0 %4337 }
 0xf5f   : > { %v4343_v17 = vand.u32 %v4338_v14, %v9400_v7  ;;  %v7458_v7 = vld [vmem:[%s8983_s3 + $0x20] sm:$0xff]  }
 0xf68   : > { %v7564_v3 = vpop.eup %7563 }
 0xf69   : > { %v7566_v2 = vpop.eup %7565  ;;  %v3981_v32 = vmul.f32 %v7564_v3, %v7562_v54  ;;  %v7476_v3 = vld [vmem:[%s9992_s4 + $0x20] ss:$8 sps:$4 sm:$0xff]  }
 0xf6a   : > { %v3980_v20 = vmul.f32 %v7566_v2, %v7560_v46  ;;  %v7479_v2 = vld [vmem:[%s9992_s4 + $0x10] ss:$8 sps:$4 sm:$0xff]  }
 0xf6c   : > { %v3984_v12 = vpack.c.bf16 %v3981_v32, %v3980_v20  ;;  %v7484_v32 = vld [vmem:[%s9992_s4 + $0x4] ss:$8 sps:$4 sm:$0xff]  }
 0xf6e   : > { %v4220_v13 = vrot.slane %v3984_v12, 3  ;;  %v4333_v16 = vshll.u32 %v3984_v12, 16  ;;  %v4331_v6 = vshrl.u32 %v3984_v12, 16  ;;  %v6611_v12 = vld [vmem:[%s9994_s5] ss:$0 sm:$0xff] }
 0xf70   : > { %v4221_v18 = vsel %vm3988_vm11, %v4219_v15, %v4220_v13  ;;  %v4335_v24 = vrot.slane %v4333_v16, 1 }
 0xf72   : > { %v4336_v26 = vor.u32 %v4335_v24, %v4331_v6 }
 0xf7f   : > { %v4028_v62 = vpop.f32.mrf.mxu0 }
 0xf81   : > { %v7023_v22 = vpop.f32.mrf.mxu0 }
 0xf82   : > { %v7470_v22 = vld [vmem:[%s9992_s4 + $0x40] ss:$8 sps:$4 sm:$0xff]  }
 0xf83   : > { %v4031_v63 = vpop.f32.mrf.mxu0 }
 0xf84   : > { %v4035_v0 = vpack.c.bf16 %v4031_v63, %v4028_v62  ;;  %v7472_v62 = vld [vmem:[%s9992_s4 + $0x44] ss:$8 sps:$4 sm:$0xff]   ;;  %v7475_v63 = vld [vmem:[%s9992_s4 + $0x34] ss:$8 sps:$4 sm:$0xff]  }
 0xf85   : > { %v7024_v1 = vpop.f32.mrf.mxu0 }
 0xf86   : > { %7044 = vmatmul.mubr.msk.bf16.vlgmr.msra.gmra.mxu1 %vm3683_vm10, %v4035_v0  ;;  %v7473_v0 = vld [vmem:[%s9992_s4 + $0x30] ss:$8 sps:$4 sm:$0xff]   ;;  %v7478_v1 = vld [vmem:[%s9992_s4 + $0x24] ss:$8 sps:$4 sm:$0xff]  }
 0xf87   : > { %7057 = vmatprep.mubr.msk.bf16.mxu1 %vm8169_vm9, %v8168_v25  ;;  %7054 = vmatpush3.bf16.msra.mxu1 %v7457_v35 }
 0xf88   : > { %7055 = vmatprep.subr.bf16.mxu1 %v8168_v25 }
 0xf8b   : > { %7056 = vmatpush3.bf16.msra.mxu1 %v7458_v7 }
 0xf8c   : > { %7067 = vmatprep.subr.bf16.mxu1 %v8168_v25 }
 0xf8f   : > { %v4096_v5 = vpop.f32.mrf.mxu1 }
 0xf91   : > { %v7029_v49 = vpop.f32.mrf.mxu1 }
 0xf92   : > { %v7482_v49 = vld [vmem:[%s9992_s4] ss:$8 sps:$4 sm:$0xff]  }
 0xf93   : > { %v4099_v8 = vpop.f32.mrf.mxu1 }
 0xf94   : > { %v4103_v9 = vpack.c.bf16 %v4099_v8, %v4096_v5  ;;  %v7481_v5 = vld [vmem:[%s9992_s4 + $0x14] ss:$8 sps:$4 sm:$0xff]  }
 0xf95   : > { %v7030_v11 = vpop.f32.mrf.mxu1 }
 0xf96   : > { %7036 = vmatmul.mubr.msk.bf16.vlgmr.msra.gmra.mxu0 %vm3683_vm10, %v4103_v9 }
 0xf97   : > { %7048 = vmatpush3.bf16.msra.mxu0 %v4228_v10  ;;  %7049 = vmatprep.mubr.msk.bf16.mxu0 %vm8169_vm9, %v8168_v25 }
 0xf98   : > { %7061 = vmatprep.subr.bf16.mxu0 %v8168_v25 }
 0xf9e   : > { %7050 = vmatmul.mubr.msk.bf16.vlgmr.msra.gmra.mxu0 %vm3914_vm13, %v4221_v18 }
 0xf9f   : > { %7062 = vmatpush3.bf16.msra.mxu0 %v4343_v17  ;;  %7063 = vmatprep.mubr.msk.bf16.mxu0 %vm8169_vm9, %v8168_v25 }
 0xfa0   : > { %7075 = vmatprep.subr.bf16.mxu0 %v8168_v25 }
 0xfa6   : > { %7064 = vmatmul.mubr.msk.bf16.vlgmr.msra.gmra.mxu0 %vm3914_vm13, %v4336_v26 }
 0xfa7   : > { %7091 = vmatprep.mubr.msk.bf16.mxu0 %vm8169_vm9, %v8168_v25 }
0x1046   : > { %v4209_v33 = vpop.f32.mrf.mxu1 }
0x1048   : > { %v7045_v27 = vpop.f32.mrf.mxu1 }
0x104a   : > { %v4212_v28 = vpop.f32.mrf.mxu1 }
0x104c   : > { %v7046_v29 = vpop.f32.mrf.mxu1 }
0x104d   : > { %v7487_v29 = vld [vmem:[%s9995_s18 + $0x38] sm:$0xff]  }
0x104e   : > { %7076 = vmatpush3.bf16.msra.mxu0 %v7487_v29 }
0x104f   : > { %7077 = vmatprep.subr.bf16.mxu0 %v8168_v25 }
0x1056   : > { %v4153_v30 = vpop.f32.mrf.mxu0 }
0x1057   : > { %v9472_v31 = vadd.f32 %v4209_v33, %v4153_v30  ;;  %v7488_v30 = vld [vmem:[%s9995_s18 + $0x30] sm:$0xff]  }
0x1058   : > { %v7037_v37 = vpop.f32.mrf.mxu0  ;;  %7078 = vmatpush3.bf16.msra.mxu0 %v7488_v30 }
0x1059   : > { %7079 = vmatprep.subr.bf16.mxu0 %v8168_v25  ;;  %v7490_v37 = vld [vmem:[%s9995_s18 + $0x20] sm:$0xff]  }
0x105a   : > { %v4156_v38 = vpop.f32.mrf.mxu0 }
0x105b   : > { %v9474_v39 = vadd.f32 %v4212_v28, %v4156_v38  ;;  %v7491_v38 = vld [vmem:[%s9995_s18 + $0x18] sm:$0xff]  }
0x105c   : > { %v7038_v40 = vpop.f32.mrf.mxu0 }
0x105d   : > { %v7493_v40 = vld [vmem:[%s9995_s18 + $0x8] sm:$0xff]  }
0x105e   : > { %v4264_v41 = vpop.f32.mrf.mxu0 }
0x1060   : > { %v7051_v42 = vpop.f32.mrf.mxu0 }
0x1061   : > { %v3382_v42 = vld [vmem:[%s9053_s0] sm:$0x3]  ;;  %s9996_s0 = scalar_lea.vmem [#allocation17], %s8971_s24 }
0x1062   : > { %v4267_v43 = vpop.f32.mrf.mxu0 }
0x1063   : > { %v4271_v45 = vpack.c.bf16 %v4267_v43, %v4264_v41  ;;  %v7494_v41 = vld [vmem:[%s9995_s18] sm:$0xff]   ;;  %v4600_v43 = vrot.slane %v3382_v42, %v9363_v4 }
0x1064   : > { %v7052_v46 = vpop.f32.mrf.mxu0 }
0x1065   : > { %7058 = vmatmul.mubr.msk.bf16.vlgmr.msra.gmra.mxu1 %vm3683_vm10, %v4271_v45 }
0x1066   : > { %v4379_v47 = vpop.f32.mrf.mxu0  ;;  %7068 = vmatpush3.bf16.msra.mxu1 %v7459_v44  ;;  %7071 = vmatprep.mubr.msk.bf16.mxu1 %vm8169_vm9, %v8168_v25 }
0x1067   : > { %7069 = vmatprep.subr.bf16.mxu1 %v8168_v25 }
0x1068   : > { %v7065_v50 = vpop.f32.mrf.mxu0 }
0x106a   : > { %v4382_v51 = vpop.f32.mrf.mxu0  ;;  %7070 = vmatpush3.bf16.msra.mxu1 %v7460_v48 }
0x106b   : > { %v4386_v54 = vpack.c.bf16 %v4382_v51, %v4379_v47  ;;  %4695 = vmatprep.subr.bf16.mxu1 %v7463_v58 }
0x106c   : > { %v7066_v55 = vpop.f32.mrf.mxu0 }
0x106d   : > { %7072 = vmatmul.mubr.msk.bf16.vlgmr.msra.gmra.mxu1 %vm3683_vm10, %v4386_v54 }
0x106e   : > { %4727 = vmatprep.mubr.bf16.mxu1 %v8167_v52  ;;  %4696 = vmatpush1.bf16.msra.mxu1 %v7461_v56 }
0x106f   : > { %4697 = vmatprep.subr.bf16.mxu1 %v7466_v59 }
0x1072   : > { %4698 = vmatpush1.bf16.msra.mxu1 %v7464_v57 }
0x1073   : > { %4699 = vmatprep.subr.bf16.mxu1 %v7469_v60 }
0x1076   : > { %4700 = vmatpush1.bf16.msra.mxu1 %v7467_v61 }
0x1077   : > { %4701 = vmatprep.subr.bf16.mxu1 %v7472_v62 }
0x107a   : > { %4702 = vmatpush1.bf16.msra.mxu1 %v7470_v22 }
0x107b   : > { %4703 = vmatprep.subr.bf16.mxu1 %v7475_v63 }
0x107e   : > { %4704 = vmatpush1.bf16.msra.mxu1 %v7473_v0 }
0x107f   : > { %4705 = vmatprep.subr.bf16.mxu1 %v7478_v1 }
0x1082   : > { %4706 = vmatpush1.bf16.msra.mxu1 %v7476_v3 }
0x1083   : > { %4707 = vmatprep.subr.bf16.mxu1 %v7481_v5  ;;  %v9549_v5 = vld [vmem:[%s9063_s26] sm:$0x3f]  ;;  %s9999_s26 = sld [smem:[#allocation53_spill]] }
0x1086   : > { %4708 = vmatpush1.bf16.msra.mxu1 %v7479_v2 }
0x1087   : > { %4709 = vmatprep.subr.bf16.mxu1 %v7484_v32 }
0x108a   : > { %4710 = vmatpush1.bf16.msra.mxu1 %v7482_v49 }
0x108b   : > { %7103 = vmatprep.subr.bf16.mxu1 %v8168_v25 }
0x108d   : > { %4728 = vmatmul.mubr.bf16.vlgmr.msra.gmra.mxu1 %v7485_v19  ;;  %v4487_v19 = vrot.slane %v9549_v5, %v9359_v36 }
0x108e   : > { %4737 = vmatprep.mubr.bf16.mxu1 %v8167_v52 }
0x1125   : > { %v4321_v20 = vpop.f32.mrf.mxu1 }
0x1126   : > { %v4328_v11 = vadd.f32 %v4321_v20, %v9472_v31  ;;  %v7489_v31 = vld [vmem:[%s9995_s18 + $0x28] sm:$0xff]  }
0x1127   : > { %v7059_v8 = vpop.f32.mrf.mxu1  ;;  %7080 = vmatpush3.bf16.msra.mxu0 %v7489_v31 }
0x1128   : > { %7081 = vmatprep.subr.bf16.mxu0 %v8168_v25 }
0x1129   : > { %v4324_v9 = vpop.f32.mrf.mxu1 }
0x112a   : > { %v4329_v16 = vadd.f32 %v4324_v9, %v9474_v39  ;;  %v7492_v39 = vld [vmem:[%s9995_s18 + $0x10] sm:$0xff]  }
0x112b   : > { %v7060_v10 = vpop.f32.mrf.mxu1  ;;  %7082 = vmatpush3.bf16.msra.mxu0 %v7490_v37 }
0x112c   : > { %7083 = vmatprep.subr.bf16.mxu0 %v8168_v25 }
0x112d   : > { %v4436_v13 = vpop.f32.mrf.mxu1 }
0x112e   : > { %v4443_v14 = vadd.f32 %v4436_v13, %v4328_v11  ;;  %v4493_v11 = vrot.slane %v9549_v5, %v9363_v4 }
0x112f   : > { %v7073_v15 = vpop.f32.mrf.mxu1  ;;  %7084 = vmatpush3.bf16.msra.mxu0 %v7491_v38 }
0x1130   : > { %v4451_v17 = vadd.f32 %v6611_v12, %v4443_v14  ;;  %7085 = vmatprep.subr.bf16.mxu0 %v8168_v25 }
0x1131   : > { %v4439_v18 = vpop.f32.mrf.mxu1 }
0x1132   : > { %v4444_v24 = vadd.f32 %v4439_v18, %v4329_v16  ;;  %v9510_v6 = vadd.f32 %v4451_v17, %v9326_v21  ;;  %v4596_v16 = vrot.slane %v3382_v42, %v9359_v36  ;;  %v6612_v42 = vld [vmem:[%s9996_s0] ss:$0 sm:$0xff] }
0x1133   : > { %v7074_v26 = vpop.f32.mrf.mxu1  ;;  %7086 = vmatpush3.bf16.msra.mxu0 %v7492_v39 }
0x1134   : > { %v4452_v35 = vadd.f32 %v6611_v12, %v4444_v24  ;;  %4455 = vadd.xlane.f32.xlu1 %v9510_v6  ;;  %v4463_v33 = vmul.f32 %v9510_v6, %v9510_v6  ;;  %7087 = vmatprep.subr.bf16.mxu0 %v8168_v25 }
0x1136   : > { %v9514_v7 = vadd.f32 %v4452_v35, %v9328_v23  ;;  %v7486_v23 = vld [vmem:[%s9993_s20 + $0x8] sm:$0xff]  }
0x1137   : > { %4738 = vmatmul.mubr.bf16.gmra.mxu1 %v7486_v23  ;;  %7088 = vmatpush3.bf16.msra.mxu0 %v7493_v40 }
0x1138   : > { %4465 = vadd.xlane.f32.xlu1 %v4463_v33  ;;  %v4457_v27 = vsel %vm3888_vm14, %v9514_v7, 0.0  ;;  %v4464_v21 = vmul.f32 %v9514_v7, %v9514_v7  ;;  %7107 = vmatprep.mubr.msk.bf16.mxu1 %vm8169_vm9, %v8168_v25 }
0x1139   : > { %4458 = vadd.xlane.f32.xlu0 %v4457_v27  ;;  %7089 = vmatprep.subr.bf16.mxu0 %v8168_v25 }
0x113a   : > { %v4467_v28 = vsel %vm3888_vm14, %v4464_v21, 0.0 }
0x113b   : > { %7090 = vmatpush3.bf16.msra.mxu0 %v7494_v41 }
0x113c   : > { %4468 = vadd.xlane.f32.xlu1 %v4467_v28  ;;  %7095 = vmatprep.subr.bf16.mxu0 %v8168_v25 }
0x114d   : > { %v4729_v44 = vpop.f32.mrf.mxu1 }
0x114e   : > { %v4730_v35 = vadd.f32 %v4729_v44, %v4596_v16 }
0x114f   : > { %v4731_v45 = vpop.f32.mrf.mxu1 }
0x1150   : > { %v4732_v46 = vadd.f32 %v4731_v45, %v4600_v43 }
0x1151   : > { %v4733_v47 = vpop.f32.mrf.mxu1 }
0x1153   : > { %v4735_v48 = vpop.f32.mrf.mxu1 }
0x1154   : > { %v4736_v50 = vadd.f32 %v4735_v48, %v4600_v43 }
0x1156   : > { %v9546_v51 = vpack.c.bf16 %v4736_v50, %v4732_v46 }
0x11bd   : > { %v4456_v54 = vpop.xlane.xlu1 %4455 }
0x11be   : > { %v4461_v55 = vmul.f32 0.0078125, %v4456_v54 }
0x11c0   : > { %v4472_v58 = vmul.f32 %v4461_v55, %v4461_v55  ;;  %v4476_v2 = vsub.f32 %v9510_v6, %v4461_v55 }
0x11c1   : > { %v4466_v56 = vpop.xlane.xlu1 %4465 }
0x11c2   : > { %v4470_v59 = vmul.f32 0.0078125, %v4466_v56  ;;  %v4459_v57 = vpop.xlane.xlu0 %4458 }
0x11c3   : > { %v4462_v60 = vmul.f32 0.0078125, %v4459_v57 }
0x11c4   : > { %v4474_v61 = vsub.f32 %v4470_v59, %v4472_v58 }
0x11c5   : > { %v4473_v62 = vmul.f32 %v4462_v60, %v4462_v60  ;;  %v4469_v22 = vpop.xlane.xlu1 %4468  ;;  %v4477_v20 = vsub.f32 %v9514_v7, %v4462_v60  ;;  %v4734_v7 = vadd.f32 %v4733_v47, %v4596_v16 }
0x11c6   : > { %v4478_v63 = vadd.f32 1e-05, %v4474_v61  ;;  %v4471_v0 = vmul.f32 0.0078125, %v4469_v22 }
0x11c7   : > { %v4749_v23 = vpack.c.bf16 %v4734_v7, %v4730_v35 }
0x11c8   : > { %7567 = vrsqrt.f32 %v4478_v63  ;;  %v4475_v1 = vsub.f32 %v4471_v0, %v4473_v62 }
0x11c9   : > { %v4757_v31 = vsel %vm3683_vm10, %v4749_v23, 0 }
0x11ca   : > { %v4479_v3 = vadd.f32 1e-05, %v4475_v1 }
0x11cc   : > { %7569 = vrsqrt.f32 %v4479_v3 }
0x11d5   : > { %v7568_v32 = vpop.eup %7567 }
0x11d6   : > { %v4482_v49 = vmul.f32 %v7568_v32, %v4476_v2 }
0x11d8   : > { %v4488_v10 = vmul.f32 %v4487_v19, %v4482_v49 }
0x11d9   : > { %v7570_v8 = vpop.eup %7569 }
0x11da   : > { %v4483_v9 = vmul.f32 %v7570_v8, %v4477_v20  ;;  %v9557_v13 = vadd.f32 %v4493_v11, %v4488_v10 }
0x11dc   : > { %v4489_v12 = vmul.f32 %v4487_v19, %v4483_v9 }
0x11de   : > { %v9559_v14 = vadd.f32 %v4493_v11, %v4489_v12 }
0x11e0   : > { %v4496_v15 = vpack.c.bf16 %v9559_v14, %v9557_v13 }
0x11e2   : > { %7092 = vmatmul.mubr.bf16.vlgmr.msra.gmra.mxu0 %v4496_v15 }
0x11e3   : > { %7099 = vmatprep.mubr.msk.bf16.mxu0 %vm8169_vm9, %v8168_v25 }
0x11f7   : > { %v4739_v17 = vpop.f32.mrf.mxu1 }
0x11f8   : > { %v4740_v24 = vadd.f32 %v4739_v17, %v4596_v16 }
0x11f9   : > { %v4741_v18 = vpop.f32.mrf.mxu1 }
0x11fa   : > { %v4742_v6 = vadd.f32 %v4741_v18, %v4600_v43 }
0x11fb   : > { %v4743_v26 = vpop.f32.mrf.mxu1 }
0x11fc   : > { %v4744_v33 = vadd.f32 %v4743_v26, %v4596_v16 }
0x11fd   : > { %v4745_v27 = vpop.f32.mrf.mxu1 }
0x11fe   : > { %v4750_v21 = vpack.c.bf16 %v4744_v33, %v4740_v24  ;;  %v4746_v28 = vadd.f32 %v4745_v27, %v4600_v43 }
0x1200   : > { %4866 = vrot.lane.b32.xlu0 %v4750_v21, %s8171_s27  ;;  %4810 = vrot.lane.b32.xlu1 %v4750_v21, %s8170_s17  ;;  %v4760_v29 = vsel %vm3683_vm10, %v4750_v21, 0  ;;  %v9569_v30 = vpack.c.bf16 %v4746_v28, %v4742_v6 }
0x1201   : > { %7096 = vmatpush3.bf16.xpose.msra.mxu0 %v4760_v29 }
0x1202   : > { %7097 = vmatprep.subr.bf16.mxu0 %v8168_v25 }
0x1204   : > { %4808 = vrot.lane.b32.xlu1 %v4749_v23, %s8170_s17 }
0x1208   : > { %4864 = vrot.lane.b32.xlu1 %v4749_v23, %s8171_s27 }
0x1209   : > { %7098 = vmatpush3.bf16.xpose.msra.mxu0 %v4757_v31 }
0x120a   : > { %7111 = vmatprep.subr.bf16.mxu0 %v8168_v25 }
0x1272   : > { %v4811_v37 = vpop.permute.xlu1 %4810  ;;  %v4867_v47 = vpop.permute.xlu0 %4866 }
0x1273   : > { %v4819_v38 = vsel %vm3683_vm10, %v4811_v37, 0  ;;  %v4875_v54 = vsel %vm3683_vm10, %v4867_v47, 0 }
0x1274   : > { %7104 = vmatpush3.bf16.xpose.msra.mxu1 %v4819_v38 }
0x1275   : > { %7105 = vmatprep.subr.bf16.mxu1 %v8168_v25 }
0x1276   : > { %v4809_v39 = vpop.permute.xlu1 %4808 }
0x1277   : > { %v4816_v40 = vsel %vm3683_vm10, %v4809_v39, 0 }
0x127a   : > { %v4865_v55 = vpop.permute.xlu1 %4864 }
0x127b   : > { %v4872_v56 = vsel %vm3683_vm10, %v4865_v55, 0 }
0x127c   : > { %7106 = vmatpush3.bf16.xpose.msra.mxu1 %v4816_v40 }
0x127d   : > { %7119 = vmatprep.subr.bf16.mxu1 %v8168_v25 }
0x12a2   : > { %v4585_v41 = vpop.f32.mrf.mxu0 }
0x12a3   : > { %v4586_v45 = vadd.f32 %v6612_v42, %v4585_v41 }
0x12a4   : > { %v7093_v43 = vpop.f32.mrf.mxu0 }
0x12a6   : > { %v4588_v44 = vpop.f32.mrf.mxu0 }
0x12a7   : > { %v4589_v46 = vadd.f32 %v6612_v42, %v4588_v44 }
0x12a8   : > { %v7094_v48 = vpop.f32.mrf.mxu0 }
0x12a9   : > { %v4748_v50 = vpack.c.bf16 %v4589_v46, %v4586_v45 }
0x12ab   : > { %4862 = vrot.lane.b32.xlu0 %v4748_v50, %s8171_s27  ;;  %4804 = vrot.lane.b32.xlu1 %v4748_v50, %s8170_s17 }
0x12ac   : > { %7100 = vmatmul.mubr.msk.bf16.vlgmr.msra.gmra.mxu0 %vm3683_vm10, %v4748_v50 }
0x12ad   : > { %7112 = vmatpush3.bf16.xpose.msra.mxu0 %v4875_v54  ;;  %7115 = vmatprep.mubr.msk.bf16.mxu0 %vm8169_vm9, %v8168_v25 }
0x12ae   : > { %7113 = vmatprep.subr.bf16.mxu0 %v8168_v25 }
0x12af   : > { %4920 = vrot.lane.b32.xlu0 %v4749_v23, %s8172_s2  ;;  %4922 = vrot.lane.b32.xlu1 %v4750_v21, %s8172_s2 }
0x12b3   : > { %4918 = vrot.lane.b32.xlu1 %v4748_v50, %s8172_s2 }
0x12b5   : > { %7114 = vmatpush3.bf16.xpose.msra.mxu0 %v4872_v56 }
0x12b6   : > { %7127 = vmatprep.subr.bf16.mxu0 %v8168_v25 }
0x131d   : > { %v4863_v58 = vpop.permute.xlu0 %4862  ;;  %v4805_v59 = vpop.permute.xlu1 %4804 }
0x131e   : > { %7108 = vmatmul.mubr.msk.bf16.vlgmr.msra.gmra.mxu1 %vm3683_vm10, %v4805_v59  ;;  %7116 = vmatmul.mubr.msk.bf16.vlgmr.msra.gmra.mxu0 %vm3683_vm10, %v4863_v58 }
0x131f   : > { %7128 = vmatpush3.bf16.msra.mxu0 %v9569_v30  ;;  %7123 = vmatprep.mubr.msk.bf16.mxu1 %vm8169_vm9, %v8168_v25 }
0x1320   : > { %7129 = vmatprep.subr.bf16.mxu0 %v8168_v25  ;;  %7131 = vmatprep.mubr.msk.bf16.mxu0 %vm8169_vm9, %v8168_v25 }
0x1321   : > { %v4923_v57 = vpop.permute.xlu1 %4922  ;;  %v4921_v61 = vpop.permute.xlu0 %4920 }
0x1322   : > { %v4931_v60 = vsel %vm3683_vm10, %v4923_v57, 0  ;;  %v4928_v62 = vsel %vm3683_vm10, %v4921_v61, 0 }
0x1323   : > { %7130 = vmatpush3.bf16.msra.mxu0 %v9546_v51  ;;  %7120 = vmatpush3.bf16.xpose.msra.mxu1 %v4931_v60 }
0x1324   : > { %7121 = vmatprep.subr.bf16.mxu1 %v8168_v25  ;;  %7143 = vmatprep.subr.bf16.mxu0 %v8168_v25 }
0x1325   : > { %v4919_v22 = vpop.permute.xlu1 %4918 }
0x132b   : > { %7122 = vmatpush3.bf16.xpose.msra.mxu1 %v4928_v62 }
0x132c   : > { %7135 = vmatprep.subr.bf16.mxu1 %v8168_v25 }
0x1332   : > { %7124 = vmatmul.mubr.msk.bf16.vlgmr.msra.gmra.mxu1 %vm3683_vm10, %v4919_v22 }
0x1333   : > { %7139 = vmatprep.mubr.msk.bf16.mxu1 %vm8169_vm9, %v8168_v25 }
0x136c   : > { %v4796_v63 = vpop.f32.mrf.mxu0 }
0x136d   : > { %v4999_v0 = vsel %vm3683_vm10, %v4796_v63, -inf }
0x136e   : > { %5000 = vmax.xlane.f32.xlu0 %v4999_v0  ;;  %v7101_v1 = vpop.f32.mrf.mxu0 }
0x1370   : > { %v4799_v3 = vpop.f32.mrf.mxu0 }
0x1372   : > { %v7102_v2 = vpop.f32.mrf.mxu0 }
0x13de   : > { %v4855_v32 = vpop.f32.mrf.mxu1  ;;  %v4911_v49 = vpop.f32.mrf.mxu0 }
0x13df   : > { %v4976_v19 = vrot.slane %v4855_v32, 5  ;;  %v4983_v16 = vrot.slane %v4911_v49, 2 }
0x13e0   : > { %v7109_v20 = vpop.f32.mrf.mxu1  ;;  %v7117_v8 = vpop.f32.mrf.mxu0 }
0x13e1   : > { %v4996_v9 = vsel %vm3888_vm14, %v4799_v3, %v4976_v19 }
0x13e2   : > { %v4858_v10 = vpop.f32.mrf.mxu1  ;;  %v4914_v11 = vpop.f32.mrf.mxu0  ;;  %v5002_v12 = vsel %vm3683_vm10, %v4996_v9, -inf }
0x13e3   : > { %v4977_v15 = vrot.slane %v4858_v10, 5  ;;  %5003 = vmax.xlane.f32.xlu1 %v5002_v12  ;;  %v4984_v17 = vrot.slane %v4914_v11, 2 }
0x13e4   : > { %v7110_v18 = vpop.f32.mrf.mxu1  ;;  %v7118_v24 = vpop.f32.mrf.mxu0 }
0x13e5   : > { %v4978_v6 = vsel %vm3888_vm14, %v4976_v19, %v4977_v15  ;;  %v4985_v7 = vsel %vm3896_vm12, %v4983_v16, %v4984_v17 }
0x13e6   : > { %v4997_v26 = vsel %vm3896_vm12, %v4978_v6, %v4983_v16  ;;  %v5008_v33 = vsel %vm3683_vm10, %v4985_v7, -inf }
0x13e7   : > { %v5005_v35 = vsel %vm3683_vm10, %v4997_v26, -inf }
0x13e8   : > { %5006 = vmax.xlane.f32.xlu0 %v5005_v35 }
0x13ec   : > { %5009 = vmax.xlane.f32.xlu0 %v5008_v33 }
0x13f2   : > { %v4967_v27 = vpop.f32.mrf.mxu1 }
0x13f3   : > { %v4991_v21 = vrot.slane %v4967_v27, 7 }
0x13f4   : > { %v7125_v28 = vpop.f32.mrf.mxu1 }
0x13f5   : > { %v9620_v23 = vsel %vm3905_vm15, %v4984_v17, %v4991_v21 }
0x13f6   : > { %v4970_v29 = vpop.f32.mrf.mxu1  ;;  %v5011_v22 = vsel %vm3683_vm10, %v9620_v23, -inf }
0x13f7   : > { %v4992_v31 = vrot.slane %v4970_v29, 7  ;;  %v5001_v37 = vpop.xlane.xlu0 %5000 }
0x13f8   : > { %v5018_v38 = vsub.f32 %v4796_v63, %v5001_v37  ;;  %v7126_v39 = vpop.f32.mrf.mxu1 }
0x13f9   : > { %v9623_v40 = vsel %vm3905_vm15, %v4991_v21, %v4992_v31 }
0x13fa   : > { %v5024_v41 = vmul.f32 1.442695, %v5018_v38  ;;  %v5015_v63 = vsel %vm5014_vm2, %v9623_v40, -inf }
0x13fc   : > { %7571 = vpow2.f32 %v5024_v41 }
0x1409   : > { %v7572_v42 = vpop.eup %7571 }
0x140a   : > { %v5036_v43 = vsel %vm3683_vm10, %v7572_v42, 0.0 }
0x140b   : > { %5037 = vadd.xlane.f32.xlu1 %v5036_v43 }
0x146c   : > { %v5004_v44 = vpop.xlane.xlu1 %5003 }
0x146d   : > { %v5019_v45 = vsub.f32 %v4996_v9, %v5004_v44 }
0x146f   : > { %v5026_v46 = vmul.f32 1.442695, %v5019_v45 }
0x1471   : > { %7573 = vpow2.f32 %v5026_v46  ;;  %v5007_v47 = vpop.xlane.xlu0 %5006 }
0x1472   : > { %v5020_v48 = vsub.f32 %v4997_v26, %v5007_v47  ;;  %v7495_v47 = vld [vmem:[%s9997_s22 + $0x8] sm:$0xff]  }
0x1474   : > { %v5028_v50 = vmul.f32 1.442695, %v5020_v48  ;;  %v7498_v48 = vld [vmem:[%s9997_s22 + $0x10] sm:$0xff]  }
0x1475   : > { %v5010_v54 = vpop.xlane.xlu0 %5009 }
0x1476   : > { %7575 = vpow2.f32 %v5028_v50  ;;  %v5021_v55 = vsub.f32 %v4985_v7, %v5010_v54 }
0x1478   : > { %v5030_v56 = vmul.f32 1.442695, %v5021_v55 }
0x147a   : > { %7577 = vpow2.f32 %v5030_v56 }
0x147e   : > { %v7574_v58 = vpop.eup %7573 }
0x147f   : > { %v5039_v59 = vsel %vm3683_vm10, %v7574_v58, 0.0 }
0x1480   : > { %5040 = vadd.xlane.f32.xlu0 %v5039_v59 }
0x1483   : > { %v7576_v57 = vpop.eup %7575 }
0x1484   : > { %v5042_v60 = vsel %vm3683_vm10, %v7576_v57, 0.0 }
0x1485   : > { %5043 = vadd.xlane.f32.xlu1 %v5042_v60 }
0x1487   : > { %v7578_v61 = vpop.eup %7577 }
0x1488   : > { %v5045_v62 = vsel %vm3683_vm10, %v7578_v61, 0.0 }
0x1489   : > { %5046 = vadd.xlane.f32.xlu0 %v5045_v62 }
0x1494   : > { %v5038_v0 = vpop.xlane.xlu1 %5037 }
0x1495   : > { %7579 = vrcp.f32 %v5038_v0 }
0x1496   : > { %5134 = vrot.lane.b32.xlu1 %v9569_v30, %s8170_s17 }
0x149f   : > { %5132 = vrot.lane.b32.xlu0 %v9546_v51, %s8170_s17 }
0x14a2   : > { %v7580_v49 = vpop.eup %7579 }
0x14a3   : > { %v5060_v8 = vmul.f32 %v7580_v49, %v7572_v42 }
0x14ba   : > { %5012 = vmax.xlane.f32.xlu1 %v5011_v22 }
0x14be   : > { %5016 = vmax.xlane.f32.xlu0 %v5015_v63 }
0x14cb   : > { %5302 = vrot.lane.b32.xlu1 %v9569_v30, %s8171_s27 }
0x1509   : > { %v5041_v1 = vpop.xlane.xlu0 %5040 }
0x150a   : > { %7581 = vrcp.f32 %v5041_v1 }
0x150e   : > { %v5044_v3 = vpop.xlane.xlu1 %5043 }
0x150f   : > { %7583 = vrcp.f32 %v5044_v3 }
0x1512   : > { %v5135_v2 = vpop.permute.xlu1 %5134  ;;  %v5047_v32 = vpop.xlane.xlu0 %5046 }
0x1513   : > { %7585 = vrcp.f32 %v5047_v32  ;;  %7136 = vmatpush3.bf16.msra.mxu1 %v5135_v2 }
0x1514   : > { %7137 = vmatprep.subr.bf16.mxu1 %v8168_v25 }
0x1516   : > { %v5133_v19 = vpop.permute.xlu0 %5132 }
0x1517   : > { %v7582_v20 = vpop.eup %7581  ;;  %7138 = vmatpush3.bf16.msra.mxu1 %v5133_v19 }
0x1518   : > { %v5061_v9 = vmul.f32 %v7582_v20, %v7574_v58  ;;  %7151 = vmatprep.subr.bf16.mxu1 %v8168_v25 }
0x151a   : > { %v5066_v10 = vpack.c.bf16 %v5061_v9, %v5060_v8 }
0x151c   : > { %7132 = vmatmul.mubr.msk.bf16.vlgmr.msra.gmra.mxu0 %vm3683_vm10, %v5066_v10  ;;  %v7584_v11 = vpop.eup %7583  ;;  %v5114_v17 = vshrl.u32 %v5066_v10, 16  ;;  %v5117_v18 = vshll.u32 %v5066_v10, 16 }
0x151d   : > { %7147 = vmatprep.mubr.msk.bf16.mxu0 %vm8169_vm9, %v8168_v25  ;;  %v5062_v15 = vmul.f32 %v7584_v11, %v7576_v57 }
0x151e   : > { %v5116_v6 = vrot.slane %v5114_v17, 5  ;;  %v5119_v26 = vrot.slane %v5117_v18, 6  ;;  %v7500_v17 = vld [vmem:[%s9997_s22 + $0x20] sm:$0xff]  }
0x1520   : > { %v7586_v12 = vpop.eup %7585  ;;  %v5120_v21 = vor.u32 %v5119_v26, %v5116_v6 }
0x1521   : > { %v5063_v16 = vmul.f32 %v7586_v12, %v7578_v61 }
0x1523   : > { %v9644_v24 = vpack.c.bf16 %v5063_v16, %v5062_v15  ;;  %v7499_v16 = vld [vmem:[%s9997_s22 + $0x28] sm:$0xff]  }
0x1525   : > { %v5122_v35 = vshrl.u32 %v9644_v24, 16  ;;  %v5125_v7 = vshll.u32 %v9644_v24, 16  ;;  %v5297_v49 = vrot.slane %v9644_v24, 3 }
0x1527   : > { %v5124_v33 = vrot.slane %v5122_v35, 5  ;;  %v5127_v27 = vrot.slane %v5125_v7, 6 }
0x1529   : > { %v5128_v28 = vor.u32 %v5127_v27, %v5124_v33 }
0x152b   : > { %v5129_v29 = vsel %vm4036_vm1, %v5120_v21, %v5128_v28 }
0x152c   : > { %7140 = vmatmul.mubr.msk.bf16.vlgmr.msra.gmra.mxu1 %vm3683_vm10, %v5129_v29 }
0x152d   : > { %7155 = vmatprep.mubr.msk.bf16.mxu1 %vm8169_vm9, %v8168_v25  ;;  %7152 = vmatpush3.bf16.msra.mxu1 %v7495_v47 }
0x152e   : > { %7153 = vmatprep.subr.bf16.mxu1 %v8168_v25 }
0x1543   : > { %v5013_v31 = vpop.xlane.xlu1 %5012 }
0x1544   : > { %v5022_v37 = vsub.f32 %v9620_v23, %v5013_v31  ;;  %v7496_v23 = vld [vmem:[%s9997_s22] sm:$0xff]  }
0x1545   : > { %7154 = vmatpush3.bf16.msra.mxu1 %v7496_v23 }
0x1546   : > { %v5032_v38 = vmul.f32 1.442695, %v5022_v37  ;;  %7167 = vmatprep.subr.bf16.mxu1 %v8168_v25  ;;  %v7501_v37 = vld [vmem:[%s9997_s22 + $0x38] sm:$0xff]  }
0x1547   : > { %v5017_v39 = vpop.xlane.xlu0 %5016  ;;  %v5303_v50 = vpop.permute.xlu1 %5302 }
0x1548   : > { %7587 = vpow2.f32 %v5032_v38  ;;  %v5023_v41 = vsub.f32 %v9623_v40, %v5017_v39  ;;  %v7497_v40 = vld [vmem:[%s9997_s22 + $0x18] sm:$0xff]  }
0x1549   : > { %7144 = vmatpush3.bf16.msra.mxu0 %v7497_v40 }
0x154a   : > { %v5034_v42 = vmul.f32 1.442695, %v5023_v41  ;;  %7145 = vmatprep.subr.bf16.mxu0 %v8168_v25 }
0x154c   : > { %7589 = vpow2.f32 %v5034_v42  ;;  %v7502_v42 = vld [vmem:[%s9997_s22 + $0x30] sm:$0xff]  }
0x154d   : > { %7146 = vmatpush3.bf16.msra.mxu0 %v7498_v48 }
0x154e   : > { %7159 = vmatprep.subr.bf16.mxu0 %v8168_v25 }
0x1555   : > { %v7588_v43 = vpop.eup %7587 }
0x1556   : > { %v5048_v44 = vsel %vm3683_vm10, %v7588_v43, 0.0 }
0x1557   : > { %5049 = vadd.xlane.f32.xlu1 %v5048_v44 }
0x1559   : > { %v7590_v45 = vpop.eup %7589 }
0x155a   : > { %v5051_v46 = vsel %vm5014_vm2, %v7590_v45, 0.0 }
0x155b   : > { %5052 = vadd.xlane.f32.xlu0 %v5051_v46 }
0x1568   : > { %5418 = vrot.lane.b32.xlu1 %v9569_v30, %s8172_s2 }
0x156c   : > { %5416 = vrot.lane.b32.xlu1 %v9546_v51, %s8172_s2 }
0x1571   : > { %5300 = vrot.lane.b32.xlu0 %v9546_v51, %s8171_s27 }
0x15dc   : > { %v5106_v54 = vpop.f32.mrf.mxu0 }
0x15de   : > { %v7133_v55 = vpop.f32.mrf.mxu0 }
0x15e0   : > { %v5050_v56 = vpop.xlane.xlu1 %5049  ;;  %v5109_v58 = vpop.f32.mrf.mxu0 }
0x15e1   : > { %v5113_v30 = vpack.c.bf16 %v5109_v58, %v5106_v54  ;;  %7591 = vrcp.f32 %v5050_v56  ;;  %v6659_v54 = vld [vmem:[%s9998_s7] ss:$0 sm:$0xff] }
0x15e2   : > { %v7134_v59 = vpop.f32.mrf.mxu0 }
0x15e3   : > { %7156 = vmatmul.mubr.msk.bf16.vlgmr.msra.gmra.mxu1 %vm3683_vm10, %v5113_v30 }
0x15e4   : > { %v5053_v57 = vpop.xlane.xlu0 %5052  ;;  %7171 = vmatprep.mubr.msk.bf16.mxu1 %vm8169_vm9, %v8168_v25  ;;  %v5419_v20 = vpop.permute.xlu1 %5418  ;;  %7168 = vmatpush3.bf16.msra.mxu1 %v7499_v16  ;;  %v7526_v16 = vld [vmem:[%s9999_s26 + $0x4] ss:$8 sps:$4 sm:$0xff]  }
0x15e5   : > { %7593 = vrcp.f32 %v5053_v57  ;;  %7169 = vmatprep.subr.bf16.mxu1 %v8168_v25 }
0x15e8   : > { %v5301_v32 = vpop.permute.xlu0 %5300  ;;  %v5417_v11 = vpop.permute.xlu1 %5416  ;;  %7170 = vmatpush3.bf16.msra.mxu1 %v7500_v17  ;;  %v7524_v17 = vld [vmem:[%s9999_s26] ss:$8 sps:$4 sm:$0xff]  }
0x15e9   : > { %7183 = vmatprep.subr.bf16.mxu1 %v8168_v25 }
0x15ec   : > { %v5175_v60 = vpop.f32.mrf.mxu1 }
0x15ee   : > { %v7141_v61 = vpop.f32.mrf.mxu1  ;;  %v7592_v51 = vpop.eup %7591 }
0x15ef   : > { %v5064_v1 = vmul.f32 %v7592_v51, %v7588_v43 }
0x15f0   : > { %v5178_v62 = vpop.f32.mrf.mxu1 }
0x15f1   : > { %v5182_v22 = vpack.c.bf16 %v5178_v62, %v5175_v60 }
0x15f2   : > { %v7594_v63 = vpop.eup %7593  ;;  %v7142_v0 = vpop.f32.mrf.mxu1 }
0x15f3   : > { %v5065_v3 = vmul.f32 %v7594_v63, %v7590_v45  ;;  %7148 = vmatmul.mubr.msk.bf16.vlgmr.msra.gmra.mxu0 %vm3683_vm10, %v5182_v22 }
0x15f4   : > { %7160 = vmatpush3.bf16.msra.mxu0 %v5303_v50  ;;  %7163 = vmatprep.mubr.msk.bf16.mxu0 %vm8169_vm9, %v8168_v25 }
0x15f5   : > { %7161 = vmatprep.subr.bf16.mxu0 %v8168_v25  ;;  %v5068_v2 = vpack.c.bf16 %v5065_v3, %v5064_v1  ;;  %v7503_v1 = vld [vmem:[%s9999_s26 + $0x70] ss:$8 sps:$4 sm:$0xff]   ;;  %v7508_v3 = vld [vmem:[%s9999_s26 + $0x64] ss:$8 sps:$4 sm:$0xff]  }
0x15f7   : > { %v5298_v19 = vrot.slane %v5068_v2, 3  ;;  %v5412_v9 = vshll.u32 %v5068_v2, 16  ;;  %v5410_v12 = vshrl.u32 %v5068_v2, 16  ;;  %v7506_v2 = vld [vmem:[%s9999_s26 + $0x60] ss:$8 sps:$4 sm:$0xff]  }
0x15f8   : > { %7162 = vmatpush3.bf16.msra.mxu0 %v5301_v32  ;;  %v7511_v32 = vld [vmem:[%s9999_s26 + $0x54] ss:$8 sps:$4 sm:$0xff]  }
0x15f9   : > { %7175 = vmatprep.subr.bf16.mxu0 %v8168_v25  ;;  %v5299_v8 = vsel %vm3988_vm11, %v5297_v49, %v5298_v19  ;;  %v5414_v10 = vrot.slane %v5412_v9, 1  ;;  %v7509_v49 = vld [vmem:[%s9999_s26 + $0x50] ss:$8 sps:$4 sm:$0xff]   ;;  %v7512_v19 = vld [vmem:[%s9999_s26 + $0x40] ss:$8 sps:$4 sm:$0xff]  }
0x15fa   : > { %v7515_v9 = vld [vmem:[%s9999_s26 + $0x30] ss:$8 sps:$4 sm:$0xff]  }
0x15fb   : > { %7164 = vmatmul.mubr.msk.bf16.vlgmr.msra.gmra.mxu0 %vm3683_vm10, %v5299_v8  ;;  %v5415_v15 = vor.u32 %v5414_v10, %v5410_v12  ;;  %v7517_v8 = vld [vmem:[%s9999_s26 + $0x34] ss:$8 sps:$4 sm:$0xff]   ;;  %v7520_v10 = vld [vmem:[%s9999_s26 + $0x24] ss:$8 sps:$4 sm:$0xff]  }
0x15fc   : > { %7176 = vmatpush3.bf16.msra.mxu0 %v5419_v20  ;;  %7179 = vmatprep.mubr.msk.bf16.mxu0 %vm8169_vm9, %v8168_v25  ;;  %v7514_v20 = vld [vmem:[%s9999_s26 + $0x44] ss:$8 sps:$4 sm:$0xff]   ;;  %v7523_v12 = vld [vmem:[%s9999_s26 + $0x14] ss:$8 sps:$4 sm:$0xff]  }
0x15fd   : > { %7177 = vmatprep.subr.bf16.mxu0 %v8168_v25 }
0x1600   : > { %7178 = vmatpush3.bf16.msra.mxu0 %v5417_v11  ;;  %v7518_v11 = vld [vmem:[%s9999_s26 + $0x20] ss:$8 sps:$4 sm:$0xff]  }
0x1603   : > { %7180 = vmatmul.mubr.msk.bf16.vlgmr.msra.gmra.mxu0 %vm3683_vm10, %v5415_v15  ;;  %v7521_v15 = vld [vmem:[%s9999_s26 + $0x10] ss:$8 sps:$4 sm:$0xff]  }
0x1604   : > { %5699 = vmatprep.mubr.bf16.mxu0 %v8167_v52 }
0x16a3   : > { %v5288_v18 = vpop.f32.mrf.mxu1 }
0x16a5   : > { %v7157_v24 = vpop.f32.mrf.mxu1 }
0x16a6   : > { %v7528_v24 = vld [vmem:[%s10000_s23 + $0x38] sm:$0xff]  }
0x16a7   : > { %v5291_v6 = vpop.f32.mrf.mxu1 }
0x16a9   : > { %v7158_v26 = vpop.f32.mrf.mxu1 }
0x16aa   : > { %v7530_v26 = vld [vmem:[%s10000_s23 + $0x30] sm:$0xff]  }
0x16b3   : > { %v5232_v35 = vpop.f32.mrf.mxu0 }
0x16b4   : > { %v5289_v7 = vadd.f32 %v5288_v18, %v5232_v35  ;;  %v7527_v18 = vld [vmem:[%s10000_s23 + $0x78] sm:$0xff]   ;;  %v7531_v35 = vld [vmem:[%s10000_s23 + $0x68] sm:$0xff]  }
0x16b5   : > { %v7149_v33 = vpop.f32.mrf.mxu0 }
0x16b6   : > { %v7533_v33 = vld [vmem:[%s10000_s23 + $0x60] sm:$0xff]  }
0x16b7   : > { %v5235_v27 = vpop.f32.mrf.mxu0 }
0x16b8   : > { %v5292_v21 = vadd.f32 %v5291_v6, %v5235_v27  ;;  %v7529_v6 = vld [vmem:[%s10000_s23 + $0x70] sm:$0xff]   ;;  %v7534_v27 = vld [vmem:[%s10000_s23 + $0x20] sm:$0xff]  }
0x16b9   : > { %v7150_v52 = vpop.f32.mrf.mxu0 }
0x16ba   : > { %v7536_v52 = vld [vmem:[%s10000_s23 + $0x18] sm:$0xff]  }
0x16bb   : > { %v5343_v28 = vpop.f32.mrf.mxu0 }
0x16bd   : > { %v7165_v29 = vpop.f32.mrf.mxu0 }
0x16bf   : > { %v5346_v31 = vpop.f32.mrf.mxu0 }
0x16c0   : > { %v5350_v38 = vpack.c.bf16 %v5346_v31, %v5343_v28 }
0x16c1   : > { %v7166_v39 = vpop.f32.mrf.mxu0 }
0x16c2   : > { %7172 = vmatmul.mubr.msk.bf16.vlgmr.msra.gmra.mxu1 %vm3683_vm10, %v5350_v38 }
0x16c3   : > { %v5459_v41 = vpop.f32.mrf.mxu0  ;;  %7184 = vmatpush3.bf16.msra.mxu1 %v7501_v37  ;;  %7187 = vmatprep.mubr.msk.bf16.mxu1 %vm8169_vm9, %v8168_v25 }
0x16c4   : > { %7185 = vmatprep.subr.bf16.mxu1 %v8168_v25 }
0x16c5   : > { %v7181_v43 = vpop.f32.mrf.mxu0 }
0x16c7   : > { %v5462_v44 = vpop.f32.mrf.mxu0  ;;  %7186 = vmatpush3.bf16.msra.mxu1 %v7502_v42 }
0x16c8   : > { %v5466_v45 = vpack.c.bf16 %v5462_v44, %v5459_v41  ;;  %6853 = vmatprep.subr.bf16.mxu1 %v7527_v18 }
0x16c9   : > { %v7182_v46 = vpop.f32.mrf.mxu0 }
0x16ca   : > { %7188 = vmatmul.mubr.msk.bf16.vlgmr.msra.gmra.mxu1 %vm3683_vm10, %v5466_v45 }
0x16cb   : > { %6854 = vmatpush3.bf16.msra.mxu1 %v7528_v24 }
0x16cc   : > { %6855 = vmatprep.subr.bf16.mxu1 %v7529_v6 }
0x16cf   : > { %6856 = vmatpush3.bf16.msra.mxu1 %v7530_v26 }
0x16d0   : > { %6857 = vmatprep.subr.bf16.mxu1 %v7531_v35 }
0x1782   : > { %v5400_v47 = vpop.f32.mrf.mxu1 }
0x1783   : > { %v5407_v50 = vadd.f32 %v5400_v47, %v5289_v7  ;;  %v7532_v7 = vld [vmem:[%s10000_s23 + $0x28] sm:$0xff]  }
0x1784   : > { %v7173_v23 = vpop.f32.mrf.mxu1  ;;  %6858 = vmatpush3.bf16.msra.mxu1 %v7532_v7 }
0x1785   : > { %6859 = vmatprep.subr.bf16.mxu1 %v7533_v33 }
0x1786   : > { %v5403_v40 = vpop.f32.mrf.mxu1 }
0x1787   : > { %v5408_v30 = vadd.f32 %v5403_v40, %v5292_v21  ;;  %v7535_v21 = vld [vmem:[%s10000_s23 + $0x58] sm:$0xff]  }
0x1788   : > { %v7174_v48 = vpop.f32.mrf.mxu1  ;;  %6860 = vmatpush3.bf16.msra.mxu1 %v7534_v27 }
0x1789   : > { %6861 = vmatprep.subr.bf16.mxu1 %v7535_v21 }
0x178a   : > { %v5516_v55 = vpop.f32.mrf.mxu1 }
0x178b   : > { %v5523_v56 = vadd.f32 %v5516_v55, %v5407_v50  ;;  %v5566_v50 = vrot.slane %v9549_v5, %v3463_v53  ;;  %v5571_v55 = vsub.s32 3, %v9356_v34  ;;  %v7537_v53 = vld [vmem:[%s10000_s23 + $0x50] sm:$0xff]  }
0x178c   : > { %v7189_v58 = vpop.f32.mrf.mxu1  ;;  %6862 = vmatpush3.bf16.msra.mxu1 %v7536_v52 }
0x178d   : > { %v5531_v25 = vadd.f32 %v6659_v54, %v5523_v56  ;;  %6863 = vmatprep.subr.bf16.mxu1 %v7537_v53 }
0x178e   : > { %v5519_v59 = vpop.f32.mrf.mxu1 }
0x178f   : > { %v5524_v57 = vadd.f32 %v5519_v59, %v5408_v30  ;;  %v9700_v60 = vadd.f32 %v5531_v25, %v9557_v13  ;;  %v5572_v59 = vrot.slane %v9549_v5, %v5571_v55  ;;  %v5891_v55 = vsub.s32 4, %v9356_v34 }
0x1790   : > { %v7190_v61 = vpop.f32.mrf.mxu1 }
0x1791   : > { %v5532_v51 = vadd.f32 %v6659_v54, %v5524_v57  ;;  %5535 = vadd.xlane.f32.xlu0 %v9700_v60  ;;  %v5542_v22 = vmul.f32 %v9700_v60, %v9700_v60 }
0x1793   : > { %v9704_v62 = vadd.f32 %v5532_v51, %v9559_v14  ;;  %v7505_v14 = vld [vmem:[%s9999_s26 + $0x74] ss:$8 sps:$4 sm:$0xff]  }
0x1794   : > { %5667 = vmatprep.subr.bf16.mxu0 %v7505_v14  ;;  %v3416_v14 = vld [vmem:[%s10001_s9] sm:$0x3] }
0x1795   : > { %5544 = vadd.xlane.f32.xlu0 %v5542_v22  ;;  %v5537_v63 = vsel %vm3888_vm14, %v9704_v62, 0.0  ;;  %v5543_v13 = vmul.f32 %v9704_v62, %v9704_v62  ;;  %5668 = vmatpush1.bf16.msra.mxu0 %v7503_v1  ;;  %v7538_v22 = vld [vmem:[%s10000_s23 + $0x10] sm:$0xff]  }
0x1796   : > { %5538 = vadd.xlane.f32.xlu1 %v5537_v63  ;;  %5669 = vmatprep.subr.bf16.mxu0 %v7508_v3  ;;  %v7539_v63 = vld [vmem:[%s10000_s23 + $0x48] sm:$0xff]   ;;  %v5584_v3 = vrot.slane %v3416_v14, %v9363_v4  ;;  %v6676_v4 = vld [vmem:[%s1507_s10] ss:$0 sm:$0xff] }
0x1797   : > { %v5546_v0 = vsel %vm3888_vm14, %v5543_v13, 0.0  ;;  %6864 = vmatpush3.bf16.msra.mxu1 %v7538_v22  ;;  %v7540_v13 = vld [vmem:[%s10000_s23 + $0x8] sm:$0xff]  }
0x1798   : > { %6865 = vmatprep.subr.bf16.mxu1 %v7539_v63 }
0x1799   : > { %5547 = vadd.xlane.f32.xlu0 %v5546_v0  ;;  %5670 = vmatpush1.bf16.msra.mxu0 %v7506_v2  ;;  %v7542_v0 = vld [vmem:[%s10000_s23] sm:$0xff]   ;;  %v5580_v2 = vrot.slane %v3416_v14, %v9359_v36 }
0x179a   : > { %5671 = vmatprep.subr.bf16.mxu0 %v7511_v32 }
0x179b   : > { %6866 = vmatpush3.bf16.msra.mxu1 %v7540_v13 }
0x179d   : > { %5672 = vmatpush1.bf16.msra.mxu0 %v7509_v49 }
0x179e   : > { %5673 = vmatprep.subr.bf16.mxu0 %v7514_v20 }
0x17a1   : > { %5674 = vmatpush1.bf16.msra.mxu0 %v7512_v19 }
0x17a2   : > { %5675 = vmatprep.subr.bf16.mxu0 %v7517_v8 }
0x17a5   : > { %5676 = vmatpush1.bf16.msra.mxu0 %v7515_v9 }
0x17a6   : > { %5677 = vmatprep.subr.bf16.mxu0 %v7520_v10 }
0x17a9   : > { %5678 = vmatpush1.bf16.msra.mxu0 %v7518_v11 }
0x17aa   : > { %5679 = vmatprep.subr.bf16.mxu0 %v7523_v12 }
0x17ad   : > { %5680 = vmatpush1.bf16.msra.mxu0 %v7521_v15 }
0x17ae   : > { %5681 = vmatprep.subr.bf16.mxu0 %v7526_v16 }
0x17b1   : > { %5682 = vmatpush1.bf16.msra.mxu0 %v7524_v17 }
0x181a   : > { %v5536_v28 = vpop.xlane.xlu0 %5535 }
0x181b   : > { %v5540_v29 = vmul.f32 0.0078125, %v5536_v28 }
0x181d   : > { %v5551_v37 = vmul.f32 %v5540_v29, %v5540_v29  ;;  %v5555_v40 = vsub.f32 %v9700_v60, %v5540_v29 }
0x181e   : > { %v5545_v31 = vpop.xlane.xlu0 %5544 }
0x181f   : > { %v5549_v38 = vmul.f32 0.0078125, %v5545_v31  ;;  %v5539_v39 = vpop.xlane.xlu1 %5538 }
0x1820   : > { %v5541_v41 = vmul.f32 0.0078125, %v5539_v39 }
0x1821   : > { %v5553_v42 = vsub.f32 %v5549_v38, %v5551_v37 }
0x1822   : > { %v5552_v43 = vmul.f32 %v5541_v41, %v5541_v41  ;;  %v5548_v44 = vpop.xlane.xlu0 %5547  ;;  %v5556_v56 = vsub.f32 %v9704_v62, %v5541_v41  ;;  %v7541_v62 = vld [vmem:[%s10000_s23 + $0x40] sm:$0xff]  }
0x1823   : > { %v5557_v45 = vadd.f32 1e-05, %v5553_v42  ;;  %v5550_v46 = vmul.f32 0.0078125, %v5548_v44  ;;  %6867 = vmatprep.subr.bf16.mxu1 %v7541_v62 }
0x1824   : > { %6868 = vmatpush3.bf16.msra.mxu1 %v7542_v0 }
0x1825   : > { %7595 = vrsqrt.f32 %v5557_v45  ;;  %v5554_v47 = vsub.f32 %v5550_v46, %v5552_v43 }
0x1827   : > { %v5558_v23 = vadd.f32 1e-05, %v5554_v47 }
0x1829   : > { %7597 = vrsqrt.f32 %v5558_v23 }
0x1832   : > { %v7596_v48 = vpop.eup %7595 }
0x1833   : > { %v5561_v54 = vmul.f32 %v7596_v48, %v5555_v40 }
0x1835   : > { %v5567_v25 = vmul.f32 %v5566_v50, %v5561_v54 }
0x1836   : > { %v7598_v58 = vpop.eup %7597 }
0x1837   : > { %v5562_v30 = vmul.f32 %v7598_v58, %v5556_v56  ;;  %v5573_v60 = vadd.f32 %v5572_v59, %v5567_v25  ;;  %v5897_v56 = vsub.s32 5, %v9356_v34 }
0x1839   : > { %v5568_v57 = vmul.f32 %v5566_v50, %v5562_v30  ;;  %v5892_v30 = vrot.slane %v9549_v5, %v5891_v55 }
0x183b   : > { %v5574_v61 = vadd.f32 %v5572_v59, %v5568_v57  ;;  %v5898_v59 = vrot.slane %v9549_v5, %v5897_v56 }
0x183d   : > { %v5575_v51 = vpack.c.bf16 %v5574_v61, %v5573_v60 }
0x183f   : > { %5700 = vmatmul.mubr.bf16.vlgmr.msra.gmra.mxu0 %v5575_v51 }
0x18ff   : > { %v5701_v1 = vpop.f32.mrf.mxu0 }
0x1900   : > { %v5702_v8 = vadd.f32 %v5701_v1, %v5580_v2 }
0x1901   : > { %v5703_v32 = vpop.f32.mrf.mxu0 }
0x1902   : > { %v5704_v19 = vadd.f32 %v5703_v32, %v5584_v3  ;;  %v5710_v16 = vmax.f32 %v5702_v8, 0.0 }
0x1903   : > { %v5705_v49 = vpop.f32.mrf.mxu0 }
0x1904   : > { %v5706_v20 = vadd.f32 %v5705_v49, %v5580_v2  ;;  %v5711_v12 = vmax.f32 %v5704_v19, 0.0 }
0x1905   : > { %v5707_v9 = vpop.f32.mrf.mxu0 }
0x1906   : > { %v5708_v10 = vadd.f32 %v5707_v9, %v5584_v3  ;;  %v5712_v11 = vmax.f32 %v5706_v20, 0.0 }
0x1908   : > { %v5713_v15 = vmax.f32 %v5708_v10, 0.0  ;;  %v5714_v18 = vpack.c.bf16 %v5712_v11, %v5710_v16 }
0x190a   : > { %v5715_v17 = vpack.c.bf16 %v5713_v15, %v5711_v12 }
0x190c   : > { %5850 = vmatprep.mubr.bf16.mxu1 %v5715_v17 }
0x190d   : > { %5851 = vmatmul.mubr.bf16.vlgmr.msra.gmra.mxu1 %v5714_v18 }
0x19cd   : > { %v6869_v24 = vpop.f32.mrf.mxu1 }
0x19cf   : > { %v6870_v36 = vpop.f32.mrf.mxu1 }
0x19d0   : > { %v6871_v6 = vadd.f32 %v6870_v36, %v6869_v24 }
0x19d1   : > { %v6872_v26 = vpop.f32.mrf.mxu1 }
0x19d2   : > { %v5853_v35 = vadd.f32 %v6871_v6, %v6676_v4 }
0x19d3   : > { %v6873_v7 = vpop.f32.mrf.mxu1 }
0x19d4   : > { %v6874_v33 = vadd.f32 %v6873_v7, %v6872_v26  ;;  %v5859_v27 = vadd.f32 %v5853_v35, %v5573_v60 }
0x19d6   : > { %v5856_v21 = vadd.f32 %v6874_v33, %v6676_v4  ;;  %5861 = vadd.xlane.f32.xlu1 %v5859_v27  ;;  %v5868_v28 = vmul.f32 %v5859_v27, %v5859_v27 }
0x19d8   : > { %v5860_v52 = vadd.f32 %v5856_v21, %v5574_v61 }
0x19da   : > { %5870 = vadd.xlane.f32.xlu1 %v5868_v28  ;;  %v5863_v29 = vsel %vm3888_vm14, %v5860_v52, 0.0  ;;  %v5869_v31 = vmul.f32 %v5860_v52, %v5860_v52 }
0x19db   : > { %5864 = vadd.xlane.f32.xlu0 %v5863_v29 }
0x19dc   : > { %v5872_v37 = vsel %vm3888_vm14, %v5869_v31, 0.0 }
0x19df   : > { %5873 = vadd.xlane.f32.xlu0 %v5872_v37 }
0x1a5f   : > { %v5862_v38 = vpop.xlane.xlu1 %5861 }
0x1a60   : > { %v5866_v39 = vmul.f32 0.0078125, %v5862_v38 }
0x1a62   : > { %v5877_v42 = vmul.f32 %v5866_v39, %v5866_v39  ;;  %v5881_v58 = vsub.f32 %v5859_v27, %v5866_v39 }
0x1a63   : > { %v5871_v41 = vpop.xlane.xlu1 %5870 }
0x1a64   : > { %v5875_v43 = vmul.f32 0.0078125, %v5871_v41  ;;  %v5865_v44 = vpop.xlane.xlu0 %5864 }
0x1a65   : > { %v5867_v45 = vmul.f32 0.0078125, %v5865_v44 }
0x1a66   : > { %v5879_v46 = vsub.f32 %v5875_v43, %v5877_v42 }
0x1a67   : > { %v5878_v40 = vmul.f32 %v5867_v45, %v5867_v45  ;;  %v5882_v61 = vsub.f32 %v5860_v52, %v5867_v45 }
0x1a68   : > { %v5883_v47 = vadd.f32 1e-05, %v5879_v46  ;;  %v5874_v23 = vpop.xlane.xlu0 %5873 }
0x1a69   : > { %v5876_v48 = vmul.f32 0.0078125, %v5874_v23 }
0x1a6a   : > { %7599 = vrsqrt.f32 %v5883_v47 }
0x1a6b   : > { %v5880_v50 = vsub.f32 %v5876_v48, %v5878_v40 }
0x1a6d   : > { %v5884_v54 = vadd.f32 1e-05, %v5880_v50 }
0x1a6f   : > { %7601 = vrsqrt.f32 %v5884_v54 }
0x1a77   : > { %v7600_v25 = vpop.eup %7599 }
0x1a78   : > { %v5887_v57 = vmul.f32 %v7600_v25, %v5881_v58 }
0x1a7a   : > { %v5893_v60 = vmul.f32 %v5892_v30, %v5887_v57 }
0x1a7c   : > { %v7602_v51 = vpop.eup %7601  ;;  %v5899_v53 = vadd.f32 %v5898_v59, %v5893_v60 }
0x1a7d   : > { %v5888_v22 = vmul.f32 %v7602_v51, %v5882_v61 }
0x1a7e   : > { %5901 = vst [vmem:[#allocation2] sm:$0xff] %v5899_v53 }
0x1a7f   : > { %v5894_v63 = vmul.f32 %v5892_v30, %v5888_v22 }
0x1a81   : > { %v5900_v13 = vadd.f32 %v5898_v59, %v5894_v63 }
0x1a83   : > { %5902 = vst [vmem:[#allocation2 + $0x8] sm:$0x7] %v5900_v13 }
0x1a84 PF: > { %s10002_s24 = sld [smem:[#allocation43_spill]] }
0x1a8a   : > { %p6693_p7 = scmp.ne.s32.totalorder %s10002_s24, 3 }
0x1a8b   : > { %s10003_s13 = sld [smem:[#allocation82_spill]] (!%p6693_p7) }
0x1a8c   : > { %5906 = sbr.rel (%p6693_p7) target bundleno = 6803 (0x1a93), region = 208 }
0x1a91   : > { %v5907_v34 = vld [vmem:[#allocation2] sm:$0xff]  ;;  %v5908_v62 = vld [vmem:[#allocation2 + $0x8] sm:$0x7] }
0x1a92   : > { %5909 = vst [vmem:[%s10003_s13] sm:$0xff] %v5907_v34  ;;  %5910 = vst [vmem:[%s10003_s13 + $0x8] sm:$0x7] %v5908_v62 }
0x1a93 PF: > { %s10004_s29 = sld [smem:[#allocation44_spill]] }
0x1a94   : > { %s10005_s27 = sld [smem:[#allocation38_spill]] }
0x1a95   : > { %s10006_s3 = sld [smem:[#allocation39_spill]] }
0x1a96   : > { %s10007_s7 = sld [smem:[#allocation48_spill]] }
0x1a97   : > { %s10008_s28 = sld [smem:[#allocation40_spill]] }
0x1a98   : > { %s10009_s8 = sld [smem:[#allocation41_spill]] }
0x1a99   : > { %s10010_s4 = sld [smem:[#allocation46_spill]]  ;;  %p60_p4 = scmp.ge.s32.totalorder %s10004_s29, 6  }
0x1a9b   :  { %62 = sbr.rel (!%p60_p4) target bundleno = 49 (0x31), region = 389 }
0x1aa0   :  { %5922 = vsyncpa [#allocation4], 1 }
0x1aa1   :  { %5924 = vsyncpa [#allocation4 + $0x1], 1 }
0x1aa2   :  { %5925 = vsyncpa [#allocation6], 1 }
0x1aa3   :  { %5927 = vsyncpa [#allocation6 + $0x1], 1 }
0x1aa4   :  { %5928 = vsyncpa [#allocation9], 1 }
0x1aa5   :  { %5930 = vsyncpa [#allocation9 + $0x1], 1 }
0x1aa6   :  { %5931 = vsyncpa [#allocation12], 1 }
0x1aa7   :  { %5933 = vsyncpa [#allocation12 + $0x1], 1 }
0x1aa8   :  { %5934 = vsyncpa [#allocation15], 1 }
0x1aa9   :  { %5936 = vsyncpa [#allocation15 + $0x1], 1 }
0x1aaa   :  { %5937 = vsyncpa [#allocation18], 1 }
0x1aab   :  { %5939 = vsyncpa [#allocation18 + $0x1], 1 }
0x1aac   :  { %5940 = vsyncpa [#allocation21], 1 }
0x1aad   :  { %5942 = vsyncpa [#allocation21 + $0x1], 1 }
0x1aae   :  { %5943 = vsyncpa [#allocation24], 1 }
0x1aaf   :  { %5945 = vsyncpa [#allocation24 + $0x1], 1 }
0x1ab0   :  { %5946 = vsyncpa [#allocation27], 1 }
0x1ab1   :  { %5948 = vsyncpa [#allocation27 + $0x1], 1 }

</bundles_post_ra>
